<compile_context>
chip_gen: v5e
topology: v5e:2x2
jax: 0.10.0
libtpu: 0.0.40
codegen_flags: <defaults>
</compile_context>

<pallas_src>
import functools
import math

import jax
import jax.numpy as jnp
import numpy as np
from jax.experimental import pallas as pl
from jax.experimental.pallas import tpu as pltpu


def _conv3d_prelu_kernel(x_ref, w_ref, b_ref, m_ref, a_ref, o_ref,
                         xpad_ref, patch_ref, *,
                         D, H, W, Cin, K, padding, dilation, Rpad,
                         NB, TS, nS, compute_dtype):
    """One (batch-group, spatial-tile) grid step.

    x_ref     : (NB, Cin, S)         unpadded input, spatial flattened in lanes
    w_ref     : (Cout, K^3*Cin)      im2col-ordered weights (compute_dtype)
    b_ref     : (Cout, 1)            bias (f32)
    m_ref     : (K^3, TS)            0/1 boundary mask for this spatial tile (f32)
    a_ref     : (1,) in SMEM         PReLU alpha (single shared parameter)
    o_ref     : (NB, Cout, TS)       output tile (lane-dense)
    xpad_ref  : (NB, Cin, S+2*Rpad)  VMEM scratch, flat-padded input (f32)
    patch_ref : (K^3*Cin, NB*TS)     VMEM scratch, im2col patch (compute_dtype)
    """
    S = D * H * W

    # Flat-pad the input once per batch-group.  The spatial-tile axis is the
    # inner, sequential ("arbitrary") grid axis, so this scratch persists across
    # the tiles of one batch-group.  Only the halo slices are zeroed.
    def fill_xpad():
        halo = jnp.zeros((NB, Cin, Rpad), jnp.float32)
        xpad_ref[:, :, :Rpad] = halo
        xpad_ref[:, :, Rpad + S:] = halo
        xpad_ref[:, :, Rpad:Rpad + S] = x_ref[...].astype(jnp.float32)

    if nS > 1:
        pl.when(pl.program_id(1) == 0)(fill_xpad)
        s_base = pl.multiple_of(pl.program_id(1) * TS, 128)
    else:
        fill_xpad()
        s_base = 0

    # im2col: each of the K^3 taps is a lane-shifted slice of the padded buffer
    # multiplied by its precomputed 0/1 boundary-mask row (one vmul + one pack
    # per vreg); the center tap is all-interior and skips the multiply.
    # TODO(synk): if XLU lane-rotates ever become the limiter, share one aligned
    # load per (kd, kh) and derive the three kw taps with pltpu.roll.
    for kd in range(K):
        for kh in range(K):
            for kw in range(K):
                t = (kd * K + kh) * K + kw
                od = kd * dilation - padding
                oh = kh * dilation - padding
                ow = kw * dilation - padding
                delta = od * (H * W) + oh * W + ow
                center = (od == 0 and oh == 0 and ow == 0)
                mrow = None if center else m_ref[t:t + 1, :]          # (1, TS)
                for b in range(NB):
                    sl = xpad_ref[b, :, pl.ds(s_base + Rpad + delta, TS)]
                    v = sl if center else sl * mrow                   # (Cin, TS) f32
                    patch_ref[t * Cin:(t + 1) * Cin, b * TS:(b + 1) * TS] = (
                        v.astype(compute_dtype))

    # Single MXU matmul: (Cout, K^3*Cin) @ (K^3*Cin, NB*TS), f32 accumulation.
    acc = jnp.dot(w_ref[...], patch_ref[...],
                  preferred_element_type=jnp.float32)
    y = acc + b_ref[...]                        # (Cout, 1) broadcasts over lanes
    alpha = a_ref[0]                            # SMEM scalar
    y = jnp.where(y >= 0, y, alpha * y)         # PReLU (single shared alpha)
    y = y.astype(o_ref.dtype)
    for b in range(NB):
        o_ref[b] = y[:, b * TS:(b + 1) * TS]


def _pick_batch_block(N, nb_max=8):
    # Largest divisor of N that is <= nb_max while keeping >= 2 grid steps
    # whenever N >= 2 (so the batch axis can shard across v7x's 2 TensorCores).
    nb = 1
    for cand in range(1, min(N, nb_max) + 1):
        if N % cand == 0 and (N // cand >= 2 or N == 1):
            nb = cand
    return nb


@functools.partial(
    jax.jit,
    static_argnames=("padding", "dilation", "compute_dtype",
                     "batch_block", "spatial_tile"))
def conv_block_forward(x, weight, bias, alpha, *, padding=1, dilation=1,
                       compute_dtype=jnp.bfloat16, batch_block=None,
                       spatial_tile=None):
    """ConvBlock forward: Conv3d(k, padding, dilation, bias=True) + PReLU.

    x:      (N, Cin, D, H, W)    NCDHW, as in PyTorch
    weight: (Cout, Cin, K, K, K) PyTorch Conv3d layout
    bias:   (Cout,)
    alpha:  scalar PReLU weight  (nn.PReLU() default: one shared parameter)
    """
    N, Cin, D, H, W = x.shape
    Cout, Cin_w, K, K2, K3 = weight.shape
    assert Cin_w == Cin and K == K2 == K3
    # Same-size convolution (output spatial == input spatial), which is what
    # ConvBlock's defaults (k=3, padding=1, dilation=1) give.
    assert 2 * padding == dilation * (K - 1), "kernel assumes a 'same' conv"
    # TODO(synk): non-'same' padding would need a separate output index mapping.

    S = D * H * W
    Kc = K * K * K * Cin
    cd_bytes = jnp.dtype(compute_dtype).itemsize
    f32b = 4

    # Batch elements per grid step.
    NB = _pick_batch_block(N) if batch_block is None else batch_block
    assert N % NB == 0 and NB >= 1

    # Spatial tile (lanes): guards the (K^3*Cin, NB*TS) patch scratch against
    # v7x's 64 MiB VMEM at production sizes; whole S when it already fits.
    if spatial_tile is None:
        TS = S
        if S % 128 == 0:
            while TS % 256 == 0 and Kc * NB * TS * cd_bytes > (4 << 20):
                TS //= 2
    else:
        TS = spatial_tile
    assert S % TS == 0 and (TS % 128 == 0 or TS == S)
    nS = S // TS

    # Lane-aligned halo width for the flat-padded scratch.
    maxoff = padding * (H * W + W + 1)             # largest |flat tap offset|
    Rpad = ((maxoff + 127) // 128) * 128

    # Precomputed 0/1 boundary masks, one (S,) row per tap (trace-time numpy
    # constant, ~K^3*S*4 bytes; resident in VMEM via a constant index map).
    s_np = np.arange(S)
    d_np, h_np, w_np = s_np // (H * W), (s_np // W) % H, s_np % W
    rows = []
    for kd in range(K):
        for kh in range(K):
            for kw in range(K):
                od = kd * dilation - padding
                oh = kh * dilation - padding
                ow = kw * dilation - padding
                rows.append((d_np + od >= 0) & (d_np + od < D) &
                            (h_np + oh >= 0) & (h_np + oh < H) &
                            (w_np + ow >= 0) & (w_np + ow < W))
    mask = jnp.asarray(np.stack(rows, 0).astype(np.float32))        # (K^3, S)

    x_flat = x.reshape(N, Cin, S)                                   # free
    w2d = (jnp.transpose(weight, (0, 2, 3, 4, 1))                   # (Cout,K,K,K,Cin)
           .reshape(Cout, Kc).astype(compute_dtype))
    b2 = bias.reshape(Cout, 1).astype(jnp.float32)
    a1 = jnp.asarray(alpha, jnp.float32).reshape(1)

    kernel = functools.partial(
        _conv3d_prelu_kernel, D=D, H=H, W=W, Cin=Cin, K=K,
        padding=padding, dilation=dilation, Rpad=Rpad,
        NB=NB, TS=TS, nS=nS, compute_dtype=compute_dtype)

    # VMEM budget (double-buffered blocks + scratch) with headroom; capped at
    # 64 MiB so the setting is also valid on v7x.
    est = (2 * NB * Cin * S * x.dtype.itemsize          # input block
           + 2 * Cout * Kc * cd_bytes                   # weights
           + 2 * Cout * f32b                            # bias
           + 2 * (K ** 3) * TS * f32b                   # mask tile
           + 2 * NB * Cout * TS * x.dtype.itemsize      # output block
           + NB * Cin * (S + 2 * Rpad) * f32b           # padded-input scratch
           + Kc * NB * TS * cd_bytes)                   # im2col patch scratch
    vmem_limit = min(max(32 << 20, int(est * 3 // 2) + (4 << 20)), 64 << 20)

    out_flat = pl.pallas_call(
        kernel,
        out_shape=jax.ShapeDtypeStruct((N, Cout, S), x.dtype),
        grid=(N // NB, nS),
        in_specs=[
            pl.BlockSpec((NB, Cin, S), lambda n, s: (n, 0, 0)),
            pl.BlockSpec((Cout, Kc), lambda n, s: (0, 0)),
            pl.BlockSpec((Cout, 1), lambda n, s: (0, 0)),
            pl.BlockSpec((K * K * K, TS), lambda n, s: (0, s)),
            pl.BlockSpec(memory_space=pltpu.MemorySpace.SMEM),      # alpha
        ],
        out_specs=pl.BlockSpec((NB, Cout, TS), lambda n, s: (n, 0, s)),
        scratch_shapes=[
            pltpu.VMEM((NB, Cin, S + 2 * Rpad), jnp.float32),       # padded input
            pltpu.VMEM((Kc, NB * TS), compute_dtype),               # im2col patch
        ],
        compiler_params=pltpu.CompilerParams(
            dimension_semantics=("parallel", "arbitrary"),
            vmem_limit_bytes=vmem_limit),
    )(x_flat, w2d, b2, mask, a1)

    return out_flat.reshape(N, Cout, D, H, W)


if __name__ == "__main__":
    N, Cin, Cout = 2, 16, 32
    D, H, W = 8, 8, 8
    K, pad, dil = 3, 1, 1          # ConvBlock defaults

    key = jax.random.PRNGKey(0)
    kx, kw_, kb = jax.random.split(key, 3)
    x = jax.random.normal(kx, (N, Cin, D, H, W), jnp.float32)

    # torch Conv3d default init: U(-1/sqrt(fan_in), +1/sqrt(fan_in))
    fan_in = Cin * K * K * K
    bound = 1.0 / math.sqrt(fan_in)
    weight = jax.random.uniform(kw_, (Cout, Cin, K, K, K), jnp.float32,
                                -bound, bound)
    bias = jax.random.uniform(kb, (Cout,), jnp.float32, -bound, bound)
    alpha = jnp.asarray(0.25, jnp.float32)     # nn.PReLU() default init

    # Reference: XLA conv + bias + PReLU (same forward semantics as the module).
    ref = jax.lax.conv_general_dilated(
        x, weight, window_strides=(1, 1, 1), padding=[(pad, pad)] * 3,
        rhs_dilation=(dil, dil, dil),
        dimension_numbers=("NCDHW", "OIDHW", "NCDHW"),
        precision=jax.lax.Precision.HIGHEST)
    ref = ref + bias.reshape(1, Cout, 1, 1, 1)
    ref = jnp.where(ref >= 0, ref, alpha * ref)

    # Default path: bf16 weights/patch, auto batch-block / spatial tile.
    y = conv_block_forward(x, weight, bias, alpha, padding=pad, dilation=dil)
    jax.block_until_ready(y)
    assert y.shape == (N, Cout, D, H, W), y.shape
    assert bool(jnp.all(jnp.isfinite(y)))
    err = float(jnp.max(jnp.abs(y - ref)))
    assert err < 2e-2, f"bf16 path: max abs error vs reference conv: {err}"

    # f32 path exercising NB>1 batching and spatial tiling (grid = (1, 2)).
    y32 = conv_block_forward(x, weight, bias, alpha, padding=pad, dilation=dil,
                             compute_dtype=jnp.float32, batch_block=2,
                             spatial_tile=256)
    jax.block_until_ready(y32)
    err32 = float(jnp.max(jnp.abs(y32 - ref)))
    assert err32 < 1e-3, f"f32 path: max abs error vs reference conv: {err32}"

    print("KERNEL_OK")
</pallas_src>

<mosaic_0001>
module attributes {stable_mosaic.version = 11 : i64} {
  func.func @_conv3d_prelu_kernel(%arg0: i32, %arg1: i32, %arg2: memref<1x16x512xf32, #tpu.memory_space<vmem>>, %arg3: memref<32x432xbf16, #tpu.memory_space<vmem>>, %arg4: memref<32x1xf32, #tpu.memory_space<vmem>>, %arg5: memref<27x512xf32, #tpu.memory_space<vmem>>, %arg6: memref<1xf32, #tpu.memory_space<smem>>, %arg7: memref<1x32x512xf32, #tpu.memory_space<vmem>>, %arg8: memref<1x16x768xf32, #tpu.memory_space<vmem>>, %arg9: memref<432x512xbf16, #tpu.memory_space<vmem>>) attributes {dimension_semantics = [#tpu.dimension_semantics<parallel>, #tpu.dimension_semantics<arbitrary>], iteration_bounds = array<i64: 2, 1>, scalar_prefetch = 0 : i64, scratch_operands = 2 : i64, tpu.core_type = #tpu.core_type<tc>, window_params = [{transform_indices = @transform_0, window_bounds = array<i64: 1, 16, 512>}, {pipeline_mode = #tpu.pipeline_mode<synchronous>, transform_indices = @transform_1, window_bounds = array<i64: 32, 432>}, {pipeline_mode = #tpu.pipeline_mode<synchronous>, transform_indices = @transform_2, window_bounds = array<i64: 32, 1>}, {transform_indices = @transform_3, window_bounds = array<i64: 27, 512>}, {transform_indices = @transform_4, window_bounds = array<i64: 1>}, {transform_indices = @transform_5, window_bounds = array<i64: 1, 32, 512>}]} {
    %cst = arith.constant 0.000000e+00 : f32
    %0 = vector.broadcast %cst : f32 to vector<1x16x128xf32>
    %c0 = arith.constant 0 : index
    %c0_0 = arith.constant 0 : index
    %c0_1 = arith.constant 0 : index
    %1 = vector.load %arg8[%c0, %c0_0, %c0_1] : memref<1x16x768xf32, #tpu.memory_space<vmem>>, vector<1x16x128xf32>
    tpu.vector_store %arg8[%c0, %c0_0, %c0_1], %0 {strides = array<i32>} : memref<1x16x768xf32, #tpu.memory_space<vmem>>, vector<1x16x128xf32>,
    %c0_2 = arith.constant 0 : index
    %c0_3 = arith.constant 0 : index
    %c640 = arith.constant 640 : index
    %2 = vector.load %arg8[%c0_2, %c0_3, %c640] : memref<1x16x768xf32, #tpu.memory_space<vmem>>, vector<1x16x128xf32>
    tpu.vector_store %arg8[%c0_2, %c0_3, %c640], %0 {strides = array<i32>} : memref<1x16x768xf32, #tpu.memory_space<vmem>>, vector<1x16x128xf32>,
    %c0_4 = arith.constant 0 : index
    %c0_5 = arith.constant 0 : index
    %c0_6 = arith.constant 0 : index
    %3 = vector.load %arg2[%c0_4, %c0_5, %c0_6] : memref<1x16x512xf32, #tpu.memory_space<vmem>>, vector<1x16x512xf32>
    %c0_7 = arith.constant 0 : index
    %c0_8 = arith.constant 0 : index
    %c128 = arith.constant 128 : index
    %4 = vector.load %arg8[%c0_7, %c0_8, %c128] : memref<1x16x768xf32, #tpu.memory_space<vmem>>, vector<1x16x512xf32>
    tpu.vector_store %arg8[%c0_7, %c0_8, %c128], %3 {strides = array<i32>} : memref<1x16x768xf32, #tpu.memory_space<vmem>>, vector<1x16x512xf32>,
    %c0_9 = arith.constant 0 : index
    %c0_10 = arith.constant 0 : index
    %5 = vector.load %arg5[%c0_9, %c0_10] : memref<27x512xf32, #tpu.memory_space<vmem>>, vector<1x512xf32>
    %c0_11 = arith.constant 0 : index
    %c0_12 = arith.constant 0 : index
    %c55 = arith.constant 55 : index
    %6 = vector.load %arg8[%c0_11, %c0_12, %c55] : memref<1x16x768xf32, #tpu.memory_space<vmem>>, vector<1x16x512xf32>
    %7 = vector.shape_cast %6 : vector<1x16x512xf32> to vector<16x512xf32>
    %8 = vector.broadcast %5 : vector<1x512xf32> to vector<16x512xf32>
    %9 = arith.mulf %7, %8 : vector<16x512xf32>
    %10 = arith.truncf %9 : vector<16x512xf32> to vector<16x512xbf16>
    %c0_13 = arith.constant 0 : index
    %c0_14 = arith.constant 0 : index
    %11 = vector.load %arg9[%c0_13, %c0_14] : memref<432x512xbf16, #tpu.memory_space<vmem>>, vector<16x512xbf16>
    tpu.vector_store %arg9[%c0_13, %c0_14], %10 {strides = array<i32>} : memref<432x512xbf16, #tpu.memory_space<vmem>>, vector<16x512xbf16>,
    %c1 = arith.constant 1 : index
    %c0_15 = arith.constant 0 : index
    %12 = vector.load %arg5[%c1, %c0_15] : memref<27x512xf32, #tpu.memory_space<vmem>>, vector<1x512xf32>
    %c0_16 = arith.constant 0 : index
    %c0_17 = arith.constant 0 : index
    %c56 = arith.constant 56 : index
    %13 = vector.load %arg8[%c0_16, %c0_17, %c56] : memref<1x16x768xf32, #tpu.memory_space<vmem>>, vector<1x16x512xf32>
    %14 = vector.shape_cast %13 : vector<1x16x512xf32> to vector<16x512xf32>
    %15 = vector.broadcast %12 : vector<1x512xf32> to vector<16x512xf32>
    %16 = arith.mulf %14, %15 : vector<16x512xf32>
    %17 = arith.truncf %16 : vector<16x512xf32> to vector<16x512xbf16>
    %c16 = arith.constant 16 : index
    %c0_18 = arith.constant 0 : index
    %18 = vector.load %arg9[%c16, %c0_18] : memref<432x512xbf16, #tpu.memory_space<vmem>>, vector<16x512xbf16>
    tpu.vector_store %arg9[%c16, %c0_18], %17 {strides = array<i32>} : memref<432x512xbf16, #tpu.memory_space<vmem>>, vector<16x512xbf16>,
    %c2 = arith.constant 2 : index
    %c0_19 = arith.constant 0 : index
    %19 = vector.load %arg5[%c2, %c0_19] : memref<27x512xf32, #tpu.memory_space<vmem>>, vector<1x512xf32>
    %c0_20 = arith.constant 0 : index
    %c0_21 = arith.constant 0 : index
    %c57 = arith.constant 57 : index
    %20 = vector.load %arg8[%c0_20, %c0_21, %c57] : memref<1x16x768xf32, #tpu.memory_space<vmem>>, vector<1x16x512xf32>
    %21 = vector.shape_cast %20 : vector<1x16x512xf32> to vector<16x512xf32>
    %22 = vector.broadcast %19 : vector<1x512xf32> to vector<16x512xf32>
    %23 = arith.mulf %21, %22 : vector<16x512xf32>
    %24 = arith.truncf %23 : vector<16x512xf32> to vector<16x512xbf16>
    %c32 = arith.constant 32 : index
    %c0_22 = arith.constant 0 : index
    %25 = vector.load %arg9[%c32, %c0_22] : memref<432x512xbf16, #tpu.memory_space<vmem>>, vector<16x512xbf16>
    tpu.vector_store %arg9[%c32, %c0_22], %24 {strides = array<i32>} : memref<432x512xbf16, #tpu.memory_space<vmem>>, vector<16x512xbf16>,
    %c3 = arith.constant 3 : index
    %c0_23 = arith.constant 0 : index
    %26 = vector.load %arg5[%c3, %c0_23] : memref<27x512xf32, #tpu.memory_space<vmem>>, vector<1x512xf32>
    %c0_24 = arith.constant 0 : index
    %c0_25 = arith.constant 0 : index
    %c63 = arith.constant 63 : index
    %27 = vector.load %arg8[%c0_24, %c0_25, %c63] : memref<1x16x768xf32, #tpu.memory_space<vmem>>, vector<1x16x512xf32>
    %28 = vector.shape_cast %27 : vector<1x16x512xf32> to vector<16x512xf32>
    %29 = vector.broadcast %26 : vector<1x512xf32> to vector<16x512xf32>
    %30 = arith.mulf %28, %29 : vector<16x512xf32>
    %31 = arith.truncf %30 : vector<16x512xf32> to vector<16x512xbf16>
    %c48 = arith.constant 48 : index
    %c0_26 = arith.constant 0 : index
    %32 = vector.load %arg9[%c48, %c0_26] : memref<432x512xbf16, #tpu.memory_space<vmem>>, vector<16x512xbf16>
    tpu.vector_store %arg9[%c48, %c0_26], %31 {strides = array<i32>} : memref<432x512xbf16, #tpu.memory_space<vmem>>, vector<16x512xbf16>,
    %c4 = arith.constant 4 : index
    %c0_27 = arith.constant 0 : index
    %33 = vector.load %arg5[%c4, %c0_27] : memref<27x512xf32, #tpu.memory_space<vmem>>, vector<1x512xf32>
    %c0_28 = arith.constant 0 : index
    %c0_29 = arith.constant 0 : index
    %c64 = arith.constant 64 : index
    %34 = vector.load %arg8[%c0_28, %c0_29, %c64] : memref<1x16x768xf32, #tpu.memory_space<vmem>>, vector<1x16x512xf32>
    %35 = vector.shape_cast %34 : vector<1x16x512xf32> to vector<16x512xf32>
    %36 = vector.broadcast %33 : vector<1x512xf32> to vector<16x512xf32>
    %37 = arith.mulf %35, %36 : vector<16x512xf32>
    %38 = arith.truncf %37 : vector<16x512xf32> to vector<16x512xbf16>
    %c64_30 = arith.constant 64 : index
    %c0_31 = arith.constant 0 : index
    %39 = vector.load %arg9[%c64_30, %c0_31] : memref<432x512xbf16, #tpu.memory_space<vmem>>, vector<16x512xbf16>
    tpu.vector_store %arg9[%c64_30, %c0_31], %38 {strides = array<i32>} : memref<432x512xbf16, #tpu.memory_space<vmem>>, vector<16x512xbf16>,
    %c5 = arith.constant 5 : index
    %c0_32 = arith.constant 0 : index
    %40 = vector.load %arg5[%c5, %c0_32] : memref<27x512xf32, #tpu.memory_space<vmem>>, vector<1x512xf32>
    %c0_33 = arith.constant 0 : index
    %c0_34 = arith.constant 0 : index
    %c65 = arith.constant 65 : index
    %41 = vector.load %arg8[%c0_33, %c0_34, %c65] : memref<1x16x768xf32, #tpu.memory_space<vmem>>, vector<1x16x512xf32>
    %42 = vector.shape_cast %41 : vector<1x16x512xf32> to vector<16x512xf32>
    %43 = vector.broadcast %40 : vector<1x512xf32> to vector<16x512xf32>
    %44 = arith.mulf %42, %43 : vector<16x512xf32>
    %45 = arith.truncf %44 : vector<16x512xf32> to vector<16x512xbf16>
    %c80 = arith.constant 80 : index
    %c0_35 = arith.constant 0 : index
    %46 = vector.load %arg9[%c80, %c0_35] : memref<432x512xbf16, #tpu.memory_space<vmem>>, vector<16x512xbf16>
    tpu.vector_store %arg9[%c80, %c0_35], %45 {strides = array<i32>} : memref<432x512xbf16, #tpu.memory_space<vmem>>, vector<16x512xbf16>,
    %c6 = arith.constant 6 : index
    %c0_36 = arith.constant 0 : index
    %47 = vector.load %arg5[%c6, %c0_36] : memref<27x512xf32, #tpu.memory_space<vmem>>, vector<1x512xf32>
    %c0_37 = arith.constant 0 : index
    %c0_38 = arith.constant 0 : index
    %c71 = arith.constant 71 : index
    %48 = vector.load %arg8[%c0_37, %c0_38, %c71] : memref<1x16x768xf32, #tpu.memory_space<vmem>>, vector<1x16x512xf32>
    %49 = vector.shape_cast %48 : vector<1x16x512xf32> to vector<16x512xf32>
    %50 = vector.broadcast %47 : vector<1x512xf32> to vector<16x512xf32>
    %51 = arith.mulf %49, %50 : vector<16x512xf32>
    %52 = arith.truncf %51 : vector<16x512xf32> to vector<16x512xbf16>
    %c96 = arith.constant 96 : index
    %c0_39 = arith.constant 0 : index
    %53 = vector.load %arg9[%c96, %c0_39] : memref<432x512xbf16, #tpu.memory_space<vmem>>, vector<16x512xbf16>
    tpu.vector_store %arg9[%c96, %c0_39], %52 {strides = array<i32>} : memref<432x512xbf16, #tpu.memory_space<vmem>>, vector<16x512xbf16>,
    %c7 = arith.constant 7 : index
    %c0_40 = arith.constant 0 : index
    %54 = vector.load %arg5[%c7, %c0_40] : memref<27x512xf32, #tpu.memory_space<vmem>>, vector<1x512xf32>
    %c0_41 = arith.constant 0 : index
    %c0_42 = arith.constant 0 : index
    %c72 = arith.constant 72 : index
    %55 = vector.load %arg8[%c0_41, %c0_42, %c72] : memref<1x16x768xf32, #tpu.memory_space<vmem>>, vector<1x16x512xf32>
    %56 = vector.shape_cast %55 : vector<1x16x512xf32> to vector<16x512xf32>
    %57 = vector.broadcast %54 : vector<1x512xf32> to vector<16x512xf32>
    %58 = arith.mulf %56, %57 : vector<16x512xf32>
    %59 = arith.truncf %58 : vector<16x512xf32> to vector<16x512xbf16>
    %c112 = arith.constant 112 : index
    %c0_43 = arith.constant 0 : index
    %60 = vector.load %arg9[%c112, %c0_43] : memref<432x512xbf16, #tpu.memory_space<vmem>>, vector<16x512xbf16>
    tpu.vector_store %arg9[%c112, %c0_43], %59 {strides = array<i32>} : memref<432x512xbf16, #tpu.memory_space<vmem>>, vector<16x512xbf16>,
    %c8 = arith.constant 8 : index
    %c0_44 = arith.constant 0 : index
    %61 = vector.load %arg5[%c8, %c0_44] : memref<27x512xf32, #tpu.memory_space<vmem>>, vector<1x512xf32>
    %c0_45 = arith.constant 0 : index
    %c0_46 = arith.constant 0 : index
    %c73 = arith.constant 73 : index
    %62 = vector.load %arg8[%c0_45, %c0_46, %c73] : memref<1x16x768xf32, #tpu.memory_space<vmem>>, vector<1x16x512xf32>
    %63 = vector.shape_cast %62 : vector<1x16x512xf32> to vector<16x512xf32>
    %64 = vector.broadcast %61 : vector<1x512xf32> to vector<16x512xf32>
    %65 = arith.mulf %63, %64 : vector<16x512xf32>
    %66 = arith.truncf %65 : vector<16x512xf32> to vector<16x512xbf16>
    %c128_47 = arith.constant 128 : index
    %c0_48 = arith.constant 0 : index
    %67 = vector.load %arg9[%c128_47, %c0_48] : memref<432x512xbf16, #tpu.memory_space<vmem>>, vector<16x512xbf16>
    tpu.vector_store %arg9[%c128_47, %c0_48], %66 {strides = array<i32>} : memref<432x512xbf16, #tpu.memory_space<vmem>>, vector<16x512xbf16>,
    %c9 = arith.constant 9 : index
    %c0_49 = arith.constant 0 : index
    %68 = vector.load %arg5[%c9, %c0_49] : memref<27x512xf32, #tpu.memory_space<vmem>>, vector<1x512xf32>
    %c0_50 = arith.constant 0 : index
    %c0_51 = arith.constant 0 : index
    %c119 = arith.constant 119 : index
    %69 = vector.load %arg8[%c0_50, %c0_51, %c119] : memref<1x16x768xf32, #tpu.memory_space<vmem>>, vector<1x16x512xf32>
    %70 = vector.shape_cast %69 : vector<1x16x512xf32> to vector<16x512xf32>
    %71 = vector.broadcast %68 : vector<1x512xf32> to vector<16x512xf32>
    %72 = arith.mulf %70, %71 : vector<16x512xf32>
    %73 = arith.truncf %72 : vector<16x512xf32> to vector<16x512xbf16>
    %c144 = arith.constant 144 : index
    %c0_52 = arith.constant 0 : index
    %74 = vector.load %arg9[%c144, %c0_52] : memref<432x512xbf16, #tpu.memory_space<vmem>>, vector<16x512xbf16>
    tpu.vector_store %arg9[%c144, %c0_52], %73 {strides = array<i32>} : memref<432x512xbf16, #tpu.memory_space<vmem>>, vector<16x512xbf16>,
    %c10 = arith.constant 10 : index
    %c0_53 = arith.constant 0 : index
    %75 = vector.load %arg5[%c10, %c0_53] : memref<27x512xf32, #tpu.memory_space<vmem>>, vector<1x512xf32>
    %c0_54 = arith.constant 0 : index
    %c0_55 = arith.constant 0 : index
    %c120 = arith.constant 120 : index
    %76 = vector.load %arg8[%c0_54, %c0_55, %c120] : memref<1x16x768xf32, #tpu.memory_space<vmem>>, vector<1x16x512xf32>
    %77 = vector.shape_cast %76 : vector<1x16x512xf32> to vector<16x512xf32>
    %78 = vector.broadcast %75 : vector<1x512xf32> to vector<16x512xf32>
    %79 = arith.mulf %77, %78 : vector<16x512xf32>
    %80 = arith.truncf %79 : vector<16x512xf32> to vector<16x512xbf16>
    %c160 = arith.constant 160 : index
    %c0_56 = arith.constant 0 : index
    %81 = vector.load %arg9[%c160, %c0_56] : memref<432x512xbf16, #tpu.memory_space<vmem>>, vector<16x512xbf16>
    tpu.vector_store %arg9[%c160, %c0_56], %80 {strides = array<i32>} : memref<432x512xbf16, #tpu.memory_space<vmem>>, vector<16x512xbf16>,
    %c11 = arith.constant 11 : index
    %c0_57 = arith.constant 0 : index
    %82 = vector.load %arg5[%c11, %c0_57] : memref<27x512xf32, #tpu.memory_space<vmem>>, vector<1x512xf32>
    %c0_58 = arith.constant 0 : index
    %c0_59 = arith.constant 0 : index
    %c121 = arith.constant 121 : index
    %83 = vector.load %arg8[%c0_58, %c0_59, %c121] : memref<1x16x768xf32, #tpu.memory_space<vmem>>, vector<1x16x512xf32>
    %84 = vector.shape_cast %83 : vector<1x16x512xf32> to vector<16x512xf32>
    %85 = vector.broadcast %82 : vector<1x512xf32> to vector<16x512xf32>
    %86 = arith.mulf %84, %85 : vector<16x512xf32>
    %87 = arith.truncf %86 : vector<16x512xf32> to vector<16x512xbf16>
    %c176 = arith.constant 176 : index
    %c0_60 = arith.constant 0 : index
    %88 = vector.load %arg9[%c176, %c0_60] : memref<432x512xbf16, #tpu.memory_space<vmem>>, vector<16x512xbf16>
    tpu.vector_store %arg9[%c176, %c0_60], %87 {strides = array<i32>} : memref<432x512xbf16, #tpu.memory_space<vmem>>, vector<16x512xbf16>,
    %c12 = arith.constant 12 : index
    %c0_61 = arith.constant 0 : index
    %89 = vector.load %arg5[%c12, %c0_61] : memref<27x512xf32, #tpu.memory_space<vmem>>, vector<1x512xf32>
    %c0_62 = arith.constant 0 : index
    %c0_63 = arith.constant 0 : index
    %c127 = arith.constant 127 : index
    %90 = vector.load %arg8[%c0_62, %c0_63, %c127] : memref<1x16x768xf32, #tpu.memory_space<vmem>>, vector<1x16x512xf32>
    %91 = vector.shape_cast %90 : vector<1x16x512xf32> to vector<16x512xf32>
    %92 = vector.broadcast %89 : vector<1x512xf32> to vector<16x512xf32>
    %93 = arith.mulf %91, %92 : vector<16x512xf32>
    %94 = arith.truncf %93 : vector<16x512xf32> to vector<16x512xbf16>
    %c192 = arith.constant 192 : index
    %c0_64 = arith.constant 0 : index
    %95 = vector.load %arg9[%c192, %c0_64] : memref<432x512xbf16, #tpu.memory_space<vmem>>, vector<16x512xbf16>
    tpu.vector_store %arg9[%c192, %c0_64], %94 {strides = array<i32>} : memref<432x512xbf16, #tpu.memory_space<vmem>>, vector<16x512xbf16>,
    %c0_65 = arith.constant 0 : index
    %c0_66 = arith.constant 0 : index
    %c128_67 = arith.constant 128 : index
    %96 = vector.load %arg8[%c0_65, %c0_66, %c128_67] : memref<1x16x768xf32, #tpu.memory_space<vmem>>, vector<1x16x512xf32>
    %97 = vector.shape_cast %96 : vector<1x16x512xf32> to vector<16x512xf32>
    %98 = arith.truncf %97 : vector<16x512xf32> to vector<16x512xbf16>
    %c208 = arith.constant 208 : index
    %c0_68 = arith.constant 0 : index
    %99 = vector.load %arg9[%c208, %c0_68] : memref<432x512xbf16, #tpu.memory_space<vmem>>, vector<16x512xbf16>
    tpu.vector_store %arg9[%c208, %c0_68], %98 {strides = array<i32>} : memref<432x512xbf16, #tpu.memory_space<vmem>>, vector<16x512xbf16>,
    %c14 = arith.constant 14 : index
    %c0_69 = arith.constant 0 : index
    %100 = vector.load %arg5[%c14, %c0_69] : memref<27x512xf32, #tpu.memory_space<vmem>>, vector<1x512xf32>
    %c0_70 = arith.constant 0 : index
    %c0_71 = arith.constant 0 : index
    %c129 = arith.constant 129 : index
    %101 = vector.load %arg8[%c0_70, %c0_71, %c129] : memref<1x16x768xf32, #tpu.memory_space<vmem>>, vector<1x16x512xf32>
    %102 = vector.shape_cast %101 : vector<1x16x512xf32> to vector<16x512xf32>
    %103 = vector.broadcast %100 : vector<1x512xf32> to vector<16x512xf32>
    %104 = arith.mulf %102, %103 : vector<16x512xf32>
    %105 = arith.truncf %104 : vector<16x512xf32> to vector<16x512xbf16>
    %c224 = arith.constant 224 : index
    %c0_72 = arith.constant 0 : index
    %106 = vector.load %arg9[%c224, %c0_72] : memref<432x512xbf16, #tpu.memory_space<vmem>>, vector<16x512xbf16>
    tpu.vector_store %arg9[%c224, %c0_72], %105 {strides = array<i32>} : memref<432x512xbf16, #tpu.memory_space<vmem>>, vector<16x512xbf16>,
    %c15 = arith.constant 15 : index
    %c0_73 = arith.constant 0 : index
    %107 = vector.load %arg5[%c15, %c0_73] : memref<27x512xf32, #tpu.memory_space<vmem>>, vector<1x512xf32>
    %c0_74 = arith.constant 0 : index
    %c0_75 = arith.constant 0 : index
    %c135 = arith.constant 135 : index
    %108 = vector.load %arg8[%c0_74, %c0_75, %c135] : memref<1x16x768xf32, #tpu.memory_space<vmem>>, vector<1x16x512xf32>
    %109 = vector.shape_cast %108 : vector<1x16x512xf32> to vector<16x512xf32>
    %110 = vector.broadcast %107 : vector<1x512xf32> to vector<16x512xf32>
    %111 = arith.mulf %109, %110 : vector<16x512xf32>
    %112 = arith.truncf %111 : vector<16x512xf32> to vector<16x512xbf16>
    %c240 = arith.constant 240 : index
    %c0_76 = arith.constant 0 : index
    %113 = vector.load %arg9[%c240, %c0_76] : memref<432x512xbf16, #tpu.memory_space<vmem>>, vector<16x512xbf16>
    tpu.vector_store %arg9[%c240, %c0_76], %112 {strides = array<i32>} : memref<432x512xbf16, #tpu.memory_space<vmem>>, vector<16x512xbf16>,
    %c16_77 = arith.constant 16 : index
    %c0_78 = arith.constant 0 : index
    %114 = vector.load %arg5[%c16_77, %c0_78] : memref<27x512xf32, #tpu.memory_space<vmem>>, vector<1x512xf32>
    %c0_79 = arith.constant 0 : index
    %c0_80 = arith.constant 0 : index
    %c136 = arith.constant 136 : index
    %115 = vector.load %arg8[%c0_79, %c0_80, %c136] : memref<1x16x768xf32, #tpu.memory_space<vmem>>, vector<1x16x512xf32>
    %116 = vector.shape_cast %115 : vector<1x16x512xf32> to vector<16x512xf32>
    %117 = vector.broadcast %114 : vector<1x512xf32> to vector<16x512xf32>
    %118 = arith.mulf %116, %117 : vector<16x512xf32>
    %119 = arith.truncf %118 : vector<16x512xf32> to vector<16x512xbf16>
    %c256 = arith.constant 256 : index
    %c0_81 = arith.constant 0 : index
    %120 = vector.load %arg9[%c256, %c0_81] : memref<432x512xbf16, #tpu.memory_space<vmem>>, vector<16x512xbf16>
    tpu.vector_store %arg9[%c256, %c0_81], %119 {strides = array<i32>} : memref<432x512xbf16, #tpu.memory_space<vmem>>, vector<16x512xbf16>,
    %c17 = arith.constant 17 : index
    %c0_82 = arith.constant 0 : index
    %121 = vector.load %arg5[%c17, %c0_82] : memref<27x512xf32, #tpu.memory_space<vmem>>, vector<1x512xf32>
    %c0_83 = arith.constant 0 : index
    %c0_84 = arith.constant 0 : index
    %c137 = arith.constant 137 : index
    %122 = vector.load %arg8[%c0_83, %c0_84, %c137] : memref<1x16x768xf32, #tpu.memory_space<vmem>>, vector<1x16x512xf32>
    %123 = vector.shape_cast %122 : vector<1x16x512xf32> to vector<16x512xf32>
    %124 = vector.broadcast %121 : vector<1x512xf32> to vector<16x512xf32>
    %125 = arith.mulf %123, %124 : vector<16x512xf32>
    %126 = arith.truncf %125 : vector<16x512xf32> to vector<16x512xbf16>
    %c272 = arith.constant 272 : index
    %c0_85 = arith.constant 0 : index
    %127 = vector.load %arg9[%c272, %c0_85] : memref<432x512xbf16, #tpu.memory_space<vmem>>, vector<16x512xbf16>
    tpu.vector_store %arg9[%c272, %c0_85], %126 {strides = array<i32>} : memref<432x512xbf16, #tpu.memory_space<vmem>>, vector<16x512xbf16>,
    %c18 = arith.constant 18 : index
    %c0_86 = arith.constant 0 : index
    %128 = vector.load %arg5[%c18, %c0_86] : memref<27x512xf32, #tpu.memory_space<vmem>>, vector<1x512xf32>
    %c0_87 = arith.constant 0 : index
    %c0_88 = arith.constant 0 : index
    %c183 = arith.constant 183 : index
    %129 = vector.load %arg8[%c0_87, %c0_88, %c183] : memref<1x16x768xf32, #tpu.memory_space<vmem>>, vector<1x16x512xf32>
    %130 = vector.shape_cast %129 : vector<1x16x512xf32> to vector<16x512xf32>
    %131 = vector.broadcast %128 : vector<1x512xf32> to vector<16x512xf32>
    %132 = arith.mulf %130, %131 : vector<16x512xf32>
    %133 = arith.truncf %132 : vector<16x512xf32> to vector<16x512xbf16>
    %c288 = arith.constant 288 : index
    %c0_89 = arith.constant 0 : index
    %134 = vector.load %arg9[%c288, %c0_89] : memref<432x512xbf16, #tpu.memory_space<vmem>>, vector<16x512xbf16>
    tpu.vector_store %arg9[%c288, %c0_89], %133 {strides = array<i32>} : memref<432x512xbf16, #tpu.memory_space<vmem>>, vector<16x512xbf16>,
    %c19 = arith.constant 19 : index
    %c0_90 = arith.constant 0 : index
    %135 = vector.load %arg5[%c19, %c0_90] : memref<27x512xf32, #tpu.memory_space<vmem>>, vector<1x512xf32>
    %c0_91 = arith.constant 0 : index
    %c0_92 = arith.constant 0 : index
    %c184 = arith.constant 184 : index
    %136 = vector.load %arg8[%c0_91, %c0_92, %c184] : memref<1x16x768xf32, #tpu.memory_space<vmem>>, vector<1x16x512xf32>
    %137 = vector.shape_cast %136 : vector<1x16x512xf32> to vector<16x512xf32>
    %138 = vector.broadcast %135 : vector<1x512xf32> to vector<16x512xf32>
    %139 = arith.mulf %137, %138 : vector<16x512xf32>
    %140 = arith.truncf %139 : vector<16x512xf32> to vector<16x512xbf16>
    %c304 = arith.constant 304 : index
    %c0_93 = arith.constant 0 : index
    %141 = vector.load %arg9[%c304, %c0_93] : memref<432x512xbf16, #tpu.memory_space<vmem>>, vector<16x512xbf16>
    tpu.vector_store %arg9[%c304, %c0_93], %140 {strides = array<i32>} : memref<432x512xbf16, #tpu.memory_space<vmem>>, vector<16x512xbf16>,
    %c20 = arith.constant 20 : index
    %c0_94 = arith.constant 0 : index
    %142 = vector.load %arg5[%c20, %c0_94] : memref<27x512xf32, #tpu.memory_space<vmem>>, vector<1x512xf32>
    %c0_95 = arith.constant 0 : index
    %c0_96 = arith.constant 0 : index
    %c185 = arith.constant 185 : index
    %143 = vector.load %arg8[%c0_95, %c0_96, %c185] : memref<1x16x768xf32, #tpu.memory_space<vmem>>, vector<1x16x512xf32>
    %144 = vector.shape_cast %143 : vector<1x16x512xf32> to vector<16x512xf32>
    %145 = vector.broadcast %142 : vector<1x512xf32> to vector<16x512xf32>
    %146 = arith.mulf %144, %145 : vector<16x512xf32>
    %147 = arith.truncf %146 : vector<16x512xf32> to vector<16x512xbf16>
    %c320 = arith.constant 320 : index
    %c0_97 = arith.constant 0 : index
    %148 = vector.load %arg9[%c320, %c0_97] : memref<432x512xbf16, #tpu.memory_space<vmem>>, vector<16x512xbf16>
    tpu.vector_store %arg9[%c320, %c0_97], %147 {strides = array<i32>} : memref<432x512xbf16, #tpu.memory_space<vmem>>, vector<16x512xbf16>,
    %c21 = arith.constant 21 : index
    %c0_98 = arith.constant 0 : index
    %149 = vector.load %arg5[%c21, %c0_98] : memref<27x512xf32, #tpu.memory_space<vmem>>, vector<1x512xf32>
    %c0_99 = arith.constant 0 : index
    %c0_100 = arith.constant 0 : index
    %c191 = arith.constant 191 : index
    %150 = vector.load %arg8[%c0_99, %c0_100, %c191] : memref<1x16x768xf32, #tpu.memory_space<vmem>>, vector<1x16x512xf32>
    %151 = vector.shape_cast %150 : vector<1x16x512xf32> to vector<16x512xf32>
    %152 = vector.broadcast %149 : vector<1x512xf32> to vector<16x512xf32>
    %153 = arith.mulf %151, %152 : vector<16x512xf32>
    %154 = arith.truncf %153 : vector<16x512xf32> to vector<16x512xbf16>
    %c336 = arith.constant 336 : index
    %c0_101 = arith.constant 0 : index
    %155 = vector.load %arg9[%c336, %c0_101] : memref<432x512xbf16, #tpu.memory_space<vmem>>, vector<16x512xbf16>
    tpu.vector_store %arg9[%c336, %c0_101], %154 {strides = array<i32>} : memref<432x512xbf16, #tpu.memory_space<vmem>>, vector<16x512xbf16>,
    %c22 = arith.constant 22 : index
    %c0_102 = arith.constant 0 : index
    %156 = vector.load %arg5[%c22, %c0_102] : memref<27x512xf32, #tpu.memory_space<vmem>>, vector<1x512xf32>
    %c0_103 = arith.constant 0 : index
    %c0_104 = arith.constant 0 : index
    %c192_105 = arith.constant 192 : index
    %157 = vector.load %arg8[%c0_103, %c0_104, %c192_105] : memref<1x16x768xf32, #tpu.memory_space<vmem>>, vector<1x16x512xf32>
    %158 = vector.shape_cast %157 : vector<1x16x512xf32> to vector<16x512xf32>
    %159 = vector.broadcast %156 : vector<1x512xf32> to vector<16x512xf32>
    %160 = arith.mulf %158, %159 : vector<16x512xf32>
    %161 = arith.truncf %160 : vector<16x512xf32> to vector<16x512xbf16>
    %c352 = arith.constant 352 : index
    %c0_106 = arith.constant 0 : index
    %162 = vector.load %arg9[%c352, %c0_106] : memref<432x512xbf16, #tpu.memory_space<vmem>>, vector<16x512xbf16>
    tpu.vector_store %arg9[%c352, %c0_106], %161 {strides = array<i32>} : memref<432x512xbf16, #tpu.memory_space<vmem>>, vector<16x512xbf16>,
    %c23 = arith.constant 23 : index
    %c0_107 = arith.constant 0 : index
    %163 = vector.load %arg5[%c23, %c0_107] : memref<27x512xf32, #tpu.memory_space<vmem>>, vector<1x512xf32>
    %c0_108 = arith.constant 0 : index
    %c0_109 = arith.constant 0 : index
    %c193 = arith.constant 193 : index
    %164 = vector.load %arg8[%c0_108, %c0_109, %c193] : memref<1x16x768xf32, #tpu.memory_space<vmem>>, vector<1x16x512xf32>
    %165 = vector.shape_cast %164 : vector<1x16x512xf32> to vector<16x512xf32>
    %166 = vector.broadcast %163 : vector<1x512xf32> to vector<16x512xf32>
    %167 = arith.mulf %165, %166 : vector<16x512xf32>
    %168 = arith.truncf %167 : vector<16x512xf32> to vector<16x512xbf16>
    %c368 = arith.constant 368 : index
    %c0_110 = arith.constant 0 : index
    %169 = vector.load %arg9[%c368, %c0_110] : memref<432x512xbf16, #tpu.memory_space<vmem>>, vector<16x512xbf16>
    tpu.vector_store %arg9[%c368, %c0_110], %168 {strides = array<i32>} : memref<432x512xbf16, #tpu.memory_space<vmem>>, vector<16x512xbf16>,
    %c24 = arith.constant 24 : index
    %c0_111 = arith.constant 0 : index
    %170 = vector.load %arg5[%c24, %c0_111] : memref<27x512xf32, #tpu.memory_space<vmem>>, vector<1x512xf32>
    %c0_112 = arith.constant 0 : index
    %c0_113 = arith.constant 0 : index
    %c199 = arith.constant 199 : index
    %171 = vector.load %arg8[%c0_112, %c0_113, %c199] : memref<1x16x768xf32, #tpu.memory_space<vmem>>, vector<1x16x512xf32>
    %172 = vector.shape_cast %171 : vector<1x16x512xf32> to vector<16x512xf32>
    %173 = vector.broadcast %170 : vector<1x512xf32> to vector<16x512xf32>
    %174 = arith.mulf %172, %173 : vector<16x512xf32>
    %175 = arith.truncf %174 : vector<16x512xf32> to vector<16x512xbf16>
    %c384 = arith.constant 384 : index
    %c0_114 = arith.constant 0 : index
    %176 = vector.load %arg9[%c384, %c0_114] : memref<432x512xbf16, #tpu.memory_space<vmem>>, vector<16x512xbf16>
    tpu.vector_store %arg9[%c384, %c0_114], %175 {strides = array<i32>} : memref<432x512xbf16, #tpu.memory_space<vmem>>, vector<16x512xbf16>,
    %c25 = arith.constant 25 : index
    %c0_115 = arith.constant 0 : index
    %177 = vector.load %arg5[%c25, %c0_115] : memref<27x512xf32, #tpu.memory_space<vmem>>, vector<1x512xf32>
    %c0_116 = arith.constant 0 : index
    %c0_117 = arith.constant 0 : index
    %c200 = arith.constant 200 : index
    %178 = vector.load %arg8[%c0_116, %c0_117, %c200] : memref<1x16x768xf32, #tpu.memory_space<vmem>>, vector<1x16x512xf32>
    %179 = vector.shape_cast %178 : vector<1x16x512xf32> to vector<16x512xf32>
    %180 = vector.broadcast %177 : vector<1x512xf32> to vector<16x512xf32>
    %181 = arith.mulf %179, %180 : vector<16x512xf32>
    %182 = arith.truncf %181 : vector<16x512xf32> to vector<16x512xbf16>
    %c400 = arith.constant 400 : index
    %c0_118 = arith.constant 0 : index
    %183 = vector.load %arg9[%c400, %c0_118] : memref<432x512xbf16, #tpu.memory_space<vmem>>, vector<16x512xbf16>
    tpu.vector_store %arg9[%c400, %c0_118], %182 {strides = array<i32>} : memref<432x512xbf16, #tpu.memory_space<vmem>>, vector<16x512xbf16>,
    %c26 = arith.constant 26 : index
    %c0_119 = arith.constant 0 : index
    %184 = vector.load %arg5[%c26, %c0_119] : memref<27x512xf32, #tpu.memory_space<vmem>>, vector<1x512xf32>
    %c0_120 = arith.constant 0 : index
    %c0_121 = arith.constant 0 : index
    %c201 = arith.constant 201 : index
    %185 = vector.load %arg8[%c0_120, %c0_121, %c201] : memref<1x16x768xf32, #tpu.memory_space<vmem>>, vector<1x16x512xf32>
    %186 = vector.shape_cast %185 : vector<1x16x512xf32> to vector<16x512xf32>
    %187 = vector.broadcast %184 : vector<1x512xf32> to vector<16x512xf32>
    %188 = arith.mulf %186, %187 : vector<16x512xf32>
    %189 = arith.truncf %188 : vector<16x512xf32> to vector<16x512xbf16>
    %c416 = arith.constant 416 : index
    %c0_122 = arith.constant 0 : index
    %190 = vector.load %arg9[%c416, %c0_122] : memref<432x512xbf16, #tpu.memory_space<vmem>>, vector<16x512xbf16>
    tpu.vector_store %arg9[%c416, %c0_122], %189 {strides = array<i32>} : memref<432x512xbf16, #tpu.memory_space<vmem>>, vector<16x512xbf16>,
    %c0_123 = arith.constant 0 : index
    %c0_124 = arith.constant 0 : index
    %191 = vector.load %arg3[%c0_123, %c0_124] : memref<32x432xbf16, #tpu.memory_space<vmem>>, vector<32x432xbf16>
    %c0_125 = arith.constant 0 : index
    %c0_126 = arith.constant 0 : index
    %192 = vector.load %arg9[%c0_125, %c0_126] : memref<432x512xbf16, #tpu.memory_space<vmem>>, vector<432x512xbf16>
    %cst_127 = arith.constant dense<0.000000e+00> : vector<32x512xf32>
    %193 = tpu.matmul %191, %192, %cst_127 {dimension_numbers = #tpu.dot_dimension_numbers<[1], [0], [0], [1], [0, 0, 1, 1], [], []>} : vector<32x432xbf16>, vector<432x512xbf16>, vector<32x512xf32> -> vector<32x512xf32>
    %c0_128 = arith.constant 0 : index
    %c0_129 = arith.constant 0 : index
    %194 = vector.load %arg4[%c0_128, %c0_129] : memref<32x1xf32, #tpu.memory_space<vmem>>, vector<32x1xf32>
    %195 = vector.broadcast %194 : vector<32x1xf32> to vector<32x512xf32>
    %196 = arith.addf %193, %195 : vector<32x512xf32>
    %c0_130 = arith.constant 0 : index
    %197 = memref.load %arg6[%c0_130] : memref<1xf32, #tpu.memory_space<smem>>
    %cst_131 = arith.constant 0.000000e+00 : f32
    %198 = vector.broadcast %cst_131 : f32 to vector<32x512xf32>
    %199 = arith.cmpf oge, %196, %198 : vector<32x512xf32>
    %200 = vector.broadcast %197 : f32 to vector<32x512xf32>
    %201 = arith.mulf %200, %196 : vector<32x512xf32>
    %202 = arith.select %199, %196, %201 : vector<32x512xi1>, vector<32x512xf32>
    %c0_132 = arith.constant 0 : index
    %c0_133 = arith.constant 0 : index
    %c0_134 = arith.constant 0 : index
    %203 = vector.load %arg7[%c0_132, %c0_133, %c0_134] : memref<1x32x512xf32, #tpu.memory_space<vmem>>, vector<1x32x512xf32>
    %204 = vector.shape_cast %203 : vector<1x32x512xf32> to vector<32x512xf32>
    %205 = vector.shape_cast %202 : vector<32x512xf32> to vector<1x32x512xf32>
    tpu.vector_store %arg7[%c0_132, %c0_133, %c0_134], %205 {strides = array<i32>} : memref<1x32x512xf32, #tpu.memory_space<vmem>>, vector<1x32x512xf32>,
    return
  }
  func.func @transform_0(%arg0: i32, %arg1: i32) -> (i32, i32, i32) {
    %c0_i32 = arith.constant 0 : i32
    %c0_i32_0 = arith.constant 0 : i32
    %c0_i32_1 = arith.constant 0 : i32
    return %arg0, %c0_i32, %c0_i32_0 : i32, i32, i32
  }
  func.func @transform_1(%arg0: i32, %arg1: i32) -> (i32, i32) {
    %c0_i32 = arith.constant 0 : i32
    %c0_i32_0 = arith.constant 0 : i32
    %c0_i32_1 = arith.constant 0 : i32
    return %c0_i32, %c0_i32_0 : i32, i32
  }
  func.func @transform_2(%arg0: i32, %arg1: i32) -> (i32, i32) {
    %c0_i32 = arith.constant 0 : i32
    %c0_i32_0 = arith.constant 0 : i32
    %c0_i32_1 = arith.constant 0 : i32
    return %c0_i32, %c0_i32_0 : i32, i32
  }
  func.func @transform_3(%arg0: i32, %arg1: i32) -> (i32, i32) {
    %c0_i32 = arith.constant 0 : i32
    %c0_i32_0 = arith.constant 0 : i32
    return %c0_i32, %arg1 : i32, i32
  }
  func.func @transform_4(%arg0: i32, %arg1: i32) -> i32 {
    %c0_i32 = arith.constant 0 : i32
    %c0_i32_0 = arith.constant 0 : i32
    return %c0_i32 : i32
  }
  func.func @transform_5(%arg0: i32, %arg1: i32) -> (i32, i32, i32) {
    %c0_i32 = arith.constant 0 : i32
    %c0_i32_0 = arith.constant 0 : i32
    return %arg0, %c0_i32, %arg1 : i32, i32, i32
  }
}

</mosaic_0001>

<bundles_post_ra>
// kernel: conv_block_forward.1
= control target key start
LH: loop header
LB: loop body
LE: loop exit
PB: predicated region body
PF: predicated region fallthrough
CT: control target
= control target key end

     0   :  { %s4622_s20 = smov 0   ;;  %s4624_s21 = smov 0   ;;  %s6167_s0 = inlined_call_operand.vmem [shape: f32[2,16,512], index: 0, kind: input, shape index: {}]   ;;  %s6168_s1 = inlined_call_operand.vmem [shape: bf16[32,432], index: 1, kind: input, shape index: {}]   ;;  %s6169_s2 = inlined_call_operand.vmem [shape: f32[32,1], index: 2, kind: input, shape index: {}]   ;;  %s6170_s3 = inlined_call_operand.vmem [shape: f32[27,512], index: 3, kind: input, shape index: {}]   ;;  %s6171_s4 = inlined_call_operand.<no memory space> [shape: f32[1], index: 4, kind: input, shape index: {}]   ;;  %s6172_s5 = inlined_call_operand.vmem [shape: f32[2,32,512], index: 5, kind: output, shape index: {}]  }
   0x1   :  { %10 = sst [smem:[#allocation4]] %s6171_s4  ;;  %s4626_s22 = smov 0  }
   0x2 LB: > { %s28_s4 = sadd.s32 1, %s4565_s21  ;;  %p3852_p0 = scmp.ge.s32.totalorder %s4569_s22, 1  ;;  %s4569_s22 = sphi %s4626_s22, %s16_s22   ;;  %s4565_s21 = sphi %s4624_s21, %s6192_s21   ;;  %s4561_s20 = sphi %s4622_s20, %s6191_s20  }
   0x3   : > { %p30_p1 = scmp.ge.s32.totalorder %s28_s4, 2  ;;  %p213_p2 = scmp.lt.s32.totalorder %s4569_s22, 3 }
   0x5   : > { %s6194_s4 = smov (%p30_p1, %s28_s4), 0  ;;  %p214_p3 = pnand %p3852_p0, %p213_p2 }
   0x6   : > { %s4571_s27 = smov (!%p214_p3), 55   ;;  %s4572_s28 = smov (!%p214_p3), 56  }
   0x7   : > { %217 = sbr.rel (%p214_p3) target bundleno = 2132 (0x854), region = 40  ;;  %s4573_s6 = smov (!%p214_p3), 57  }
   0x8   : > { %s4574_s9 = smov (!%p214_p3), 63   ;;  %s4575_s12 = smov (!%p214_p3), 64  }
   0x9   : > { %p250_p4 = scmp.lt.s32.totalorder (!%p214_p3), %s4561_s20, 1  ;;  %s4576_s17 = smov (!%p214_p3), 71  }
   0xa   : > { %s4577_s18 = smov (!%p214_p3), 73   ;;  %s4578_s19 = smov (!%p214_p3), 72  }
   0xb   : > { %s4579_s23 = smov (!%p214_p3), 65   ;;  %s4580_s14 = smov (!%p214_p3), 119  }
   0xc   : > { %v292_v0 = vld [vmem:[%s6170_s3] ss:$8 sm:$0xf]  ;;  %v3857_v3 = vld [vmem:[%s6170_s3 + $0x1] ss:$8 sm:$0xf] }
   0xd   : > { %v306_v1 = vperm.slane %v292_v0, 2  ;;  %v304_v2 = vperm.slane %v292_v0, 0  ;;  %v397_v4 = vperm.slane %v3857_v3, 1  ;;  %v3858_v5 = vld [vmem:[%s6170_s3 + $0x2] ss:$8 sm:$0xf] }
   0xe   : > { %v307_v6 = vperm.slane %v292_v0, 3  ;;  %v305_v7 = vperm.slane %v292_v0, 1  ;;  %v487_v8 = vperm.slane %v3858_v5, 0  ;;  %v396_v9 = vperm.slane %v3857_v3, 0  ;;  %s6196_s20 = smov (!%p250_p4, %s4561_s20), 1  ;;  %s4581_s15 = smov 9  }
   0xf   : > { %312 = vrot.lane.b32.xlu1 %v306_v1, %s4571_s27  ;;  %308 = vrot.lane.b32.xlu0 %v304_v2, %s4571_s27  ;;  %v398_v10 = vperm.slane %v3857_v3, 2  ;;  %v490_v11 = vperm.slane %v3858_v5, 3  ;;  %v399_v12 = vperm.slane %v3857_v3, 3  ;;  %v488_v13 = vperm.slane %v3858_v5, 1  ;;  %s4356_s13 = sshll.u32 %s6196_s20, 6  ;;  %s4582_s26 = smov 120  }
  0x10   : > { %402 = vrot.lane.b32.xlu2 %v397_v4, %s4572_s28  ;;  %v3859_v14 = vld [vmem:[%s6170_s3 + $0x3] ss:$8 sm:$0xf]  ;;  %v489_v16 = vperm.slane %v3858_v5, 2  ;;  %s4689_s16 = scalar_lea.vmem %s6167_s0, %s4356_s13  ;;  %vm316_vm0 = vcmask 449536   ;;  %vm408_vm1 = vcmask 457728  }
  0x11   : > { %v580_v15 = vperm.slane %v3859_v14, 2  ;;  %v578_v17 = vperm.slane %v3859_v14, 0  ;;  %v3860_v18 = vld [vmem:[%s6170_s3 + $0x4] ss:$8 sm:$0xf]  ;;  %v579_v20 = vperm.slane %v3859_v14, 1 }
  0x12   : > { %v670_v19 = vperm.slane %v3860_v18, 1  ;;  %v581_v21 = vperm.slane %v3859_v14, 3  ;;  %v669_v22 = vperm.slane %v3860_v18, 0  ;;  %v671_v23 = vperm.slane %v3860_v18, 2  ;;  %v4692_v27 = vld [vmem:[%s4689_s16 + $0x18] sm:$0xff]  ;;  %v4706_v36 = vld [vmem:[%s4689_s16] sm:$0xff] }
  0x13   : > { %v672_v24 = vperm.slane %v3860_v18, 3  ;;  %v4699_v30 = vld [vmem:[%s4689_s16 + $0x38] sm:$0xff]  ;;  %v4719_v46 = vld [vmem:[%s4689_s16 + $0x8] sm:$0xff]  ;;  %v4724_v48 = vld [vmem:[%s4689_s16 + $0x10] sm:$0xff]  ;;  %vm590_vm2 = vcmask 515072   ;;  %vm681_vm3 = vcmask 523264  }
  0x14   : > { %v4731_v56 = vld [vmem:[%s4689_s16 + $0x28] sm:$0xff]  ;;  %v4735_v57 = vld [vmem:[%s4689_s16 + $0x30] sm:$0xff]  ;;  %vm499_vm4 = vcmask 465920   ;;  %vm365_vm5 = vcmask 1043456   ;;  %vm367_vm6 = vcmask 596992   ;;  %vm640_vm7 = vcmask 531456  }
  0x15   : > { %vm458_vm8 = vcmask 588800   ;;  %vm549_vm9 = vcmask 580608   ;;  %vm6174_vm10 = vcmask 973824   ;;  %vm1186_vm11 = vcmask 72704   ;;  %s4583_s29 = smov 8   ;;  %s4584_s8 = smov 121  }
  0x16   : > { %vm6173_vm12 = vcmask 982016   ;;  %s4585_s10 = smov 7   ;;  %vm1277_vm13 = vcmask 64512   ;;  %vm1318_vm14 = vcmask 990208   ;;  %s4586_s24 = smov 127   ;;  %vm1368_vm15 = vcmask 56320  }
  0x17   : > { %314 = vrot.lane.b32.xlu1 %v307_v6, %s4571_s27  ;;  %310 = vrot.lane.b32.xlu0 %v305_v7, %s4571_s27  ;;  %s4587_s25 = smov 1   ;;  %s3685_s13 = sld [smem:[#allocation4]] }
  0x18   : > { %491 = vrot.lane.b32.xlu2 %v487_v8, %s4573_s6 }
  0x1f   : > { %400 = vrot.lane.b32.xlu1 %v396_v9, %s4572_s28  ;;  %404 = vrot.lane.b32.xlu0 %v398_v10, %s4572_s28  ;;  %v4754_v9 = vld [vmem:[%s4689_s16 + $0x20] sm:$0xff] }
  0x20   : > { %497 = vrot.lane.b32.xlu2 %v490_v11, %s4573_s6 }
  0x27   : > { %406 = vrot.lane.b32.xlu1 %v399_v12, %s4572_s28  ;;  %493 = vrot.lane.b32.xlu0 %v488_v13, %s4573_s6 }
  0x28   : > { %586 = vrot.lane.b32.xlu2 %v580_v15, %s4574_s9 }
  0x2f   : > { %495 = vrot.lane.b32.xlu1 %v489_v16, %s4573_s6  ;;  %582 = vrot.lane.b32.xlu0 %v578_v17, %s4574_s9 }
  0x30   : > { %675 = vrot.lane.b32.xlu2 %v670_v19, %s4575_s12 }
  0x37   : > { %584 = vrot.lane.b32.xlu1 %v579_v20, %s4574_s9  ;;  %588 = vrot.lane.b32.xlu0 %v581_v21, %s4574_s9 }
  0x3f   : > { %673 = vrot.lane.b32.xlu1 %v669_v22, %s4575_s12  ;;  %677 = vrot.lane.b32.xlu0 %v671_v23, %s4575_s12 }
  0x47   : > { %679 = vrot.lane.b32.xlu1 %v672_v24, %s4575_s12 }
  0x6a   : > { %v4677_v25 = vpop.permute.xlu2 %402 }
  0x72   : > { %v4683_v26 = vpop.permute.xlu2 %491 }
  0x7a   : > { %v4694_v28 = vpop.permute.xlu2 %497 }
  0x7b   : > { %v512_v29 = vmul.f32 %v4694_v28, %v4692_v27  ;;  %v517_v32 = vmul.f32 %v4694_v28, %v4699_v30 }
  0x7d   : > { %v520_v31 = vpack.c.bf16 %v512_v29, %v512_v29  ;;  %v523_v35 = vpack.c.bf16 %v517_v32, %v517_v32 }
  0x7f   : > { %534 = vrot.lane.b32.xlu2 %v520_v31, %s4576_s17 }
  0x81   : > { %v313_v33 = vpop.permute.xlu1 %312  ;;  %v309_v34 = vpop.permute.xlu0 %308 }
  0x82   : > { %v4708_v37 = vmul.f32 0.0, %v309_v34  ;;  %v587_v14 = vpop.permute.xlu2 %586 }
  0x87   : > { %540 = vrot.lane.b32.xlu2 %v523_v35, %s4576_s17 }
  0x89   : > { %v315_v38 = vpop.permute.xlu1 %314  ;;  %v311_v39 = vpop.permute.xlu0 %310 }
  0x8a   : > { %v4711_v40 = vsel %vm316_vm0, %v309_v34, %v311_v39  ;;  %v329_v41 = vmul.f32 %v315_v38, %v4692_v27  ;;  %v319_v45 = vsel %vm316_vm0, %v313_v33, %v315_v38  ;;  %v318_v47 = vsel %vm316_vm0, %v311_v39, %v313_v33  ;;  %v676_v39 = vpop.permute.xlu2 %675 }
  0x8b   : > { %v326_v42 = vmul.f32 %v4711_v40, %v4706_v36  ;;  %v334_v49 = vmul.f32 %v315_v38, %v4699_v30  ;;  %v327_v50 = vmul.f32 %v318_v47, %v4719_v46  ;;  %v328_v53 = vmul.f32 %v319_v45, %v4724_v48 }
  0x8c   : > { %v337_v43 = vpack.c.bf16 %v329_v41, %v329_v41  ;;  %v332_v58 = vmul.f32 %v318_v47, %v4731_v56  ;;  %v333_v61 = vmul.f32 %v319_v45, %v4735_v57  ;;  %v331_v45 = vmul.f32 %v4711_v40, %v4754_v9 }
  0x8d   : > { %v335_v44 = vpack.c.bf16 %v326_v42, %v4708_v37  ;;  %v340_v54 = vpack.c.bf16 %v334_v49, %v334_v49  ;;  %v336_v55 = vpack.c.bf16 %v328_v53, %v327_v50 }
  0x8e   : > { %351 = vrot.lane.b32.xlu0 %v337_v43, %s4577_s18  ;;  %v339_v0 = vpack.c.bf16 %v333_v61, %v332_v58 }
  0x8f   : > { %347 = vrot.lane.b32.xlu2 %v335_v44, %s4577_s18 }
  0x91   : > { %v401_v51 = vpop.permute.xlu1 %400  ;;  %v405_v52 = vpop.permute.xlu0 %404 }
  0x92   : > { %v409_v1 = vsel %vm408_vm1, %v401_v51, %v4677_v25  ;;  %v417_v3 = vmul.f32 0.0, %v401_v51  ;;  %v410_v24 = vsel %vm408_vm1, %v4677_v25, %v405_v52 }
  0x93   : > { %v418_v4 = vmul.f32 %v409_v1, %v4706_v36  ;;  %v423_v10 = vmul.f32 %v409_v1, %v4754_v9  ;;  %v419_v32 = vmul.f32 %v410_v24, %v4719_v46  ;;  %v424_v47 = vmul.f32 %v410_v24, %v4731_v56 }
  0x95   : > { %v427_v8 = vpack.c.bf16 %v418_v4, %v417_v3  ;;  %v430_v16 = vpack.c.bf16 %v423_v10, %v417_v3 }
  0x96   : > { %357 = vrot.lane.b32.xlu0 %v340_v54, %s4577_s18 }
  0x97   : > { %349 = vrot.lane.b32.xlu2 %v336_v55, %s4577_s18 }
  0x99   : > { %v407_v59 = vpop.permute.xlu1 %406  ;;  %v4739_v60 = vpop.permute.xlu0 %493 }
  0x9a   : > { %v421_v62 = vmul.f32 %v407_v59, %v4692_v27  ;;  %v426_v2 = vmul.f32 %v407_v59, %v4699_v30  ;;  %v411_v29 = vsel %vm408_vm1, %v405_v52, %v407_v59  ;;  %v338_v52 = vpack.c.bf16 %v331_v45, %v4708_v37 }
  0x9b   : > { %v420_v33 = vmul.f32 %v411_v29, %v4724_v48  ;;  %v425_v49 = vmul.f32 %v411_v29, %v4735_v57  ;;  %v500_v54 = vsel %vm499_vm4, %v4683_v26, %v4739_v60  ;;  %v508_v37 = vmul.f32 0.0, %v4683_v26 }
  0x9c   : > { %v429_v63 = vpack.c.bf16 %v421_v62, %v421_v62  ;;  %v432_v7 = vpack.c.bf16 %v426_v2, %v426_v2  ;;  %v509_v59 = vmul.f32 %v500_v54, %v4706_v36  ;;  %v514_v1 = vmul.f32 %v500_v54, %v4754_v9 }
  0x9d   : > { %v428_v42 = vpack.c.bf16 %v420_v33, %v419_v32  ;;  %v431_v53 = vpack.c.bf16 %v425_v49, %v424_v47 }
  0x9e   : > { %443 = vrot.lane.b32.xlu1 %v429_v63, %s4578_s19 }
  0x9f   : > { %355 = vrot.lane.b32.xlu2 %v339_v0, %s4577_s18  ;;  %v518_v0 = vpack.c.bf16 %v509_v59, %v508_v37 }
  0xa1   : > { %v496_v5 = vpop.permute.xlu1 %495  ;;  %v4749_v6 = vpop.permute.xlu0 %582 }
  0xa2   : > { %v501_v55 = vsel %vm499_vm4, %v4739_v60, %v496_v5  ;;  %v502_v40 = vsel %vm499_vm4, %v496_v5, %v4694_v28  ;;  %v521_v5 = vpack.c.bf16 %v514_v1, %v508_v37 }
  0xa3   : > { %v510_v61 = vmul.f32 %v501_v55, %v4719_v46  ;;  %v511_v62 = vmul.f32 %v502_v40, %v4724_v48  ;;  %v515_v26 = vmul.f32 %v501_v55, %v4731_v56  ;;  %v516_v2 = vmul.f32 %v502_v40, %v4735_v57 }
  0xa5   : > { %v519_v63 = vpack.c.bf16 %v511_v62, %v510_v61  ;;  %v522_v4 = vpack.c.bf16 %v516_v2, %v515_v26 }
  0xa6   : > { %449 = vrot.lane.b32.xlu1 %v432_v7, %s4578_s19 }
  0xa7   : > { %439 = vrot.lane.b32.xlu2 %v427_v8, %s4578_s19 }
  0xa9   : > { %v4757_v11 = vpop.permute.xlu1 %584  ;;  %v589_v12 = vpop.permute.xlu0 %588 }
  0xaa   : > { %v603_v13 = vmul.f32 %v589_v12, %v4692_v27  ;;  %v592_v17 = vsel %vm590_vm2, %v4757_v11, %v587_v14  ;;  %v593_v18 = vsel %vm590_vm2, %v587_v14, %v589_v12  ;;  %v608_v19 = vmul.f32 %v589_v12, %v4699_v30 }
  0xab   : > { %v601_v20 = vmul.f32 %v592_v17, %v4719_v46  ;;  %v602_v22 = vmul.f32 %v593_v18, %v4724_v48  ;;  %v606_v34 = vmul.f32 %v592_v17, %v4731_v56  ;;  %v607_v38 = vmul.f32 %v593_v18, %v4735_v57 }
  0xac   : > { %v611_v15 = vpack.c.bf16 %v603_v13, %v603_v13  ;;  %v614_v23 = vpack.c.bf16 %v608_v19, %v608_v19  ;;  %v591_v7 = vsel %vm590_vm2, %v4749_v6, %v4757_v11  ;;  %v599_v12 = vmul.f32 0.0, %v4749_v6  ;;  %v3861_v11 = vld [vmem:[%s6170_s3 + $0x5] ss:$8 sm:$0xf] }
  0xad   : > { %v610_v31 = vpack.c.bf16 %v602_v22, %v601_v20  ;;  %v613_v43 = vpack.c.bf16 %v607_v38, %v606_v34  ;;  %v600_v13 = vmul.f32 %v591_v7, %v4706_v36  ;;  %v760_v17 = vperm.slane %v3861_v11, 0 }
  0xae   : > { %625 = vrot.lane.b32.xlu0 %v611_v15, %s4579_s23  ;;  %v605_v6 = vmul.f32 %v591_v7, %v4754_v9  ;;  %v763_v29 = vperm.slane %v3861_v11, 3  ;;  %v761_v33 = vperm.slane %v3861_v11, 1 }
  0xaf   : > { %445 = vrot.lane.b32.xlu2 %v430_v16, %s4578_s19  ;;  %v609_v18 = vpack.c.bf16 %v600_v13, %v599_v12 }
  0xb1   : > { %v674_v21 = vpop.permute.xlu1 %673  ;;  %v678_v3 = vpop.permute.xlu0 %677 }
  0xb2   : > { %v682_v44 = vsel %vm681_vm3, %v674_v21, %v676_v39  ;;  %v690_v50 = vmul.f32 0.0, %v674_v21  ;;  %v683_v8 = vsel %vm681_vm3, %v676_v39, %v678_v3 }
  0xb3   : > { %v691_v51 = vmul.f32 %v682_v44, %v4706_v36  ;;  %v696_v60 = vmul.f32 %v682_v44, %v4754_v9  ;;  %v692_v14 = vmul.f32 %v683_v8, %v4719_v46  ;;  %v697_v20 = vmul.f32 %v683_v8, %v4731_v56 }
  0xb5   : > { %v700_v58 = vpack.c.bf16 %v691_v51, %v690_v50  ;;  %v703_v28 = vpack.c.bf16 %v696_v60, %v690_v50 }
  0xb6   : > { %631 = vrot.lane.b32.xlu0 %v614_v23, %s4579_s23  ;;  %v612_v23 = vpack.c.bf16 %v605_v6, %v599_v12 }
  0xb7   : > { %623 = vrot.lane.b32.xlu2 %v610_v31, %s4579_s23 }
  0xb9   : > { %v4776_v35 = vpop.permute.xlu1 %679 }
  0xba   : > { %v694_v25 = vmul.f32 %v4776_v35, %v4692_v27  ;;  %v684_v10 = vsel %vm681_vm3, %v678_v3, %v4776_v35  ;;  %v699_v31 = vmul.f32 %v4776_v35, %v4699_v30 }
  0xbb   : > { %v693_v15 = vmul.f32 %v684_v10, %v4724_v48  ;;  %v698_v21 = vmul.f32 %v684_v10, %v4735_v57 }
  0xbc   : > { %v702_v41 = vpack.c.bf16 %v694_v25, %v694_v25  ;;  %v705_v34 = vpack.c.bf16 %v699_v31, %v699_v31 }
  0xbd   : > { %v701_v19 = vpack.c.bf16 %v693_v15, %v692_v14  ;;  %v704_v24 = vpack.c.bf16 %v698_v21, %v697_v20 }
  0xbe   : > { %716 = vrot.lane.b32.xlu1 %v702_v41, %s4575_s12  ;;  %441 = vrot.lane.b32.xlu0 %v428_v42, %s4578_s19  ;;  %v762_v41 = vperm.slane %v3861_v11, 2 }
  0xbf   : > { %629 = vrot.lane.b32.xlu2 %v613_v43, %s4579_s23 }
  0xc6   : > { %353 = vrot.lane.b32.xlu1 %v338_v52, %s4577_s18  ;;  %447 = vrot.lane.b32.xlu0 %v431_v53, %s4578_s19 }
  0xc7   : > { %712 = vrot.lane.b32.xlu2 %v700_v58, %s4575_s12 }
  0xce   : > { %532 = vrot.lane.b32.xlu1 %v519_v63, %s4576_s17  ;;  %530 = vrot.lane.b32.xlu0 %v518_v0, %s4576_s17 }
  0xcf   : > { %718 = vrot.lane.b32.xlu2 %v703_v28, %s4575_s12 }
  0xd6   : > { %538 = vrot.lane.b32.xlu1 %v522_v4, %s4576_s17  ;;  %536 = vrot.lane.b32.xlu0 %v521_v5, %s4576_s17 }
  0xd7   : > { %764 = vrot.lane.b32.xlu2 %v760_v17, %s4579_s23 }
  0xd9   : > { %v4824_v16 = vpop.permute.xlu2 %534 }
  0xde   : > { %621 = vrot.lane.b32.xlu1 %v609_v18, %s4579_s23  ;;  %714 = vrot.lane.b32.xlu0 %v701_v19, %s4575_s12 }
  0xdf   : > { %770 = vrot.lane.b32.xlu2 %v763_v29, %s4579_s23 }
  0xe1   : > { %v4835_v22 = vpop.permute.xlu2 %540 }
  0xe6   : > { %627 = vrot.lane.b32.xlu1 %v612_v23, %s4579_s23  ;;  %720 = vrot.lane.b32.xlu0 %v704_v24, %s4575_s12 }
  0xe9   : > { %v348_v32 = vpop.permute.xlu2 %347 }
  0xea   : > { %v359_v25 = vrot.slane %v348_v32, 4 }
  0xee   : > { %722 = vrot.lane.b32.xlu1 %v705_v34, %s4575_s12  ;;  %766 = vrot.lane.b32.xlu0 %v761_v33, %s4579_s23 }
  0xf1   : > { %v350_v38 = vpop.permute.xlu2 %349 }
  0xf2   : > { %v360_v39 = vrot.slane %v350_v38, 4 }
  0xf4   : > { %v366_v42 = vsel %vm365_vm5, %v359_v25, %v360_v39 }
  0xf5   : > { %v368_v43 = vsel %vm367_vm6, %v348_v32, %v366_v42  ;;  %v544_v42 = vrot.slane %v4824_v16, 4 }
  0xf6   : > { %379 = vst [vmem:[#allocation3] sm:$0xff] %v368_v43  ;;  %768 = vrot.lane.b32.xlu1 %v762_v41, %s4579_s23 }
  0xf9   : > { %v356_v35 = vpop.permute.xlu2 %355 }
  0xfa   : > { %v363_v52 = vrot.slane %v356_v35, 4 }
 0x100   : > { %v352_v44 = vpop.permute.xlu0 %351 }
 0x101   : > { %v361_v45 = vrot.slane %v352_v44, 4  ;;  %v440_v47 = vpop.permute.xlu2 %439 }
 0x102   : > { %v451_v10 = vrot.slane %v440_v47, 4 }
 0x103   : > { %v369_v49 = vsel %vm365_vm5, %v360_v39, %v361_v45 }
 0x104   : > { %v370_v50 = vsel %vm367_vm6, %v350_v38, %v369_v49 }
 0x105   : > { %380 = vst [vmem:[#allocation3 + $0x8] sm:$0xff] %v370_v50 }
 0x108   : > { %v358_v51 = vpop.permute.xlu0 %357 }
 0x109   : > { %v364_v53 = vrot.slane %v358_v51, 4  ;;  %v446_v54 = vpop.permute.xlu2 %445 }
 0x10a   : > { %v454_v20 = vrot.slane %v446_v54, 4 }
 0x10b   : > { %v373_v55 = vsel %vm365_vm5, %v363_v52, %v364_v53 }
 0x10c   : > { %v374_v40 = vsel %vm367_vm6, %v356_v35, %v373_v55 }
 0x10d   : > { %382 = vst [vmem:[#allocation3 + $0x18] sm:$0xff] %v374_v40 }
 0x110   : > { %v444_v37 = vpop.permute.xlu1 %443 }
 0x111   : > { %v4851_v58 = vpop.permute.xlu2 %623  ;;  %v453_v12 = vrot.slane %v444_v37, 4 }
 0x112   : > { %v634_v62 = vrot.slane %v4851_v58, 4 }
 0x118   : > { %v450_v28 = vpop.permute.xlu1 %449 }
 0x119   : > { %v4853_v59 = vpop.permute.xlu2 %629  ;;  %v456_v21 = vrot.slane %v450_v28, 4 }
 0x11a   : > { %v637_v2 = vrot.slane %v4853_v59, 4 }
 0x120   : > { %v626_v61 = vpop.permute.xlu0 %625 }
 0x121   : > { %v635_v60 = vrot.slane %v626_v61, 4  ;;  %v4861_v1 = vpop.permute.xlu2 %712 }
 0x123   : > { %v642_v63 = vsel %vm365_vm5, %v634_v62, %v635_v60 }
 0x124   : > { %v643_v0 = vsel %vm640_vm7, %v4851_v58, %v642_v63 }
 0x125   : > { %653 = vst [vmem:[#allocation3 + $0x68] sm:$0xff] %v643_v0 }
 0x128   : > { %v632_v26 = vpop.permute.xlu0 %631 }
 0x129   : > { %v638_v3 = vrot.slane %v632_v26, 4  ;;  %v4871_v14 = vpop.permute.xlu2 %718 }
 0x12a   : > { %v727_v58 = vrot.slane %v4871_v14, 4 }
 0x12b   : > { %v646_v4 = vsel %vm365_vm5, %v637_v2, %v638_v3  ;;  %v724_v3 = vrot.slane %v4861_v1, 4 }
 0x12c   : > { %v647_v5 = vsel %vm640_vm7, %v4853_v59, %v646_v4 }
 0x12d   : > { %655 = vst [vmem:[#allocation3 + $0x78] sm:$0xff] %v647_v5 }
 0x130   : > { %v4869_v7 = vpop.permute.xlu1 %716  ;;  %v442_v8 = vpop.permute.xlu0 %441 }
 0x131   : > { %v452_v13 = vrot.slane %v442_v8, 4  ;;  %v4877_v29 = vpop.permute.xlu2 %764  ;;  %v726_v4 = vrot.slane %v4869_v7, 4 }
 0x133   : > { %v457_v15 = vsel %vm365_vm5, %v451_v10, %v452_v13  ;;  %v460_v11 = vsel %vm365_vm5, %v452_v13, %v453_v12 }
 0x134   : > { %v459_v17 = vsel %vm458_vm8, %v440_v47, %v457_v15  ;;  %v461_v18 = vsel %vm458_vm8, %v442_v8, %v460_v11 }
 0x135   : > { %470 = vst [vmem:[#allocation3 + $0x20] sm:$0xff] %v459_v17 }
 0x136   : > { %471 = vst [vmem:[#allocation3 + $0x28] sm:$0xff] %v461_v18 }
 0x138   : > { %v354_v19 = vpop.permute.xlu1 %353  ;;  %v448_v6 = vpop.permute.xlu0 %447 }
 0x139   : > { %v362_v23 = vrot.slane %v354_v19, 4  ;;  %v455_v24 = vrot.slane %v448_v6, 4  ;;  %v4886_v44 = vpop.permute.xlu2 %770 }
 0x13a   : > { %v785_v49 = vmul.f32 %v4886_v44, %v4692_v27  ;;  %v790_v37 = vmul.f32 %v4886_v44, %v4699_v30 }
 0x13b   : > { %v371_v31 = vsel %vm365_vm5, %v362_v23, %v363_v52  ;;  %v462_v32 = vsel %vm365_vm5, %v454_v20, %v455_v24  ;;  %v464_v33 = vsel %vm365_vm5, %v455_v24, %v456_v21  ;;  %v3862_v23 = vld [vmem:[%s6170_s3 + $0x6] ss:$8 sm:$0xf] }
 0x13c   : > { %v372_v34 = vsel %vm367_vm6, %v354_v19, %v371_v31  ;;  %v463_v38 = vsel %vm458_vm8, %v446_v54, %v462_v32  ;;  %v465_v25 = vsel %vm458_vm8, %v448_v6, %v464_v33  ;;  %v793_v52 = vpack.c.bf16 %v785_v49, %v785_v49 }
 0x13d   : > { %381 = vst [vmem:[#allocation3 + $0x10] sm:$0xff] %v372_v34  ;;  %v547_v54 = vrot.slane %v4835_v22, 4  ;;  %v796_v28 = vpack.c.bf16 %v790_v37, %v790_v37  ;;  %v853_v24 = vperm.slane %v3862_v23, 2  ;;  %v781_v31 = vmul.f32 0.0, %v4877_v29 }
 0x13e   : > { %472 = vst [vmem:[#allocation3 + $0x30] sm:$0xff] %v463_v38  ;;  %807 = vrot.lane.b32.xlu2 %v793_v52, %s4574_s9 }
 0x13f   : > { %473 = vst [vmem:[#allocation3 + $0x38] sm:$0xff] %v465_v25 }
 0x140   : > { %v533_v39 = vpop.permute.xlu1 %532  ;;  %v531_v41 = vpop.permute.xlu0 %530 }
 0x141   : > { %v543_v43 = vrot.slane %v533_v39, 4  ;;  %v542_v35 = vrot.slane %v531_v41, 4 }
 0x143   : > { %v551_v45 = vsel %vm365_vm5, %v543_v43, %v544_v42  ;;  %v548_v47 = vsel %vm365_vm5, %v542_v35, %v543_v43 }
 0x144   : > { %v552_v50 = vsel %vm549_vm9, %v533_v39, %v551_v45  ;;  %v550_v51 = vsel %vm549_vm9, %v531_v41, %v548_v47 }
 0x145   : > { %562 = vst [vmem:[#allocation3 + $0x48] sm:$0xff] %v552_v50 }
 0x146   : > { %561 = vst [vmem:[#allocation3 + $0x40] sm:$0xff] %v550_v51  ;;  %813 = vrot.lane.b32.xlu2 %v796_v28, %s4574_s9  ;;  %v851_v51 = vperm.slane %v3862_v23, 0 }
 0x148   : > { %v539_v16 = vpop.permute.xlu1 %538  ;;  %v537_v53 = vpop.permute.xlu0 %536 }
 0x149   : > { %v546_v55 = vrot.slane %v539_v16, 4  ;;  %v545_v40 = vrot.slane %v537_v53, 4 }
 0x14b   : > { %v555_v61 = vsel %vm365_vm5, %v546_v55, %v547_v54  ;;  %v553_v60 = vsel %vm365_vm5, %v545_v40, %v546_v55 }
 0x14c   : > { %v556_v63 = vsel %vm549_vm9, %v539_v16, %v555_v61  ;;  %v554_v0 = vsel %vm549_vm9, %v537_v53, %v553_v60  ;;  %v852_v16 = vperm.slane %v3862_v23, 1 }
 0x14d   : > { %564 = vst [vmem:[#allocation3 + $0x58] sm:$0xff] %v556_v63 }
 0x14e   : > { %563 = vst [vmem:[#allocation3 + $0x50] sm:$0xff] %v554_v0  ;;  %859 = vrot.lane.b32.xlu2 %v853_v24, %s4576_s17 }
 0x150   : > { %v622_v26 = vpop.permute.xlu1 %621  ;;  %v715_v22 = vpop.permute.xlu0 %714 }
 0x151   : > { %v633_v5 = vrot.slane %v622_v26, 4  ;;  %v725_v8 = vrot.slane %v715_v22, 4 }
 0x153   : > { %v639_v10 = vsel %vm365_vm5, %v633_v5, %v634_v62  ;;  %v730_v12 = vsel %vm365_vm5, %v724_v3, %v725_v8  ;;  %v733_v13 = vsel %vm365_vm5, %v725_v8, %v726_v4 }
 0x154   : > { %v641_v15 = vsel %vm640_vm7, %v622_v26, %v639_v10  ;;  %v732_v11 = vsel %vm681_vm3, %v4861_v1, %v730_v12  ;;  %v734_v17 = vsel %vm681_vm3, %v715_v22, %v733_v13 }
 0x155   : > { %652 = vst [vmem:[#allocation3 + $0x60] sm:$0xff] %v641_v15 }
 0x156   : > { %743 = vst [vmem:[#allocation3 + $0x80] sm:$0xff] %v732_v11 }
 0x157   : > { %744 = vst [vmem:[#allocation3 + $0x88] sm:$0xff] %v734_v17 }
 0x158   : > { %v628_v7 = vpop.permute.xlu1 %627  ;;  %v721_v18 = vpop.permute.xlu0 %720 }
 0x159   : > { %v636_v19 = vrot.slane %v628_v7, 4  ;;  %v728_v62 = vrot.slane %v721_v18, 4 }
 0x15b   : > { %v644_v6 = vsel %vm365_vm5, %v636_v19, %v637_v2  ;;  %v735_v20 = vsel %vm365_vm5, %v727_v58, %v728_v62 }
 0x15c   : > { %v645_v21 = vsel %vm640_vm7, %v628_v7, %v644_v6  ;;  %v736_v1 = vsel %vm681_vm3, %v4871_v14, %v735_v20 }
 0x15d   : > { %654 = vst [vmem:[#allocation3 + $0x70] sm:$0xff] %v645_v21 }
 0x15e   : > { %745 = vst [vmem:[#allocation3 + $0x90] sm:$0xff] %v736_v1 }
 0x160   : > { %v723_v32 = vpop.permute.xlu1 %722  ;;  %v767_v59 = vpop.permute.xlu0 %766 }
 0x161   : > { %v729_v2 = vrot.slane %v723_v32, 4  ;;  %v773_v33 = vsel %vm640_vm7, %v4877_v29, %v767_v59 }
 0x162   : > { %v782_v34 = vmul.f32 %v773_v33, %v4706_v36  ;;  %v787_v39 = vmul.f32 %v773_v33, %v4754_v9 }
 0x163   : > { %v737_v14 = vsel %vm365_vm5, %v728_v62, %v729_v2 }
 0x164   : > { %v738_v38 = vsel %vm681_vm3, %v721_v18, %v737_v14  ;;  %v791_v25 = vpack.c.bf16 %v782_v34, %v781_v31  ;;  %v794_v45 = vpack.c.bf16 %v787_v39, %v781_v31  ;;  %v3863_v39 = vld [vmem:[%s6170_s3 + $0x7] ss:$8 sm:$0xf] }
 0x165   : > { %746 = vst [vmem:[#allocation3 + $0x98] sm:$0xff] %v738_v38 }
 0x166   : > { %803 = vrot.lane.b32.xlu0 %v791_v25, %s4574_s9 }
 0x168   : > { %v769_v41 = vpop.permute.xlu1 %768 }
 0x169   : > { %v774_v42 = vsel %vm640_vm7, %v767_v59, %v769_v41  ;;  %v775_v43 = vsel %vm640_vm7, %v769_v41, %v4886_v44  ;;  %v854_v44 = vperm.slane %v3862_v23, 3  ;;  %v944_v41 = vperm.slane %v3863_v39, 2 }
 0x16a   : > { %v783_v29 = vmul.f32 %v774_v42, %v4719_v46  ;;  %v784_v35 = vmul.f32 %v775_v43, %v4724_v48  ;;  %v788_v49 = vmul.f32 %v774_v42, %v4731_v56  ;;  %v789_v50 = vmul.f32 %v775_v43, %v4735_v57 }
 0x16b   : > { %v942_v42 = vperm.slane %v3863_v39, 0  ;;  %v943_v43 = vperm.slane %v3863_v39, 1 }
 0x16c   : > { %v792_v47 = vpack.c.bf16 %v784_v35, %v783_v29  ;;  %v795_v52 = vpack.c.bf16 %v789_v50, %v788_v49  ;;  %v945_v29 = vperm.slane %v3863_v39, 3 }
 0x16e   : > { %809 = vrot.lane.b32.xlu0 %v794_v45, %s4574_s9  ;;  %805 = vrot.lane.b32.xlu1 %v792_v47, %s4574_s9 }
 0x176   : > { %855 = vrot.lane.b32.xlu0 %v851_v51, %s4576_s17  ;;  %811 = vrot.lane.b32.xlu1 %v795_v52, %s4574_s9 }
 0x17e   : > { %861 = vrot.lane.b32.xlu0 %v854_v44, %s4576_s17  ;;  %857 = vrot.lane.b32.xlu1 %v852_v16, %s4576_s17 }
 0x198   : > { %v808_v54 = vpop.permute.xlu2 %807 }
 0x199   : > { %v817_v37 = vrot.slane %v808_v54, 4 }
 0x1a0   : > { %v814_v22 = vpop.permute.xlu2 %813 }
 0x1a1   : > { %v820_v5 = vrot.slane %v814_v22, 4 }
 0x1a8   : > { %v860_v17 = vpop.permute.xlu2 %859 }
 0x1d8   : > { %v804_v53 = vpop.permute.xlu0 %803 }
 0x1d9   : > { %v815_v61 = vrot.slane %v804_v53, 4 }
 0x1e0   : > { %v810_v55 = vpop.permute.xlu0 %809  ;;  %v806_v40 = vpop.permute.xlu1 %805 }
 0x1e1   : > { %v816_v60 = vrot.slane %v806_v40, 4  ;;  %v818_v8 = vrot.slane %v810_v55, 4 }
 0x1e3   : > { %v821_v63 = vsel %vm365_vm5, %v815_v61, %v816_v60  ;;  %v824_v0 = vsel %vm365_vm5, %v816_v60, %v817_v37 }
 0x1e4   : > { %v823_v28 = vsel %vm590_vm2, %v804_v53, %v821_v63  ;;  %v825_v26 = vsel %vm590_vm2, %v806_v40, %v824_v0 }
 0x1e5   : > { %834 = vst [vmem:[#allocation3 + $0xa0] sm:$0xff] %v823_v28 }
 0x1e6   : > { %835 = vst [vmem:[#allocation3 + $0xa8] sm:$0xff] %v825_v26 }
 0x1e8   : > { %v856_v3 = vpop.permute.xlu0 %855  ;;  %v812_v4 = vpop.permute.xlu1 %811 }
 0x1e9   : > { %v819_v10 = vrot.slane %v812_v4, 4  ;;  %v872_v7 = vmul.f32 0.0, %v856_v3 }
 0x1eb   : > { %v826_v12 = vsel %vm365_vm5, %v818_v8, %v819_v10  ;;  %v828_v13 = vsel %vm365_vm5, %v819_v10, %v820_v5 }
 0x1ec   : > { %v827_v15 = vsel %vm590_vm2, %v810_v55, %v826_v12  ;;  %v829_v11 = vsel %vm590_vm2, %v812_v4, %v828_v13 }
 0x1ed   : > { %836 = vst [vmem:[#allocation3 + $0xb0] sm:$0xff] %v827_v15 }
 0x1ee   : > { %837 = vst [vmem:[#allocation3 + $0xb8] sm:$0xff] %v829_v11 }
 0x1f0   : > { %v862_v18 = vpop.permute.xlu0 %861  ;;  %v858_v58 = vpop.permute.xlu1 %857 }
 0x1f1   : > { %v866_v19 = vsel %vm549_vm9, %v860_v17, %v862_v18  ;;  %v864_v62 = vsel %vm549_vm9, %v856_v3, %v858_v58  ;;  %v865_v6 = vsel %vm549_vm9, %v858_v58, %v860_v17  ;;  %v876_v20 = vmul.f32 %v862_v18, %v4692_v27 }
 0x1f2   : > { %v875_v21 = vmul.f32 %v866_v19, %v4724_v48  ;;  %v873_v1 = vmul.f32 %v864_v62, %v4706_v36  ;;  %v874_v23 = vmul.f32 %v865_v6, %v4719_v46  ;;  %v881_v59 = vmul.f32 %v862_v18, %v4699_v30 }
 0x1f3   : > { %v884_v24 = vpack.c.bf16 %v876_v20, %v876_v20  ;;  %v880_v2 = vmul.f32 %v866_v19, %v4735_v57  ;;  %v878_v33 = vmul.f32 %v864_v62, %v4754_v9  ;;  %v879_v34 = vmul.f32 %v865_v6, %v4731_v56 }
 0x1f4   : > { %v883_v31 = vpack.c.bf16 %v875_v21, %v874_v23  ;;  %v882_v32 = vpack.c.bf16 %v873_v1, %v872_v7  ;;  %v887_v14 = vpack.c.bf16 %v881_v59, %v881_v59  ;;  %v3864_v23 = vld [vmem:[%s6170_s3 + $0x20] ss:$8 sm:$0xf] }
 0x1f5   : > { %898 = vrot.lane.b32.xlu0 %v884_v24, %s4573_s6  ;;  %v886_v38 = vpack.c.bf16 %v880_v2, %v879_v34  ;;  %v885_v25 = vpack.c.bf16 %v878_v33, %v872_v7  ;;  %v1033_v24 = vperm.slane %v3864_v23, 0  ;;  %v1035_v59 = vperm.slane %v3864_v23, 2 }
 0x1f6   : > { %896 = vrot.lane.b32.xlu2 %v883_v31, %s4573_s6  ;;  %894 = vrot.lane.b32.xlu1 %v882_v32, %s4573_s6  ;;  %v1034_v2 = vperm.slane %v3864_v23, 1  ;;  %v1036_v33 = vperm.slane %v3864_v23, 3  ;;  %v3980_v23 = vld [vmem:[#allocation3 + $0x80] sm:$0xf] }
 0x1fd   : > { %904 = vrot.lane.b32.xlu0 %v887_v14, %s4573_s6 }
 0x1fe   : > { %902 = vrot.lane.b32.xlu2 %v886_v38, %s4573_s6  ;;  %900 = vrot.lane.b32.xlu1 %v885_v25, %s4573_s6 }
 0x205   : > { %950 = vrot.lane.b32.xlu0 %v944_v41, %s4578_s19 }
 0x206   : > { %946 = vrot.lane.b32.xlu1 %v942_v42, %s4578_s19  ;;  %948 = vrot.lane.b32.xlu2 %v943_v43, %s4578_s19 }
 0x20e   : > { %952 = vrot.lane.b32.xlu1 %v945_v29, %s4578_s19 }
 0x250   : > { %v897_v35 = vpop.permute.xlu2 %896 }
 0x251   : > { %v907_v47 = vrot.slane %v897_v35, 4 }
 0x258   : > { %v903_v54 = vpop.permute.xlu2 %902 }
 0x259   : > { %v910_v40 = vrot.slane %v903_v54, 4 }
 0x260   : > { %v949_v22 = vpop.permute.xlu2 %948 }
 0x267   : > { %v899_v45 = vpop.permute.xlu0 %898 }
 0x268   : > { %v908_v49 = vrot.slane %v899_v45, 4  ;;  %v895_v50 = vpop.permute.xlu1 %894 }
 0x269   : > { %v906_v51 = vrot.slane %v895_v50, 4 }
 0x26a   : > { %v915_v52 = vsel %vm365_vm5, %v907_v47, %v908_v49 }
 0x26b   : > { %v916_v44 = vsel %vm499_vm4, %v897_v35, %v915_v52  ;;  %v912_v16 = vsel %vm365_vm5, %v906_v51, %v907_v47 }
 0x26c   : > { %926 = vst [vmem:[#allocation3 + $0xc8] sm:$0xff] %v916_v44  ;;  %v914_v53 = vsel %vm499_vm4, %v895_v50, %v912_v16 }
 0x26d   : > { %925 = vst [vmem:[#allocation3 + $0xc0] sm:$0xff] %v914_v53 }
 0x26f   : > { %v905_v55 = vpop.permute.xlu0 %904 }
 0x270   : > { %v911_v37 = vrot.slane %v905_v55, 4  ;;  %v901_v61 = vpop.permute.xlu1 %900 }
 0x271   : > { %v909_v60 = vrot.slane %v901_v61, 4 }
 0x272   : > { %v919_v63 = vsel %vm365_vm5, %v910_v40, %v911_v37 }
 0x273   : > { %v920_v0 = vsel %vm499_vm4, %v903_v54, %v919_v63  ;;  %v917_v28 = vsel %vm365_vm5, %v909_v60, %v910_v40 }
 0x274   : > { %928 = vst [vmem:[#allocation3 + $0xd8] sm:$0xff] %v920_v0  ;;  %v918_v26 = vsel %vm499_vm4, %v901_v61, %v917_v28 }
 0x275   : > { %927 = vst [vmem:[#allocation3 + $0xd0] sm:$0xff] %v918_v26 }
 0x277   : > { %v951_v10 = vpop.permute.xlu0 %950 }
 0x278   : > { %v947_v3 = vpop.permute.xlu1 %946  ;;  %v956_v13 = vsel %vm458_vm8, %v949_v22, %v951_v10 }
 0x279   : > { %v955_v4 = vsel %vm458_vm8, %v947_v3, %v949_v22  ;;  %v963_v5 = vmul.f32 0.0, %v947_v3  ;;  %v965_v11 = vmul.f32 %v956_v13, %v4719_v46  ;;  %v970_v21 = vmul.f32 %v956_v13, %v4731_v56 }
 0x27a   : > { %v964_v8 = vmul.f32 %v955_v4, %v4706_v36  ;;  %v969_v15 = vmul.f32 %v955_v4, %v4754_v9 }
 0x27c   : > { %v973_v12 = vpack.c.bf16 %v964_v8, %v963_v5  ;;  %v976_v62 = vpack.c.bf16 %v969_v15, %v963_v5  ;;  %v3865_v8 = vld [vmem:[%s6170_s3 + $0x21] ss:$8 sm:$0xf] }
 0x27e   : > { %985 = vrot.lane.b32.xlu2 %v973_v12, %s4572_s28 }
 0x280   : > { %v953_v17 = vpop.permute.xlu1 %952 }
 0x281   : > { %v957_v7 = vsel %vm458_vm8, %v951_v10, %v953_v17  ;;  %v967_v18 = vmul.f32 %v953_v17, %v4692_v27  ;;  %v972_v20 = vmul.f32 %v953_v17, %v4699_v30  ;;  %v1126_v10 = vperm.slane %v3865_v8, 2 }
 0x282   : > { %v966_v58 = vmul.f32 %v957_v7, %v4724_v48  ;;  %v971_v1 = vmul.f32 %v957_v7, %v4735_v57 }
 0x283   : > { %v975_v19 = vpack.c.bf16 %v967_v18, %v967_v18  ;;  %v978_v31 = vpack.c.bf16 %v972_v20, %v972_v20  ;;  %v4012_v18 = vld [vmem:[#allocation3 + $0xc0] sm:$0xf] }
 0x284   : > { %v974_v6 = vpack.c.bf16 %v966_v58, %v965_v11  ;;  %v977_v32 = vpack.c.bf16 %v971_v1, %v970_v21  ;;  %v3996_v20 = vld [vmem:[#allocation3 + $0xa0] sm:$0xf]  ;;  %v4384_v1 = vld [vmem:[#allocation3 + $0x8c] sm:$0xf0] }
 0x285   : > { %989 = vrot.lane.b32.xlu1 %v975_v19, %s4572_s28  ;;  %v4388_v19 = vld [vmem:[#allocation3 + $0xac] sm:$0xf0] }
 0x286   : > { %991 = vrot.lane.b32.xlu2 %v976_v62, %s4572_s28  ;;  %987 = vrot.lane.b32.xlu0 %v974_v6, %s4572_s28  ;;  %v3997_v21 = vor.u32 %v4388_v19, %v3996_v20  ;;  %v3866_v20 = vld [vmem:[%s6170_s3 + $0x22] ss:$8 sm:$0xf] }
 0x28d   : > { %995 = vrot.lane.b32.xlu1 %v978_v31, %s4572_s28  ;;  %v4380_v31 = vld [vmem:[#allocation3 + $0x6c] sm:$0xf0] }
 0x28e   : > { %993 = vrot.lane.b32.xlu0 %v977_v32, %s4572_s28  ;;  %1037 = vrot.lane.b32.xlu2 %v1033_v24, %s4577_s18  ;;  %v1125_v24 = vperm.slane %v3865_v8, 1 }
 0x295   : > { %1041 = vrot.lane.b32.xlu1 %v1035_v59, %s4577_s18  ;;  %v4376_v59 = vld [vmem:[#allocation3 + $0x4c] sm:$0xf0] }
 0x296   : > { %1039 = vrot.lane.b32.xlu0 %v1034_v2, %s4577_s18  ;;  %1043 = vrot.lane.b32.xlu2 %v1036_v33, %s4577_s18  ;;  %v3948_v2 = vld [vmem:[#allocation3 + $0x40] sm:$0xf] }
 0x297   : > { %v3949_v33 = vor.u32 %v4376_v59, %v3948_v2  ;;  %v1216_v59 = vperm.slane %v3866_v20, 1 }
 0x2d8   : > { %v986_v34 = vpop.permute.xlu2 %985 }
 0x2d9   : > { %v997_v45 = vrot.slane %v986_v34, 4 }
 0x2e0   : > { %v992_v14 = vpop.permute.xlu2 %991 }
 0x2e1   : > { %v1000_v53 = vrot.slane %v992_v14, 4 }
 0x2e8   : > { %v1038_v38 = vpop.permute.xlu2 %1037 }
 0x2e9   : > { %v1054_v3 = vmul.f32 0.0, %v1038_v38 }
 0x2f0   : > { %v1044_v25 = vpop.permute.xlu2 %1043 }
 0x2f1   : > { %v1058_v39 = vmul.f32 %v1044_v25, %v4692_v27  ;;  %v1063_v42 = vmul.f32 %v1044_v25, %v4699_v30 }
 0x2f3   : > { %v1066_v41 = vpack.c.bf16 %v1058_v39, %v1058_v39  ;;  %v1069_v49 = vpack.c.bf16 %v1063_v42, %v1063_v42  ;;  %v4368_v39 = vld [vmem:[#allocation3 + $0xc] sm:$0xf0] }
 0x2f5   : > { %1080 = vrot.lane.b32.xlu2 %v1066_v41, %s4571_s27  ;;  %v3916_v41 = vld [vmem:[#allocation3] sm:$0xf] }
 0x2f6   : > { %v3917_v42 = vor.u32 %v4368_v39, %v3916_v41 }
 0x2f7   : > { %v990_v43 = vpop.permute.xlu1 %989 }
 0x2f8   : > { %v999_v29 = vrot.slane %v990_v43, 4  ;;  %v988_v35 = vpop.permute.xlu0 %987 }
 0x2f9   : > { %v998_v47 = vrot.slane %v988_v35, 4 }
 0x2fb   : > { %v1003_v50 = vsel %vm365_vm5, %v997_v45, %v998_v47  ;;  %v1006_v51 = vsel %vm365_vm5, %v998_v47, %v999_v29 }
 0x2fc   : > { %v1005_v52 = vsel %vm408_vm1, %v986_v34, %v1003_v50  ;;  %v1007_v44 = vsel %vm408_vm1, %v988_v35, %v1006_v51  ;;  %v1127_v34 = vperm.slane %v3865_v8, 3 }
 0x2fd   : > { %1016 = vst [vmem:[#allocation3 + $0xe0] sm:$0xff] %v1005_v52  ;;  %1086 = vrot.lane.b32.xlu2 %v1069_v49, %s4571_s27 }
 0x2fe   : > { %1017 = vst [vmem:[#allocation3 + $0xe8] sm:$0xff] %v1007_v44 }
 0x2ff   : > { %v996_v27 = vpop.permute.xlu1 %995 }
 0x300   : > { %v1002_v30 = vrot.slane %v996_v27, 4  ;;  %v994_v16 = vpop.permute.xlu0 %993 }
 0x301   : > { %v1001_v54 = vrot.slane %v994_v16, 4 }
 0x303   : > { %v1008_v55 = vsel %vm365_vm5, %v1000_v53, %v1001_v54  ;;  %v1010_v40 = vsel %vm365_vm5, %v1001_v54, %v1002_v30 }
 0x304   : > { %v1009_v37 = vsel %vm408_vm1, %v992_v14, %v1008_v55  ;;  %v1011_v61 = vsel %vm408_vm1, %v994_v16, %v1010_v40  ;;  %v4028_v15 = vld [vmem:[#allocation3 + $0xe0] sm:$0xf]  ;;  %v4372_v14 = vld [vmem:[#allocation3 + $0x2c] sm:$0xf0] }
 0x305   : > { %1018 = vst [vmem:[#allocation3 + $0xf0] sm:$0xff] %v1009_v37  ;;  %1132 = vrot.lane.b32.xlu2 %v1126_v10, %s4580_s14  ;;  %v5059_v10 = vld [vmem:[%s4689_s16 + $0x20] sm:$0xff] }
 0x306   : > { %1019 = vst [vmem:[#allocation3 + $0xf8] sm:$0xff] %v1011_v61 }
 0x307   : > { %v1042_v60 = vpop.permute.xlu1 %1041 }
 0x308   : > { %v1048_v63 = vsel %vm367_vm6, %v1042_v60, %v1044_v25  ;;  %v1040_v0 = vpop.permute.xlu0 %1039 }
 0x309   : > { %v1057_v28 = vmul.f32 %v1048_v63, %v4724_v48  ;;  %v1046_v26 = vsel %vm367_vm6, %v1038_v38, %v1040_v0  ;;  %v1047_v22 = vsel %vm367_vm6, %v1040_v0, %v1042_v60  ;;  %v3932_v38 = vld [vmem:[#allocation3 + $0x20] sm:$0xf] }
 0x30a   : > { %v1055_v4 = vmul.f32 %v1046_v26, %v4706_v36  ;;  %v1056_v5 = vmul.f32 %v1047_v22, %v4719_v46  ;;  %v4392_v36 = vld [vmem:[#allocation3 + $0xcc] sm:$0xf0]  ;;  %v1062_v46 = vmul.f32 %v1048_v63, %v4735_v57  ;;  %v1060_v48 = vmul.f32 %v1046_v26, %v4754_v9 }
 0x30b   : > { %v1061_v7 = vmul.f32 %v1047_v22, %v4731_v56  ;;  %v4013_v58 = vor.u32 %v4392_v36, %v4012_v18  ;;  %v3981_v57 = vor.u32 %v4384_v1, %v3980_v23  ;;  %v1124_v9 = vperm.slane %v3865_v8, 0  ;;  %v3964_v56 = vld [vmem:[#allocation3 + $0x60] sm:$0xf]  ;;  %v5068_v36 = vld [vmem:[%s4689_s16 + $0x8] sm:$0xff] }
 0x30c   : > { %v1065_v12 = vpack.c.bf16 %v1057_v28, %v1056_v5  ;;  %v1064_v13 = vpack.c.bf16 %v1055_v4, %v1054_v3  ;;  %v4396_v11 = vld [vmem:[#allocation3 + $0xec] sm:$0xf0]  ;;  %v1067_v6 = vpack.c.bf16 %v1060_v48, %v1054_v3  ;;  %v3965_v32 = vor.u32 %v4380_v31, %v3964_v56  ;;  %v5053_v22 = vld [vmem:[%s4689_s16] sm:$0xff]  ;;  %v5090_v23 = vld [vmem:[%s4689_s16 + $0x28] sm:$0xff] }
 0x30d   : > { %v4029_v17 = vor.u32 %v4396_v11, %v4028_v15  ;;  %v1068_v62 = vpack.c.bf16 %v1062_v46, %v1061_v7  ;;  %v3933_v25 = vor.u32 %v4372_v14, %v3932_v38  ;;  %v5064_v11 = vld [vmem:[%s4689_s16 + $0x18] sm:$0xff]  ;;  %v5072_v48 = vld [vmem:[%s4689_s16 + $0x10] sm:$0xff]  ;;  %v1217_v56 = vperm.slane %v3866_v20, 2 }
 0x30e   : > { %1078 = vrot.lane.b32.xlu1 %v1065_v12, %s4571_s27  ;;  %1076 = vrot.lane.b32.xlu0 %v1064_v13, %s4571_s27 }
 0x30f   : > { %3381 = vmatpush.bf16.msra.mxu0 %v4029_v17 }
 0x313   : > { %3382 = vmatpush.bf16.msra.mxu0 %v4013_v58 }
 0x316   : > { %1084 = vrot.lane.b32.xlu1 %v1068_v62, %s4571_s27  ;;  %1082 = vrot.lane.b32.xlu0 %v1067_v6, %s4571_s27  ;;  %v5079_v62 = vld [vmem:[%s4689_s16 + $0x38] sm:$0xff] }
 0x317   : > { %3383 = vmatpush.bf16.msra.mxu0 %v3997_v21  ;;  %v5086_v21 = vld [vmem:[%s4689_s16 + $0x30] sm:$0xff] }
 0x31b   : > { %3384 = vmatpush.bf16.msra.mxu0 %v3981_v57 }
 0x31e   : > { %1130 = vrot.lane.b32.xlu1 %v1125_v24, %s4580_s14  ;;  %1128 = vrot.lane.b32.xlu0 %v1124_v9, %s4580_s14  ;;  %v1215_v24 = vperm.slane %v3866_v20, 0 }
 0x31f   : > { %3385 = vmatpush.bf16.msra.mxu0 %v3965_v32  ;;  %v1218_v32 = vperm.slane %v3866_v20, 3 }
 0x323   : > { %3386 = vmatpush.bf16.msra.mxu0 %v3949_v33 }
 0x326   : > { %1134 = vrot.lane.b32.xlu0 %v1127_v34, %s4580_s14 }
 0x327   : > { %3387 = vmatpush.bf16.msra.mxu0 %v3933_v25 }
 0x32b   : > { %3388 = vmatpush.bf16.msra.mxu0 %v3917_v42 }
 0x34f   : > { %v1081_v43 = vpop.permute.xlu2 %1080 }
 0x350   : > { %v1090_v45 = vrot.slane %v1081_v43, 4 }
 0x357   : > { %v1087_v27 = vpop.permute.xlu2 %1086 }
 0x358   : > { %v1093_v53 = vrot.slane %v1087_v27, 4 }
 0x35f   : > { %v1133_v4 = vpop.permute.xlu2 %1132 }
 0x380   : > { %v1079_v29 = vpop.permute.xlu1 %1078  ;;  %v1077_v35 = vpop.permute.xlu0 %1076 }
 0x381   : > { %v1089_v47 = vrot.slane %v1079_v29, 4  ;;  %v1088_v49 = vrot.slane %v1077_v35, 4 }
 0x383   : > { %v1097_v50 = vsel %vm365_vm5, %v1089_v47, %v1090_v45  ;;  %v1094_v51 = vsel %vm365_vm5, %v1088_v49, %v1089_v47 }
 0x384   : > { %v1098_v52 = vsel %vm316_vm0, %v1079_v29, %v1097_v50  ;;  %v1096_v44 = vsel %vm316_vm0, %v1077_v35, %v1094_v51 }
 0x385   : > { %1108 = vst [vmem:[#allocation3 + $0x108] sm:$0xff] %v1098_v52 }
 0x386   : > { %1107 = vst [vmem:[#allocation3 + $0x100] sm:$0xff] %v1096_v44 }
 0x388   : > { %v1085_v30 = vpop.permute.xlu1 %1084  ;;  %v1083_v16 = vpop.permute.xlu0 %1082 }
 0x389   : > { %v1092_v54 = vrot.slane %v1085_v30, 4  ;;  %v1091_v55 = vrot.slane %v1083_v16, 4 }
 0x38b   : > { %v1101_v40 = vsel %vm365_vm5, %v1092_v54, %v1093_v53  ;;  %v1099_v37 = vsel %vm365_vm5, %v1091_v55, %v1092_v54 }
 0x38c   : > { %v1102_v61 = vsel %vm316_vm0, %v1085_v30, %v1101_v40  ;;  %v1100_v60 = vsel %vm316_vm0, %v1083_v16, %v1099_v37 }
 0x38d   : > { %1110 = vst [vmem:[#allocation3 + $0x118] sm:$0xff] %v1102_v61 }
 0x38e   : > { %1109 = vst [vmem:[#allocation3 + $0x110] sm:$0xff] %v1100_v60 }
 0x390   : > { %v1131_v63 = vpop.permute.xlu1 %1130  ;;  %v1129_v0 = vpop.permute.xlu0 %1128 }
 0x391   : > { %v1137_v28 = vsel %vm6174_vm10, %v1129_v0, %v1131_v63  ;;  %v1145_v26 = vmul.f32 0.0, %v1129_v0  ;;  %v1138_v8 = vsel %vm6174_vm10, %v1131_v63, %v1133_v4 }
 0x392   : > { %v1146_v3 = vmul.f32 %v5053_v22, %v1137_v28  ;;  %v1151_v12 = vmul.f32 %v5059_v10, %v1137_v28  ;;  %v1147_v46 = vmul.f32 %v5068_v36, %v1138_v8  ;;  %v1152_v57 = vmul.f32 %v5090_v23, %v1138_v8 }
 0x394   : > { %v1155_v5 = vpack.c.bf16 %v1146_v3, %v1145_v26  ;;  %v1158_v58 = vpack.c.bf16 %v1151_v12, %v1145_v26 }
 0x396   : > { %1167 = vrot.lane.b32.xlu1 %v1155_v5, %s4581_s15 }
 0x398   : > { %v1135_v13 = vpop.permute.xlu0 %1134 }
 0x399   : > { %v1139_v15 = vsel %vm6174_vm10, %v1133_v4, %v1135_v13  ;;  %v1149_v17 = vmul.f32 %v5064_v11, %v1135_v13  ;;  %v1154_v6 = vmul.f32 %v5079_v62, %v1135_v13  ;;  %vm1459_vm10 = vcmask 7168  }
 0x39a   : > { %v1148_v7 = vmul.f32 %v5072_v48, %v1139_v15  ;;  %v1153_v1 = vmul.f32 %v5086_v21, %v1139_v15 }
 0x39b   : > { %v1157_v18 = vpack.c.bf16 %v1149_v17, %v1149_v17  ;;  %v1160_v9 = vpack.c.bf16 %v1154_v6, %v1154_v6  ;;  %v3867_v17 = vld [vmem:[%s6170_s3 + $0x23] ss:$8 sm:$0xf] }
 0x39c   : > { %v1156_v19 = vpack.c.bf16 %v1148_v7, %v1147_v46  ;;  %v1159_v31 = vpack.c.bf16 %v1153_v1, %v1152_v57  ;;  %v1306_v46 = vperm.slane %v3867_v17, 0  ;;  %v1309_v6 = vperm.slane %v3867_v17, 3 }
 0x39d   : > { %1171 = vrot.lane.b32.xlu0 %v1157_v18, %s4581_s15 }
 0x39e   : > { %1173 = vrot.lane.b32.xlu1 %v1158_v58, %s4581_s15  ;;  %1169 = vrot.lane.b32.xlu2 %v1156_v19, %s4581_s15  ;;  %v1308_v58 = vperm.slane %v3867_v17, 2  ;;  %v1307_v19 = vperm.slane %v3867_v17, 1 }
 0x3a5   : > { %1177 = vrot.lane.b32.xlu0 %v1160_v9, %s4581_s15 }
 0x3a6   : > { %1219 = vrot.lane.b32.xlu1 %v1215_v24, %s4582_s26  ;;  %1175 = vrot.lane.b32.xlu2 %v1159_v31, %s4581_s15 }
 0x3ad   : > { %1223 = vrot.lane.b32.xlu0 %v1217_v56, %s4582_s26 }
 0x3ae   : > { %1225 = vrot.lane.b32.xlu1 %v1218_v32, %s4582_s26  ;;  %1221 = vrot.lane.b32.xlu2 %v1216_v59, %s4582_s26 }
 0x3f8   : > { %v1170_v2 = vpop.permute.xlu2 %1169 }
 0x3f9   : > { %v1180_v34 = vrot.slane %v1170_v2, 4 }
 0x400   : > { %v1176_v39 = vpop.permute.xlu2 %1175 }
 0x401   : > { %v1183_v29 = vrot.slane %v1176_v39, 4 }
 0x408   : > { %v1168_v33 = vpop.permute.xlu1 %1167  ;;  %v1222_v51 = vpop.permute.xlu2 %1221 }
 0x409   : > { %v1179_v14 = vrot.slane %v1168_v33, 4 }
 0x40b   : > { %v1185_v38 = vsel %vm365_vm5, %v1179_v14, %v1180_v34 }
 0x40c   : > { %v1187_v25 = vsel %vm1186_vm11, %v1168_v33, %v1185_v38 }
 0x40d   : > { %1198 = vst [vmem:[#allocation3 + $0x120] sm:$0xff] %v1187_v25 }
 0x40f   : > { %v1172_v41 = vpop.permute.xlu0 %1171 }
 0x410   : > { %v1181_v42 = vrot.slane %v1172_v41, 4  ;;  %v1174_v43 = vpop.permute.xlu1 %1173 }
 0x411   : > { %v1182_v35 = vrot.slane %v1174_v43, 4 }
 0x412   : > { %v1188_v45 = vsel %vm365_vm5, %v1180_v34, %v1181_v42 }
 0x413   : > { %v1189_v47 = vsel %vm1186_vm11, %v1170_v2, %v1188_v45  ;;  %v1190_v49 = vsel %vm365_vm5, %v1182_v35, %v1183_v29 }
 0x414   : > { %1199 = vst [vmem:[#allocation3 + $0x128] sm:$0xff] %v1189_v47  ;;  %v1191_v50 = vsel %vm1186_vm11, %v1174_v43, %v1190_v49 }
 0x415   : > { %1200 = vst [vmem:[#allocation3 + $0x130] sm:$0xff] %v1191_v50 }
 0x417   : > { %v1178_v52 = vpop.permute.xlu0 %1177 }
 0x418   : > { %v1184_v44 = vrot.slane %v1178_v52, 4  ;;  %v1220_v27 = vpop.permute.xlu1 %1219  ;;  %v3868_v52 = vld [vmem:[%s6170_s3 + $0x24] ss:$8 sm:$0xf] }
 0x419   : > { %v1236_v30 = vmul.f32 0.0, %v1220_v27  ;;  %v1228_v16 = vsel %vm6173_vm12, %v1220_v27, %v1222_v51 }
 0x41a   : > { %v1192_v53 = vsel %vm365_vm5, %v1183_v29, %v1184_v44  ;;  %v1237_v54 = vmul.f32 %v5053_v22, %v1228_v16  ;;  %v1242_v61 = vmul.f32 %v5059_v10, %v1228_v16  ;;  %v1399_v44 = vperm.slane %v3868_v52, 2 }
 0x41b   : > { %v1193_v55 = vsel %vm1186_vm11, %v1176_v39, %v1192_v53 }
 0x41c   : > { %1201 = vst [vmem:[#allocation3 + $0x138] sm:$0xff] %v1193_v55  ;;  %v1246_v40 = vpack.c.bf16 %v1237_v54, %v1236_v30  ;;  %v1249_v8 = vpack.c.bf16 %v1242_v61, %v1236_v30 }
 0x41e   : > { %1258 = vrot.lane.b32.xlu2 %v1246_v40, %s4583_s29 }
 0x41f   : > { %v1224_v37 = vpop.permute.xlu0 %1223 }
 0x420   : > { %v1226_v60 = vpop.permute.xlu1 %1225  ;;  %v1229_v63 = vsel %vm6173_vm12, %v1222_v51, %v1224_v37 }
 0x421   : > { %v1230_v0 = vsel %vm6173_vm12, %v1224_v37, %v1226_v60  ;;  %v1238_v28 = vmul.f32 %v5068_v36, %v1229_v63  ;;  %v1240_v26 = vmul.f32 %v5064_v11, %v1226_v60  ;;  %v1245_v12 = vmul.f32 %v5079_v62, %v1226_v60 }
 0x422   : > { %v1239_v3 = vmul.f32 %v5072_v48, %v1230_v0  ;;  %v1243_v13 = vmul.f32 %v5090_v23, %v1229_v63  ;;  %v1244_v15 = vmul.f32 %v5086_v21, %v1230_v0  ;;  %vm1409_vm12 = vcmask 1039360  }
 0x423   : > { %v1248_v4 = vpack.c.bf16 %v1240_v26, %v1240_v26  ;;  %v1251_v7 = vpack.c.bf16 %v1245_v12, %v1245_v12  ;;  %v1400_v12 = vperm.slane %v3868_v52, 3 }
 0x424   : > { %v1247_v5 = vpack.c.bf16 %v1239_v3, %v1238_v28  ;;  %v1250_v18 = vpack.c.bf16 %v1244_v15, %v1243_v13 }
 0x425   : > { %1262 = vrot.lane.b32.xlu1 %v1248_v4, %s4583_s29 }
 0x426   : > { %1260 = vrot.lane.b32.xlu0 %v1247_v5, %s4583_s29  ;;  %1264 = vrot.lane.b32.xlu2 %v1249_v8, %s4583_s29  ;;  %v1397_v5 = vperm.slane %v3868_v52, 0  ;;  %v1398_v8 = vperm.slane %v3868_v52, 1 }
 0x42d   : > { %1268 = vrot.lane.b32.xlu1 %v1251_v7, %s4583_s29 }
 0x42e   : > { %1266 = vrot.lane.b32.xlu0 %v1250_v18, %s4583_s29  ;;  %1310 = vrot.lane.b32.xlu2 %v1306_v46, %s4584_s8 }
 0x435   : > { %1314 = vrot.lane.b32.xlu1 %v1308_v58, %s4584_s8 }
 0x436   : > { %1312 = vrot.lane.b32.xlu0 %v1307_v19, %s4584_s8  ;;  %1316 = vrot.lane.b32.xlu2 %v1309_v6, %s4584_s8 }
 0x478   : > { %v1259_v20 = vpop.permute.xlu2 %1258 }
 0x479   : > { %v1270_v33 = vrot.slane %v1259_v20, 4 }
 0x480   : > { %v1265_v1 = vpop.permute.xlu2 %1264 }
 0x481   : > { %v1273_v35 = vrot.slane %v1265_v1, 4 }
 0x488   : > { %v1311_v57 = vpop.permute.xlu2 %1310 }
 0x489   : > { %v1327_v40 = vmul.f32 0.0, %v1311_v57 }
 0x490   : > { %v1317_v24 = vpop.permute.xlu2 %1316 }
 0x491   : > { %v1331_v9 = vmul.f32 %v5064_v11, %v1317_v24  ;;  %v1336_v56 = vmul.f32 %v5079_v62, %v1317_v24 }
 0x493   : > { %v1339_v31 = vpack.c.bf16 %v1331_v9, %v1331_v9  ;;  %v1342_v14 = vpack.c.bf16 %v1336_v56, %v1336_v56 }
 0x495   : > { %1353 = vrot.lane.b32.xlu2 %v1339_v31, %s4585_s10 }
 0x497   : > { %v1263_v32 = vpop.permute.xlu1 %1262 }
 0x498   : > { %v1272_v59 = vrot.slane %v1263_v32, 4  ;;  %v1261_v2 = vpop.permute.xlu0 %1260 }
 0x499   : > { %v1271_v34 = vrot.slane %v1261_v2, 4 }
 0x49b   : > { %v1276_v38 = vsel %vm365_vm5, %v1270_v33, %v1271_v34  ;;  %v1279_v25 = vsel %vm365_vm5, %v1271_v34, %v1272_v59 }
 0x49c   : > { %v1278_v39 = vsel %vm1277_vm13, %v1259_v20, %v1276_v38  ;;  %v1280_v41 = vsel %vm1277_vm13, %v1261_v2, %v1279_v25 }
 0x49d   : > { %1289 = vst [vmem:[#allocation3 + $0x140] sm:$0xff] %v1278_v39  ;;  %1359 = vrot.lane.b32.xlu2 %v1342_v14, %s4585_s10 }
 0x49e   : > { %1290 = vst [vmem:[#allocation3 + $0x148] sm:$0xff] %v1280_v41 }
 0x49f   : > { %v1269_v42 = vpop.permute.xlu1 %1268 }
 0x4a0   : > { %v1275_v43 = vrot.slane %v1269_v42, 4  ;;  %v1267_v29 = vpop.permute.xlu0 %1266 }
 0x4a1   : > { %v1274_v45 = vrot.slane %v1267_v29, 4 }
 0x4a3   : > { %v1281_v47 = vsel %vm365_vm5, %v1273_v35, %v1274_v45  ;;  %v1283_v49 = vsel %vm365_vm5, %v1274_v45, %v1275_v43 }
 0x4a4   : > { %v1282_v50 = vsel %vm1277_vm13, %v1265_v1, %v1281_v47  ;;  %v1284_v51 = vsel %vm1277_vm13, %v1267_v29, %v1283_v49 }
 0x4a5   : > { %1291 = vst [vmem:[#allocation3 + $0x150] sm:$0xff] %v1282_v50  ;;  %1405 = vrot.lane.b32.xlu2 %v1399_v44, %s4586_s24 }
 0x4a6   : > { %1292 = vst [vmem:[#allocation3 + $0x158] sm:$0xff] %v1284_v51 }
 0x4a7   : > { %v1315_v27 = vpop.permute.xlu1 %1314 }
 0x4a8   : > { %v1321_v30 = vsel %vm1318_vm14, %v1315_v27, %v1317_v24  ;;  %v1313_v16 = vpop.permute.xlu0 %1312 }
 0x4a9   : > { %v1330_v53 = vmul.f32 %v5072_v48, %v1321_v30  ;;  %v1319_v54 = vsel %vm1318_vm14, %v1311_v57, %v1313_v16  ;;  %v1320_v55 = vsel %vm1318_vm14, %v1313_v16, %v1315_v27  ;;  %v1335_v0 = vmul.f32 %v5086_v21, %v1321_v30  ;;  %v3869_v30 = vld [vmem:[%s6170_s3 + $0x26] ss:$8 sm:$0xf] }
 0x4aa   : > { %v1328_v37 = vmul.f32 %v5053_v22, %v1319_v54  ;;  %v1329_v61 = vmul.f32 %v5068_v36, %v1320_v55  ;;  %v1333_v28 = vmul.f32 %v5059_v10, %v1319_v54  ;;  %v1334_v26 = vmul.f32 %v5090_v23, %v1320_v55 }
 0x4ab   : > { %v1504_v54 = vperm.slane %v3869_v30, 0 }
 0x4ac   : > { %v1337_v60 = vpack.c.bf16 %v1328_v37, %v1327_v40  ;;  %v1338_v63 = vpack.c.bf16 %v1330_v53, %v1329_v61  ;;  %v1340_v3 = vpack.c.bf16 %v1333_v28, %v1327_v40  ;;  %v1341_v4 = vpack.c.bf16 %v1335_v0, %v1334_v26 }
 0x4ad   : > { %v1506_v37 = vperm.slane %v3869_v30, 2  ;;  %v1507_v61 = vperm.slane %v3869_v30, 3 }
 0x4ae   : > { %1349 = vrot.lane.b32.xlu0 %v1337_v60, %s4585_s10  ;;  %1351 = vrot.lane.b32.xlu1 %v1338_v63, %s4585_s10  ;;  %v1505_v60 = vperm.slane %v3869_v30, 1 }
 0x4b6   : > { %1355 = vrot.lane.b32.xlu0 %v1340_v3, %s4585_s10  ;;  %1357 = vrot.lane.b32.xlu1 %v1341_v4, %s4585_s10 }
 0x4be   : > { %1401 = vrot.lane.b32.xlu0 %v1397_v5, %s4586_s24  ;;  %1403 = vrot.lane.b32.xlu1 %v1398_v8, %s4586_s24 }
 0x4c6   : > { %1407 = vrot.lane.b32.xlu0 %v1400_v12, %s4586_s24 }
 0x4ef   : > { %v1354_v13 = vpop.permute.xlu2 %1353 }
 0x4f0   : > { %v1363_v46 = vrot.slane %v1354_v13, 4 }
 0x4f7   : > { %v1360_v1 = vpop.permute.xlu2 %1359 }
 0x4f8   : > { %v1366_v9 = vrot.slane %v1360_v1, 4 }
 0x4ff   : > { %v1406_v41 = vpop.permute.xlu2 %1405 }
 0x520   : > { %v1350_v15 = vpop.permute.xlu0 %1349  ;;  %v1352_v17 = vpop.permute.xlu1 %1351 }
 0x521   : > { %v1361_v7 = vrot.slane %v1350_v15, 4  ;;  %v1362_v18 = vrot.slane %v1352_v17, 4 }
 0x523   : > { %v1367_v58 = vsel %vm365_vm5, %v1361_v7, %v1362_v18  ;;  %v1370_v19 = vsel %vm365_vm5, %v1362_v18, %v1363_v46 }
 0x524   : > { %v1369_v6 = vsel %vm1368_vm15, %v1350_v15, %v1367_v58  ;;  %v1371_v20 = vsel %vm1368_vm15, %v1352_v17, %v1370_v19 }
 0x525   : > { %1380 = vst [vmem:[#allocation3 + $0x160] sm:$0xff] %v1369_v6 }
 0x526   : > { %1381 = vst [vmem:[#allocation3 + $0x168] sm:$0xff] %v1371_v20 }
 0x528   : > { %v1356_v57 = vpop.permute.xlu0 %1355  ;;  %v1358_v24 = vpop.permute.xlu1 %1357 }
 0x529   : > { %v1364_v31 = vrot.slane %v1356_v57, 4  ;;  %v1365_v56 = vrot.slane %v1358_v24, 4 }
 0x52b   : > { %v1372_v32 = vsel %vm365_vm5, %v1364_v31, %v1365_v56  ;;  %v1374_v59 = vsel %vm365_vm5, %v1365_v56, %v1366_v9 }
 0x52c   : > { %v1373_v2 = vsel %vm1368_vm15, %v1356_v57, %v1372_v32  ;;  %v1375_v33 = vsel %vm1368_vm15, %v1358_v24, %v1374_v59 }
 0x52d   : > { %1382 = vst [vmem:[#allocation3 + $0x170] sm:$0xff] %v1373_v2 }
 0x52e   : > { %1383 = vst [vmem:[#allocation3 + $0x178] sm:$0xff] %v1375_v33 }
 0x530   : > { %v1402_v34 = vpop.permute.xlu0 %1401  ;;  %v1404_v14 = vpop.permute.xlu1 %1403 }
 0x531   : > { %v1418_v38 = vmul.f32 0.0, %v1402_v34  ;;  %v1410_v25 = vsel %vm1409_vm12, %v1402_v34, %v1404_v14  ;;  %v1411_v43 = vsel %vm1409_vm12, %v1404_v14, %v1406_v41 }
 0x532   : > { %v1419_v39 = vmul.f32 %v5053_v22, %v1410_v25  ;;  %v1424_v29 = vmul.f32 %v5059_v10, %v1410_v25  ;;  %v1420_v49 = vmul.f32 %v5068_v36, %v1411_v43  ;;  %v1425_v53 = vmul.f32 %v5090_v23, %v1411_v43 }
 0x534   : > { %v1428_v42 = vpack.c.bf16 %v1419_v39, %v1418_v38  ;;  %v1431_v44 = vpack.c.bf16 %v1424_v29, %v1418_v38 }
 0x536   : > { %1440 = vrot.lane.b32.xlu1 %v1428_v42, %s4587_s25 }
 0x538   : > { %v1408_v35 = vpop.permute.xlu0 %1407 }
 0x539   : > { %v1412_v45 = vsel %vm1409_vm12, %v1406_v41, %v1408_v35  ;;  %v1422_v47 = vmul.f32 %v5064_v11, %v1408_v35  ;;  %v1427_v27 = vmul.f32 %v5079_v62, %v1408_v35  ;;  %v3878_v35 = vld [vmem:[%s6170_s3 + $0x47] ss:$8 sm:$0xf] }
 0x53a   : > { %v1421_v50 = vmul.f32 %v5072_v48, %v1412_v45  ;;  %v1426_v16 = vmul.f32 %v5086_v21, %v1412_v45 }
 0x53b   : > { %v1430_v51 = vpack.c.bf16 %v1422_v47, %v1422_v47  ;;  %v1433_v55 = vpack.c.bf16 %v1427_v27, %v1427_v27  ;;  %v3881_v27 = vld [vmem:[%s6170_s3 + $0x62] ss:$8 sm:$0xf] }
 0x53c   : > { %v1429_v52 = vpack.c.bf16 %v1421_v50, %v1420_v49  ;;  %v1432_v40 = vpack.c.bf16 %v1426_v16, %v1425_v53  ;;  %v2313_v49 = vperm.slane %v3878_v35, 0  ;;  %v2581_v30 = vperm.slane %v3881_v27, 1 }
 0x53d   : > { %1444 = vrot.lane.b32.xlu0 %v1430_v51, %s4587_s25  ;;  %v2315_v51 = vperm.slane %v3878_v35, 2  ;;  %v2582_v16 = vperm.slane %v3881_v27, 2  ;;  %v2580_v53 = vperm.slane %v3881_v27, 0 }
 0x53e   : > { %1442 = vrot.lane.b32.xlu2 %v1429_v52, %s4587_s25  ;;  %1446 = vrot.lane.b32.xlu1 %v1431_v44, %s4587_s25  ;;  %v2316_v52 = vperm.slane %v3878_v35, 3  ;;  %v2314_v44 = vperm.slane %v3878_v35, 1 }
 0x545   : > { %1450 = vrot.lane.b32.xlu0 %v1433_v55, %s4587_s25 }
 0x546   : > { %1448 = vrot.lane.b32.xlu2 %v1432_v40, %s4587_s25  ;;  %1508 = vrot.lane.b32.xlu1 %v1504_v54, %s4587_s25  ;;  %v3870_v54 = vld [vmem:[%s6170_s3 + $0x27] ss:$8 sm:$0xf] }
 0x547   : > { %v1595_v55 = vperm.slane %v3870_v54, 0  ;;  %v1596_v40 = vperm.slane %v3870_v54, 1 }
 0x54d   : > { %1512 = vrot.lane.b32.xlu0 %v1506_v37, %s4587_s25  ;;  %v2583_v37 = vperm.slane %v3881_v27, 3 }
 0x54e   : > { %1514 = vrot.lane.b32.xlu1 %v1507_v61, %s4587_s25  ;;  %1510 = vrot.lane.b32.xlu2 %v1505_v60, %s4587_s25  ;;  %v3877_v61 = vld [vmem:[%s6170_s3 + $0x46] ss:$8 sm:$0xf]  ;;  %v1598_v60 = vperm.slane %v3870_v54, 3  ;;  %s4357_s25 = sshll.u32 %s6196_s20, 7 }
 0x598   : > { %v1443_v63 = vpop.permute.xlu2 %1442 }
 0x599   : > { %v1453_v28 = vrot.slane %v1443_v63, 4 }
 0x5a0   : > { %v1449_v5 = vpop.permute.xlu2 %1448 }
 0x5a1   : > { %v1456_v15 = vrot.slane %v1449_v5, 4 }
 0x5a8   : > { %v1441_v0 = vpop.permute.xlu1 %1440  ;;  %v1511_v19 = vpop.permute.xlu2 %1510 }
 0x5a9   : > { %v1452_v26 = vrot.slane %v1441_v0, 4 }
 0x5ab   : > { %v1458_v3 = vsel %vm365_vm5, %v1452_v26, %v1453_v28  ;;  %v2227_v26 = vperm.slane %v3877_v61, 3 }
 0x5ac   : > { %v1460_v4 = vsel %vm1459_vm10, %v1441_v0, %v1458_v3  ;;  %v1597_v0 = vperm.slane %v3870_v54, 2  ;;  %v2225_v3 = vperm.slane %v3877_v61, 1 }
 0x5ad   : > { %1471 = vst [vmem:[#allocation3 + $0x180] sm:$0xff] %v1460_v4  ;;  %v3880_v4 = vld [vmem:[%s6170_s3 + $0x61] ss:$8 sm:$0xf] }
 0x5af   : > { %v1445_v8 = vpop.permute.xlu0 %1444 }
 0x5b0   : > { %v1454_v12 = vrot.slane %v1445_v8, 4  ;;  %v1447_v13 = vpop.permute.xlu1 %1446  ;;  %v2493_v8 = vperm.slane %v3880_v4, 2 }
 0x5b1   : > { %v1455_v17 = vrot.slane %v1447_v13, 4 }
 0x5b2   : > { %v1461_v46 = vsel %vm365_vm5, %v1453_v28, %v1454_v12  ;;  %v2226_v28 = vperm.slane %v3877_v61, 2  ;;  %v2491_v12 = vperm.slane %v3880_v4, 0 }
 0x5b3   : > { %v1462_v7 = vsel %vm1459_vm10, %v1443_v63, %v1461_v46  ;;  %v1463_v18 = vsel %vm365_vm5, %v1455_v17, %v1456_v15  ;;  %v2224_v63 = vperm.slane %v3877_v61, 0  ;;  %v2494_v46 = vperm.slane %v3880_v4, 3 }
 0x5b4   : > { %1472 = vst [vmem:[#allocation3 + $0x188] sm:$0xff] %v1462_v7  ;;  %v1464_v58 = vsel %vm1459_vm10, %v1447_v13, %v1463_v18  ;;  %v3876_v13 = vld [vmem:[%s6170_s3 + $0x45] ss:$8 sm:$0xf] }
 0x5b5   : > { %1473 = vst [vmem:[#allocation3 + $0x190] sm:$0xff] %v1464_v58  ;;  %v2136_v17 = vperm.slane %v3876_v13, 1  ;;  %v3879_v7 = vld [vmem:[%s6170_s3 + $0x60] ss:$8 sm:$0xf]  ;;  %v2138_v18 = vperm.slane %v3876_v13, 3 }
 0x5b6   : > { %v2402_v58 = vperm.slane %v3879_v7, 0 }
 0x5b7   : > { %v1451_v6 = vpop.permute.xlu0 %1450 }
 0x5b8   : > { %v1457_v20 = vrot.slane %v1451_v6, 4  ;;  %v1509_v1 = vpop.permute.xlu1 %1508  ;;  %v2404_v6 = vperm.slane %v3879_v7, 2 }
 0x5b9   : > { %v1517_v57 = vsel %vm1459_vm10, %v1509_v1, %v1511_v19  ;;  %v1525_v24 = vmul.f32 %v5053_v22, %v1509_v1  ;;  %v1530_v2 = vmul.f32 %v5059_v10, %v1509_v1  ;;  %v2403_v1 = vperm.slane %v3879_v7, 1 }
 0x5ba   : > { %v1465_v9 = vsel %vm365_vm5, %v1456_v15, %v1457_v20  ;;  %v1526_v31 = vmul.f32 %v5068_v36, %v1517_v57  ;;  %v1531_v33 = vmul.f32 %v5090_v23, %v1517_v57  ;;  %v2135_v15 = vperm.slane %v3876_v13, 0  ;;  %v3875_v57 = vld [vmem:[%s6170_s3 + $0x44] ss:$8 sm:$0xf] }
 0x5bb   : > { %v1466_v56 = vsel %vm1459_vm10, %v1449_v5, %v1465_v9  ;;  %v2492_v5 = vperm.slane %v3880_v4, 1  ;;  %v2405_v20 = vperm.slane %v3879_v7, 3  ;;  %v2047_v9 = vperm.slane %v3875_v57, 1 }
 0x5bc   : > { %1474 = vst [vmem:[#allocation3 + $0x198] sm:$0xff] %v1466_v56  ;;  %v1535_v32 = vpack.c.bf16 %v1526_v31, %v1525_v24  ;;  %v1538_v43 = vpack.c.bf16 %v1531_v33, %v1530_v2  ;;  %v2048_v31 = vperm.slane %v3875_v57, 2  ;;  %v2046_v56 = vperm.slane %v3875_v57, 0 }
 0x5be   : > { %1547 = vrot.lane.b32.xlu2 %v1535_v32, %s4586_s24  ;;  %v3874_v32 = vld [vmem:[%s6170_s3 + $0x43] ss:$8 sm:$0xf] }
 0x5bf   : > { %v1513_v59 = vpop.permute.xlu0 %1512  ;;  %v1957_v2 = vperm.slane %v3874_v32, 0  ;;  %v1958_v33 = vperm.slane %v3874_v32, 1 }
 0x5c0   : > { %v1518_v34 = vsel %vm1459_vm10, %v1511_v19, %v1513_v59  ;;  %v1515_v14 = vpop.permute.xlu1 %1514  ;;  %v2137_v19 = vperm.slane %v3876_v13, 2 }
 0x5c1   : > { %v1527_v38 = vmul.f32 %v5072_v48, %v1518_v34  ;;  %v1519_v25 = vsel %vm1459_vm10, %v1513_v59, %v1515_v14  ;;  %v1529_v39 = vmul.f32 0.0, %v1515_v14  ;;  %v1532_v45 = vmul.f32 %v5086_v21, %v1518_v34  ;;  %v3873_v14 = vld [vmem:[%s6170_s3 + $0x42] ss:$8 sm:$0xf] }
 0x5c2   : > { %v1528_v41 = vmul.f32 %v5064_v11, %v1519_v25  ;;  %v1533_v47 = vmul.f32 %v5079_v62, %v1519_v25  ;;  %v2049_v34 = vperm.slane %v3875_v57, 3  ;;  %v1960_v25 = vperm.slane %v3874_v32, 3 }
 0x5c3   : > { %v1537_v42 = vpack.c.bf16 %v1529_v39, %v1529_v39  ;;  %v1868_v39 = vperm.slane %v3873_v14, 0  ;;  %v1869_v35 = vperm.slane %v3873_v14, 1  ;;  %vm3374_vm10 = vcmask 392192  }
 0x5c4   : > { %v1536_v29 = vpack.c.bf16 %v1528_v41, %v1527_v38  ;;  %v1539_v50 = vpack.c.bf16 %v1533_v47, %v1532_v45  ;;  %v1959_v41 = vperm.slane %v3874_v32, 2  ;;  %v3872_v45 = vld [vmem:[%s6170_s3 + $0x41] ss:$8 sm:$0xf] }
 0x5c5   : > { %1551 = vrot.lane.b32.xlu1 %v1537_v42, %s4586_s24  ;;  %v1778_v27 = vperm.slane %v3872_v45, 1 }
 0x5c6   : > { %1553 = vrot.lane.b32.xlu2 %v1538_v43, %s4586_s24  ;;  %1549 = vrot.lane.b32.xlu0 %v1536_v29, %s4586_s24  ;;  %v1870_v43 = vperm.slane %v3873_v14, 2  ;;  %v1871_v29 = vperm.slane %v3873_v14, 3 }
 0x5cd   : > { %1557 = vrot.lane.b32.xlu1 %v1537_v42, %s4586_s24 }
 0x5ce   : > { %2317 = vrot.lane.b32.xlu2 %v2313_v49, %s4579_s23  ;;  %1555 = vrot.lane.b32.xlu0 %v1539_v50, %s4586_s24 }
 0x5d5   : > { %2321 = vrot.lane.b32.xlu1 %v2315_v51, %s4579_s23 }
 0x5d6   : > { %2323 = vrot.lane.b32.xlu2 %v2316_v52, %s4579_s23  ;;  %2319 = vrot.lane.b32.xlu0 %v2314_v44, %s4579_s23 }
 0x5dd   : > { %2586 = vrot.lane.b32.xlu1 %v2581_v30, %s4577_s18  ;;  %v1779_v30 = vperm.slane %v3872_v45, 2 }
 0x5de   : > { %2588 = vrot.lane.b32.xlu2 %v2582_v16, %s4577_s18  ;;  %2584 = vrot.lane.b32.xlu0 %v2580_v53, %s4577_s18  ;;  %v1777_v16 = vperm.slane %v3872_v45, 0 }
 0x5e5   : > { %1599 = vrot.lane.b32.xlu1 %v1595_v55, %s4585_s10 }
 0x5e6   : > { %1601 = vrot.lane.b32.xlu2 %v1596_v40, %s4585_s10  ;;  %2590 = vrot.lane.b32.xlu0 %v2583_v37, %s4577_s18  ;;  %v3871_v37 = vld [vmem:[%s6170_s3 + $0x40] ss:$8 sm:$0xf] }
 0x5e7   : > { %v1687_v4 = vperm.slane %v3871_v37, 1 }
 0x5ed   : > { %1605 = vrot.lane.b32.xlu1 %v1598_v60, %s4585_s10 }
 0x5ee   : > { %2228 = vrot.lane.b32.xlu2 %v2224_v63, %s4575_s12  ;;  %1603 = vrot.lane.b32.xlu0 %v1597_v0, %s4585_s10 }
 0x5f5   : > { %2232 = vrot.lane.b32.xlu1 %v2226_v28, %s4575_s12 }
 0x5f6   : > { %2234 = vrot.lane.b32.xlu2 %v2227_v26, %s4575_s12  ;;  %2230 = vrot.lane.b32.xlu0 %v2225_v3, %s4575_s12  ;;  %v1686_v3 = vperm.slane %v3871_v37, 0 }
 0x5fd   : > { %2497 = vrot.lane.b32.xlu1 %v2492_v5, %s4578_s19  ;;  %v1780_v5 = vperm.slane %v3872_v45, 3 }
 0x5fe   : > { %2499 = vrot.lane.b32.xlu2 %v2493_v8, %s4578_s19  ;;  %2495 = vrot.lane.b32.xlu0 %v2491_v12, %s4578_s19 }
 0x605   : > { %2139 = vrot.lane.b32.xlu1 %v2135_v15, %s4574_s9 }
 0x606   : > { %2141 = vrot.lane.b32.xlu2 %v2136_v17, %s4574_s9  ;;  %2501 = vrot.lane.b32.xlu0 %v2494_v46, %s4578_s19 }
 0x60d   : > { %2145 = vrot.lane.b32.xlu1 %v2138_v18, %s4574_s9 }
 0x60e   : > { %2406 = vrot.lane.b32.xlu2 %v2402_v58, %s4576_s17  ;;  %2143 = vrot.lane.b32.xlu0 %v2137_v19, %s4574_s9  ;;  %v1689_v58 = vperm.slane %v3871_v37, 3 }
 0x615   : > { %2410 = vrot.lane.b32.xlu1 %v2404_v6, %s4576_s17  ;;  %v1688_v6 = vperm.slane %v3871_v37, 2 }
 0x616   : > { %2412 = vrot.lane.b32.xlu2 %v2405_v20, %s4576_s17  ;;  %2408 = vrot.lane.b32.xlu0 %v2403_v1, %s4576_s17 }
 0x618   : > { %v1548_v24 = vpop.permute.xlu2 %1547 }
 0x619   : > { %v1559_v52 = vrot.slane %v1548_v24, 4 }
 0x61d   : > { %2052 = vrot.lane.b32.xlu1 %v2047_v9, %s4573_s6 }
 0x61e   : > { %2054 = vrot.lane.b32.xlu2 %v2048_v31, %s4573_s6  ;;  %2050 = vrot.lane.b32.xlu0 %v2046_v56, %s4573_s6 }
 0x620   : > { %v1554_v59 = vpop.permute.xlu2 %1553 }
 0x621   : > { %v1562_v28 = vrot.slane %v1554_v59, 4 }
 0x625   : > { %1961 = vrot.lane.b32.xlu1 %v1957_v2, %s4572_s28 }
 0x626   : > { %1963 = vrot.lane.b32.xlu2 %v1958_v33, %s4572_s28  ;;  %2056 = vrot.lane.b32.xlu0 %v2049_v34, %s4573_s6 }
 0x628   : > { %v5274_v38 = vpop.permute.xlu2 %2317 }
 0x629   : > { %v2333_v18 = vmul.f32 %v5053_v22, %v5274_v38  ;;  %v2338_v9 = vmul.f32 %v5059_v10, %v5274_v38 }
 0x62d   : > { %1967 = vrot.lane.b32.xlu1 %v1960_v25, %s4572_s28 }
 0x62e   : > { %1872 = vrot.lane.b32.xlu2 %v1868_v39, %s4571_s27  ;;  %1965 = vrot.lane.b32.xlu0 %v1959_v41, %s4572_s28 }
 0x630   : > { %v5279_v42 = vpop.permute.xlu2 %2323 }
 0x635   : > { %1876 = vrot.lane.b32.xlu1 %v1870_v43, %s4571_s27 }
 0x636   : > { %1878 = vrot.lane.b32.xlu2 %v1871_v29, %s4571_s27  ;;  %1874 = vrot.lane.b32.xlu0 %v1869_v35, %s4571_s27 }
 0x637   : > { %v1552_v47 = vpop.permute.xlu1 %1551 }
 0x638   : > { %v1561_v49 = vrot.slane %v1552_v47, 4  ;;  %v5287_v50 = vpop.permute.xlu2 %2588  ;;  %v1550_v51 = vpop.permute.xlu0 %1549 }
 0x639   : > { %v1560_v44 = vrot.slane %v1550_v51, 4 }
 0x63b   : > { %v1565_v53 = vsel %vm365_vm5, %v1559_v52, %v1560_v44  ;;  %v1568_v54 = vsel %vm365_vm5, %v1560_v44, %v1561_v49 }
 0x63c   : > { %v1567_v55 = vsel %vm1409_vm12, %v1548_v24, %v1565_v53  ;;  %v1569_v40 = vsel %vm1409_vm12, %v1550_v51, %v1568_v54 }
 0x63d   : > { %1578 = vst [vmem:[#allocation3 + $0x1c0] sm:$0xff] %v1567_v55  ;;  %1783 = vrot.lane.b32.xlu1 %v1778_v27, %s4581_s15 }
 0x63e   : > { %1579 = vst [vmem:[#allocation3 + $0x1c8] sm:$0xff] %v1569_v40  ;;  %1785 = vrot.lane.b32.xlu2 %v1779_v30, %s4581_s15  ;;  %1781 = vrot.lane.b32.xlu0 %v1777_v16, %s4581_s15 }
 0x63f   : > { %v1558_v61 = vpop.permute.xlu1 %1557 }
 0x640   : > { %v1564_v60 = vrot.slane %v1558_v61, 4  ;;  %v5299_v63 = vpop.permute.xlu2 %1601  ;;  %v1556_v0 = vpop.permute.xlu0 %1555 }
 0x641   : > { %v1563_v26 = vrot.slane %v1556_v0, 4 }
 0x643   : > { %v1570_v8 = vsel %vm365_vm5, %v1562_v28, %v1563_v26  ;;  %v1572_v12 = vsel %vm365_vm5, %v1563_v26, %v1564_v60 }
 0x644   : > { %v1571_v13 = vsel %vm1409_vm12, %v1554_v59, %v1570_v8  ;;  %v1573_v15 = vsel %vm1409_vm12, %v1556_v0, %v1572_v12  ;;  %vm6180_vm12 = vcmask 982016  }
 0x645   : > { %1580 = vst [vmem:[#allocation3 + $0x1d0] sm:$0xff] %v1571_v13  ;;  %1690 = vrot.lane.b32.xlu1 %v1686_v3, %s4583_s29 }
 0x646   : > { %1581 = vst [vmem:[#allocation3 + $0x1d8] sm:$0xff] %v1573_v15  ;;  %1692 = vrot.lane.b32.xlu2 %v1687_v4, %s4583_s29  ;;  %1787 = vrot.lane.b32.xlu0 %v1780_v5, %s4581_s15 }
 0x647   : > { %v2322_v17 = vpop.permute.xlu1 %2321 }
 0x648   : > { %v5308_v46 = vpop.permute.xlu2 %2228  ;;  %v2320_v7 = vpop.permute.xlu0 %2319  ;;  %v2327_v1 = vsel %vm640_vm7, %v2322_v17, %v5279_v42 }
 0x649   : > { %v2325_v19 = vsel %vm640_vm7, %v5274_v38, %v2320_v7  ;;  %v2326_v57 = vsel %vm640_vm7, %v2320_v7, %v2322_v17  ;;  %v2336_v32 = vmul.f32 %v5064_v11, %v2327_v1  ;;  %v2341_v34 = vmul.f32 %v5079_v62, %v2327_v1 }
 0x64a   : > { %v2334_v20 = vmul.f32 %v5068_v36, %v2325_v19  ;;  %v2339_v31 = vmul.f32 %v5090_v23, %v2325_v19  ;;  %v2335_v59 = vmul.f32 %v5072_v48, %v2326_v57  ;;  %v2340_v14 = vmul.f32 %v5086_v21, %v2326_v57 }
 0x64c   : > { %v2343_v24 = vpack.c.bf16 %v2334_v20, %v2333_v18  ;;  %v2346_v25 = vpack.c.bf16 %v2339_v31, %v2338_v9  ;;  %v2344_v39 = vpack.c.bf16 %v2336_v32, %v2335_v59  ;;  %v2347_v41 = vpack.c.bf16 %v2341_v34, %v2340_v14 }
 0x64d   : > { %1696 = vrot.lane.b32.xlu1 %v1689_v58, %s4583_s29  ;;  %v2249_v32 = vmul.f32 %v5059_v10, %v5308_v46 }
 0x64e   : > { %1694 = vrot.lane.b32.xlu0 %v1688_v6, %s4583_s29  ;;  %2355 = vrot.lane.b32.xlu2 %v2343_v24, %s4574_s9  ;;  %v2244_v6 = vmul.f32 %v5053_v22, %v5308_v46 }
 0x64f   : > { %v2587_v56 = vpop.permute.xlu1 %2586 }
 0x650   : > { %v5326_v2 = vpop.permute.xlu2 %2234  ;;  %v2585_v33 = vpop.permute.xlu0 %2584  ;;  %v2593_v43 = vsel %vm367_vm6, %v2587_v56, %v5287_v50 }
 0x651   : > { %v2592_v38 = vsel %vm367_vm6, %v2585_v33, %v2587_v56  ;;  %v2600_v35 = vmul.f32 %v5053_v22, %v2585_v33  ;;  %v2605_v51 = vmul.f32 %v5059_v10, %v2585_v33  ;;  %v2602_v27 = vmul.f32 %v5072_v48, %v2593_v43 }
 0x652   : > { %v2601_v45 = vmul.f32 %v5068_v36, %v2592_v38  ;;  %v2606_v52 = vmul.f32 %v5090_v23, %v2592_v38  ;;  %v2607_v3 = vmul.f32 %v5086_v21, %v2593_v43 }
 0x654   : > { %v2610_v16 = vpack.c.bf16 %v2601_v45, %v2600_v35  ;;  %v2613_v54 = vpack.c.bf16 %v2606_v52, %v2605_v51  ;;  %v5413_v52 = vld [vmem:[%s4689_s16 + $0x20] sm:$0xff] }
 0x655   : > { %2361 = vrot.lane.b32.xlu1 %v2346_v25, %s4574_s9 }
 0x656   : > { %2357 = vrot.lane.b32.xlu0 %v2344_v39, %s4574_s9  ;;  %2363 = vrot.lane.b32.xlu2 %v2347_v41, %s4574_s9 }
 0x657   : > { %v1600_v29 = vpop.permute.xlu1 %1599 }
 0x658   : > { %v5338_v47 = vpop.permute.xlu2 %2499  ;;  %v5340_v49 = vpop.permute.xlu0 %2590  ;;  %v1608_v55 = vsel %vm1368_vm15, %v1600_v29, %v5299_v63 }
 0x659   : > { %v2594_v44 = vsel %vm367_vm6, %v5287_v50, %v5340_v49  ;;  %v1616_v50 = vmul.f32 %v5053_v22, %v1600_v29  ;;  %v1617_v37 = vmul.f32 %v5068_v36, %v1608_v55  ;;  %v1622_v17 = vmul.f32 %v5090_v23, %v1608_v55 }
 0x65a   : > { %v2603_v30 = vmul.f32 %v5064_v11, %v2594_v44  ;;  %v2608_v61 = vmul.f32 %v5079_v62, %v2594_v44 }
 0x65b   : > { %v1626_v8 = vpack.c.bf16 %v1617_v37, %v1616_v50 }
 0x65c   : > { %v2611_v53 = vpack.c.bf16 %v2603_v30, %v2602_v27  ;;  %v2614_v12 = vpack.c.bf16 %v2608_v61, %v2607_v3 }
 0x65e   : > { %2622 = vrot.lane.b32.xlu0 %v2610_v16, %s4571_s27  ;;  %2624 = vrot.lane.b32.xlu1 %v2611_v53, %s4571_s27  ;;  %v5422_v53 = vld [vmem:[%s4689_s16 + $0x18] sm:$0xff] }
 0x65f   : > { %2628 = vrot.lane.b32.xlu2 %v2613_v54, %s4571_s27  ;;  %v5354_v40 = vpop.permute.xlu1 %1605 }
 0x660   : > { %v5359_v60 = vpop.permute.xlu2 %2141  ;;  %v1604_v0 = vpop.permute.xlu0 %1603 }
 0x661   : > { %v1609_v28 = vsel %vm1368_vm15, %v5299_v63, %v1604_v0  ;;  %v1610_v26 = vsel %vm1368_vm15, %v1604_v0, %v5354_v40  ;;  %v1621_v63 = vmul.f32 %v5059_v10, %v1600_v29  ;;  %v5438_v0 = vld [vmem:[%s4689_s16 + $0x38] sm:$0xff]  ;;  %vm6182_vm15 = vmmov %vm6180_vm12 }
 0x662   : > { %v1618_v4 = vmul.f32 %v5072_v48, %v1609_v28  ;;  %v1619_v5 = vmul.f32 %v5064_v11, %v1610_v26  ;;  %v1623_v7 = vmul.f32 %v5086_v21, %v1609_v28  ;;  %v1624_v18 = vmul.f32 %v5079_v62, %v1610_v26 }
 0x663   : > { %v1629_v57 = vpack.c.bf16 %v1622_v17, %v1621_v63 }
 0x664   : > { %v1627_v13 = vpack.c.bf16 %v1619_v5, %v1618_v4  ;;  %v1630_v24 = vpack.c.bf16 %v1624_v18, %v1623_v7 }
 0x666   : > { %2630 = vrot.lane.b32.xlu0 %v2614_v12, %s4571_s27  ;;  %1638 = vrot.lane.b32.xlu1 %v1626_v8, %s4584_s8  ;;  %v5448_v8 = vld [vmem:[%s4689_s16 + $0x30] sm:$0xff] }
 0x667   : > { %1640 = vrot.lane.b32.xlu2 %v1627_v13, %s4584_s8  ;;  %v2233_v15 = vpop.permute.xlu1 %2232  ;;  %v5452_v13 = vld [vmem:[%s4689_s16 + $0x10] sm:$0xff] }
 0x668   : > { %v5375_v58 = vpop.permute.xlu2 %2406  ;;  %v2231_v19 = vpop.permute.xlu0 %2230  ;;  %v2238_v9 = vsel %vm681_vm3, %v2233_v15, %v5326_v2 }
 0x669   : > { %v2236_v20 = vsel %vm681_vm3, %v5308_v46, %v2231_v19  ;;  %v2237_v31 = vsel %vm681_vm3, %v2231_v19, %v2233_v15  ;;  %v2247_v59 = vmul.f32 %v5064_v11, %v2238_v9  ;;  %v2252_v39 = vmul.f32 %v5079_v62, %v2238_v9  ;;  %v5404_v62 = vld [vmem:[%s4689_s16] sm:$0xff] }
 0x66a   : > { %v2245_v1 = vmul.f32 %v5068_v36, %v2236_v20  ;;  %v2246_v33 = vmul.f32 %v5072_v48, %v2237_v31  ;;  %v2250_v34 = vmul.f32 %v5090_v23, %v2236_v20  ;;  %v2251_v41 = vmul.f32 %v5086_v21, %v2237_v31 }
 0x66b   : > { %v2422_v31 = vmul.f32 %v5404_v62, %v5375_v58 }
 0x66c   : > { %v2254_v56 = vpack.c.bf16 %v2245_v1, %v2244_v6  ;;  %v2255_v38 = vpack.c.bf16 %v2247_v59, %v2246_v33  ;;  %v2257_v43 = vpack.c.bf16 %v2250_v34, %v2249_v32  ;;  %v2258_v29 = vpack.c.bf16 %v2252_v39, %v2251_v41  ;;  %v5461_v6 = vld [vmem:[%s4689_s16 + $0x28] sm:$0xff] }
 0x66d   : > { %v2427_v41 = vmul.f32 %v5413_v52, %v5375_v58 }
 0x66e   : > { %1644 = vrot.lane.b32.xlu0 %v1629_v57, %s4584_s8  ;;  %1646 = vrot.lane.b32.xlu1 %v1630_v24, %s4584_s8 }
 0x66f   : > { %2266 = vrot.lane.b32.xlu2 %v2254_v56, %s4575_s12  ;;  %v2498_v22 = vpop.permute.xlu1 %2497 }
 0x670   : > { %v5393_v14 = vpop.permute.xlu2 %2412  ;;  %v2496_v25 = vpop.permute.xlu0 %2495  ;;  %v2504_v11 = vsel %vm458_vm8, %v2498_v22, %v5338_v47 }
 0x671   : > { %v2503_v10 = vsel %vm458_vm8, %v2496_v25, %v2498_v22  ;;  %v2511_v21 = vmul.f32 %v5404_v62, %v2496_v25  ;;  %v2516_v44 = vmul.f32 %v5413_v52, %v2496_v25  ;;  %v2513_v16 = vmul.f32 %v5072_v48, %v2504_v11 }
 0x672   : > { %v2512_v35 = vmul.f32 %v5068_v36, %v2503_v10  ;;  %v2517_v27 = vmul.f32 %v5090_v23, %v2503_v10  ;;  %v2518_v12 = vmul.f32 %v5448_v8, %v2504_v11 }
 0x674   : > { %v2521_v54 = vpack.c.bf16 %v2512_v35, %v2511_v21  ;;  %v2524_v50 = vpack.c.bf16 %v2517_v27, %v2516_v44 }
 0x676   : > { %2268 = vrot.lane.b32.xlu0 %v2255_v38, %s4575_s12  ;;  %2272 = vrot.lane.b32.xlu1 %v2257_v43, %s4575_s12 }
 0x677   : > { %2274 = vrot.lane.b32.xlu2 %v2258_v29, %s4575_s12  ;;  %v2140_v46 = vpop.permute.xlu1 %2139 }
 0x678   : > { %v5408_v45 = vpop.permute.xlu2 %2054  ;;  %v5410_v51 = vpop.permute.xlu0 %2501  ;;  %v2147_v37 = vsel %vm590_vm2, %v2140_v46, %v5359_v60  ;;  %v2155_v48 = vmul.f32 %v5404_v62, %v2140_v46  ;;  %v2160_v19 = vmul.f32 %v5413_v52, %v2140_v46 }
 0x679   : > { %v2505_v30 = vsel %vm458_vm8, %v5338_v47, %v5410_v51  ;;  %v5434_v47 = vld [vmem:[%s4689_s16 + $0x8] sm:$0xff]  ;;  %v2161_v20 = vmul.f32 %v5461_v6, %v2147_v37 }
 0x67a   : > { %v2514_v36 = vmul.f32 %v5422_v53, %v2505_v30  ;;  %v2156_v61 = vmul.f32 %v5434_v47, %v2147_v37  ;;  %v2519_v28 = vmul.f32 %v5438_v0, %v2505_v30 }
 0x67b   : > { %v2168_v32 = vpack.c.bf16 %v2161_v20, %v2160_v19 }
 0x67c   : > { %v2522_v55 = vpack.c.bf16 %v2514_v36, %v2513_v16  ;;  %v2165_v17 = vpack.c.bf16 %v2156_v61, %v2155_v48  ;;  %v2525_v7 = vpack.c.bf16 %v2519_v28, %v2518_v12 }
 0x67e   : > { %2533 = vrot.lane.b32.xlu0 %v2521_v54, %s4572_s28  ;;  %2535 = vrot.lane.b32.xlu1 %v2522_v55, %s4572_s28 }
 0x67f   : > { %2539 = vrot.lane.b32.xlu2 %v2524_v50, %s4572_s28  ;;  %v5430_v23 = vpop.permute.xlu1 %2145 }
 0x680   : > { %v5441_v26 = vpop.permute.xlu2 %1963  ;;  %v2144_v3 = vpop.permute.xlu0 %2143 }
 0x681   : > { %v2148_v4 = vsel %vm590_vm2, %v5359_v60, %v2144_v3  ;;  %v2149_v5 = vsel %vm590_vm2, %v2144_v3, %v5430_v23 }
 0x682   : > { %v2157_v15 = vmul.f32 %v5452_v13, %v2148_v4  ;;  %v2158_v63 = vmul.f32 %v5422_v53, %v2149_v5  ;;  %v2162_v1 = vmul.f32 %v5448_v8, %v2148_v4  ;;  %v2163_v57 = vmul.f32 %v5438_v0, %v2149_v5 }
 0x684   : > { %v2166_v18 = vpack.c.bf16 %v2158_v63, %v2157_v15  ;;  %v2169_v59 = vpack.c.bf16 %v2163_v57, %v2162_v1 }
 0x686   : > { %2541 = vrot.lane.b32.xlu0 %v2525_v7, %s4572_s28  ;;  %2177 = vrot.lane.b32.xlu1 %v2165_v17, %s4579_s23 }
 0x687   : > { %2179 = vrot.lane.b32.xlu2 %v2166_v18, %s4579_s23  ;;  %v2411_v60 = vpop.permute.xlu1 %2410 }
 0x688   : > { %v5466_v24 = vpop.permute.xlu2 %1872  ;;  %v2409_v9 = vpop.permute.xlu0 %2408  ;;  %v2416_v33 = vsel %vm549_vm9, %v2411_v60, %v5393_v14 }
 0x689   : > { %v2414_v56 = vsel %vm549_vm9, %v5375_v58, %v2409_v9  ;;  %v2415_v34 = vsel %vm549_vm9, %v2409_v9, %v2411_v60  ;;  %v2425_v38 = vmul.f32 %v5422_v53, %v2416_v33  ;;  %v2430_v46 = vmul.f32 %v5438_v0, %v2416_v33 }
 0x68a   : > { %v2423_v22 = vmul.f32 %v5434_v47, %v2414_v56  ;;  %v2424_v43 = vmul.f32 %v5452_v13, %v2415_v34  ;;  %v2428_v29 = vmul.f32 %v5461_v6, %v2414_v56  ;;  %v2429_v21 = vmul.f32 %v5448_v8, %v2415_v34 }
 0x68c   : > { %v2432_v25 = vpack.c.bf16 %v2423_v22, %v2422_v31  ;;  %v2433_v35 = vpack.c.bf16 %v2425_v38, %v2424_v43  ;;  %v2435_v44 = vpack.c.bf16 %v2428_v29, %v2427_v41  ;;  %v2436_v27 = vpack.c.bf16 %v2430_v46, %v2429_v21 }
 0x68e   : > { %2183 = vrot.lane.b32.xlu0 %v2168_v32, %s4579_s23  ;;  %2185 = vrot.lane.b32.xlu1 %v2169_v59, %s4579_s23  ;;  %v1888_v32 = vmul.f32 %v5404_v62, %v5466_v24 }
 0x68f   : > { %2444 = vrot.lane.b32.xlu2 %v2432_v25, %s4573_s6  ;;  %v2053_v39 = vpop.permute.xlu1 %2052 }
 0x690   : > { %v5484_v10 = vpop.permute.xlu2 %1878  ;;  %v2051_v11 = vpop.permute.xlu0 %2050  ;;  %v2059_v58 = vsel %vm499_vm4, %v2053_v39, %v5408_v45 }
 0x691   : > { %v2058_v30 = vsel %vm499_vm4, %v2051_v11, %v2053_v39  ;;  %v2066_v36 = vmul.f32 %v5404_v62, %v2051_v11  ;;  %v2071_v37 = vmul.f32 %v5413_v52, %v2051_v11  ;;  %v2068_v28 = vmul.f32 %v5452_v13, %v2059_v58 }
 0x692   : > { %v2067_v54 = vmul.f32 %v5434_v47, %v2058_v30  ;;  %v2072_v48 = vmul.f32 %v5461_v6, %v2058_v30  ;;  %v2073_v1 = vmul.f32 %v5448_v8, %v2059_v58 }
 0x694   : > { %v2076_v4 = vpack.c.bf16 %v2067_v54, %v2066_v36  ;;  %v2079_v12 = vpack.c.bf16 %v2072_v48, %v2071_v37 }
 0x696   : > { %2446 = vrot.lane.b32.xlu0 %v2433_v35, %s4573_s6  ;;  %2450 = vrot.lane.b32.xlu1 %v2435_v44, %s4573_s6 }
 0x697   : > { %2452 = vrot.lane.b32.xlu2 %v2436_v27, %s4573_s6  ;;  %v1962_v16 = vpop.permute.xlu1 %1961  ;;  %v1893_v27 = vmul.f32 %v5413_v52, %v5466_v24 }
 0x698   : > { %v5496_v55 = vpop.permute.xlu2 %1785  ;;  %v5498_v50 = vpop.permute.xlu0 %2056  ;;  %v1969_v15 = vsel %vm408_vm1, %v1962_v16, %v5441_v26  ;;  %v1982_v59 = vmul.f32 %v5413_v52, %v1962_v16 }
 0x699   : > { %v2060_v61 = vsel %vm499_vm4, %v5408_v45, %v5498_v50  ;;  %v1977_v45 = vmul.f32 %v5404_v62, %v1962_v16  ;;  %v1978_v17 = vmul.f32 %v5434_v47, %v1969_v15  ;;  %v1983_v33 = vmul.f32 %v5461_v6, %v1969_v15 }
 0x69a   : > { %v2069_v3 = vmul.f32 %v5422_v53, %v2060_v61  ;;  %v2074_v7 = vmul.f32 %v5438_v0, %v2060_v61 }
 0x69b   : > { %v1987_v31 = vpack.c.bf16 %v1978_v17, %v1977_v45  ;;  %v1990_v29 = vpack.c.bf16 %v1983_v33, %v1982_v59 }
 0x69c   : > { %v2077_v5 = vpack.c.bf16 %v2069_v3, %v2068_v28  ;;  %v2080_v56 = vpack.c.bf16 %v2074_v7, %v2073_v1 }
 0x69e   : > { %2088 = vrot.lane.b32.xlu0 %v2076_v4, %s4576_s17  ;;  %2090 = vrot.lane.b32.xlu1 %v2077_v5, %s4576_s17 }
 0x69f   : > { %2094 = vrot.lane.b32.xlu2 %v2079_v12, %s4576_s17  ;;  %v5512_v63 = vpop.permute.xlu1 %1967 }
 0x6a0   : > { %v5517_v18 = vpop.permute.xlu2 %1692  ;;  %v1966_v60 = vpop.permute.xlu0 %1965 }
 0x6a1   : > { %v1970_v19 = vsel %vm408_vm1, %v5441_v26, %v1966_v60  ;;  %v1971_v20 = vsel %vm408_vm1, %v1966_v60, %v5512_v63 }
 0x6a2   : > { %v1979_v57 = vmul.f32 %v5452_v13, %v1970_v19  ;;  %v1980_v9 = vmul.f32 %v5422_v53, %v1971_v20  ;;  %v1984_v34 = vmul.f32 %v5448_v8, %v1970_v19  ;;  %v1985_v25 = vmul.f32 %v5438_v0, %v1971_v20 }
 0x6a4   : > { %v1988_v22 = vpack.c.bf16 %v1980_v9, %v1979_v57  ;;  %v1991_v11 = vpack.c.bf16 %v1985_v25, %v1984_v34 }
 0x6a6   : > { %2096 = vrot.lane.b32.xlu0 %v2080_v56, %s4576_s17  ;;  %1999 = vrot.lane.b32.xlu1 %v1987_v31, %s4578_s19 }
 0x6a7   : > { %2001 = vrot.lane.b32.xlu2 %v1988_v22, %s4578_s19  ;;  %v1877_v26 = vpop.permute.xlu1 %1876 }
 0x6a8   : > { %v1875_v39 = vpop.permute.xlu0 %1874  ;;  %v5535_v41 = vpop.permute.xlu2 %2355  ;;  %v1882_v21 = vsel %vm316_vm0, %v1877_v26, %v5484_v10 }
 0x6a9   : > { %v1880_v38 = vsel %vm316_vm0, %v5466_v24, %v1875_v39  ;;  %v1881_v35 = vsel %vm316_vm0, %v1875_v39, %v1877_v26  ;;  %v1891_v30 = vmul.f32 %v5422_v53, %v1882_v21  ;;  %v1896_v54 = vmul.f32 %v5438_v0, %v1882_v21 }
 0x6aa   : > { %v1889_v43 = vmul.f32 %v5434_v47, %v1880_v38  ;;  %v1890_v58 = vmul.f32 %v5452_v13, %v1881_v35  ;;  %v1894_v16 = vmul.f32 %v5461_v6, %v1880_v38  ;;  %v1895_v37 = vmul.f32 %v5448_v8, %v1881_v35 }
 0x6ac   : > { %v1898_v46 = vpack.c.bf16 %v1889_v43, %v1888_v32  ;;  %v1899_v61 = vpack.c.bf16 %v1891_v30, %v1890_v58  ;;  %v1901_v28 = vpack.c.bf16 %v1894_v16, %v1893_v27  ;;  %v1902_v3 = vpack.c.bf16 %v1896_v54, %v1895_v37 }
 0x6ad   : > { %v2337_v58 = vmul.f32 0.0, %v5279_v42  ;;  %v2367_v16 = vrot.slane %v5535_v41, 4 }
 0x6ae   : > { %2005 = vrot.lane.b32.xlu0 %v1990_v29, %s4578_s19  ;;  %2007 = vrot.lane.b32.xlu1 %v1991_v11, %s4578_s19 }
 0x6af   : > { %1910 = vrot.lane.b32.xlu2 %v1898_v46, %s4577_s18  ;;  %v1784_v44 = vpop.permute.xlu1 %1783 }
 0x6b0   : > { %v1782_v36 = vpop.permute.xlu0 %1781  ;;  %v5553_v48 = vpop.permute.xlu2 %2363  ;;  %v1791_v24 = vsel %vm1186_vm11, %v1784_v44, %v5496_v55 }
 0x6b1   : > { %v1790_v4 = vsel %vm1186_vm11, %v1782_v36, %v1784_v44  ;;  %v1798_v12 = vmul.f32 %v5404_v62, %v1782_v36  ;;  %v1803_v17 = vmul.f32 %v5413_v52, %v1782_v36  ;;  %v1800_v20 = vmul.f32 %v5452_v13, %v1791_v24 }
 0x6b2   : > { %v1799_v15 = vmul.f32 %v5434_v47, %v1790_v4  ;;  %v1804_v7 = vmul.f32 %v5461_v6, %v1790_v4  ;;  %v1805_v39 = vmul.f32 %v5448_v8, %v1791_v24  ;;  %v2371_v21 = vrot.slane %v5553_v48, 4 }
 0x6b3   : > { %v1483_v4 = vpack.c.bf16 %v5434_v47, %v5404_v62  ;;  %v1485_v24 = vpack.c.bf16 %v5461_v6, %v5413_v52 }
 0x6b4   : > { %v1808_v57 = vpack.c.bf16 %v1799_v15, %v1798_v12  ;;  %v1811_v31 = vpack.c.bf16 %v1804_v7, %v1803_v17 }
 0x6b5   : > { %1487 = vst [vmem:[#allocation3 + $0x1a0] sm:$0xff] %v1483_v4 }
 0x6b6   : > { %1912 = vrot.lane.b32.xlu0 %v1899_v61, %s4577_s18  ;;  %1916 = vrot.lane.b32.xlu1 %v1901_v28, %s4577_s18  ;;  %1489 = vst [vmem:[#allocation3 + $0x1b0] sm:$0xff] %v1485_v24 }
 0x6b7   : > { %1918 = vrot.lane.b32.xlu2 %v1902_v3, %s4577_s18  ;;  %v1691_v5 = vpop.permute.xlu1 %1690  ;;  %v2345_v3 = vpack.c.bf16 %v2337_v58, %v2337_v58  ;;  %v1981_v58 = vmul.f32 0.0, %v5512_v63 }
 0x6b8   : > { %v5563_v45 = vpop.permute.xlu0 %1787  ;;  %v1699_v56 = vsel %vm1277_vm13, %v1691_v5, %v5517_v18 }
 0x6b9   : > { %v5567_v60 = vpop.permute.xlu2 %2628  ;;  %v1792_v19 = vsel %vm1186_vm11, %v5496_v55, %v5563_v45  ;;  %v1707_v55 = vmul.f32 %v5404_v62, %v1691_v5  ;;  %v1708_v32 = vmul.f32 %v5434_v47, %v1699_v56  ;;  %v1713_v44 = vmul.f32 %v5461_v6, %v1699_v56 }
 0x6ba   : > { %v1801_v1 = vmul.f32 %v5422_v53, %v1792_v19  ;;  %v1806_v26 = vmul.f32 %v5438_v0, %v1792_v19  ;;  %v1989_v4 = vpack.c.bf16 %v1981_v58, %v1981_v58  ;;  %v4108_v58 = vld [vmem:[#allocation3 + $0x180] sm:$0xf]  ;;  %vm6179_vm11 = vcmask 973824  }
 0x6bb   : > { %v1717_v29 = vpack.c.bf16 %v1708_v32, %v1707_v55 }
 0x6bc   : > { %v1809_v9 = vpack.c.bf16 %v1801_v1, %v1800_v20  ;;  %v1812_v11 = vpack.c.bf16 %v1806_v26, %v1805_v39  ;;  %v2159_v20 = vmul.f32 0.0, %v5430_v23  ;;  %v2070_v1 = vmul.f32 0.0, %v5498_v50 }
 0x6be   : > { %1820 = vrot.lane.b32.xlu0 %v1808_v57, %s4580_s14  ;;  %1822 = vrot.lane.b32.xlu1 %v1809_v9, %s4580_s14  ;;  %v2167_v50 = vpack.c.bf16 %v2159_v20, %v2159_v20  ;;  %v2078_v39 = vpack.c.bf16 %v2070_v1, %v2070_v1  ;;  %v4422_v20 = vld [vmem:[#allocation3 + $0x1c4] sm:$0xf]  ;;  %v4142_v1 = vld [vmem:[#allocation3 + $0x1d0] sm:$0xf0] }
 0x6bf   : > { %1826 = vrot.lane.b32.xlu2 %v1811_v31, %s4580_s14  ;;  %v5579_v22 = vpop.permute.xlu1 %1696  ;;  %v2637_v31 = vrot.slane %v5567_v60, 4 }
 0x6c0   : > { %v1695_v59 = vpop.permute.xlu0 %1694 }
 0x6c1   : > { %v5584_v33 = vpop.permute.xlu2 %1640  ;;  %v1700_v34 = vsel %vm1277_vm13, %v5517_v18, %v1695_v59  ;;  %v1701_v25 = vsel %vm1277_vm13, %v1695_v59, %v5579_v22  ;;  %v1712_v18 = vmul.f32 %v5413_v52, %v1691_v5  ;;  %v2248_v5 = vmul.f32 0.0, %v5326_v2  ;;  %vm6181_vm13 = vmmov %vm6179_vm11 }
 0x6c2   : > { %v1709_v38 = vmul.f32 %v5452_v13, %v1700_v34  ;;  %v1710_v43 = vmul.f32 %v5422_v53, %v1701_v25  ;;  %v1714_v13 = vmul.f32 %v5448_v8, %v1700_v34  ;;  %v1715_v53 = vmul.f32 %v5438_v0, %v1701_v25 }
 0x6c3   : > { %v1720_v8 = vpack.c.bf16 %v1713_v44, %v1712_v18  ;;  %v2256_v6 = vpack.c.bf16 %v2248_v5, %v2248_v5  ;;  %v1651_v56 = vrot.slane %v5584_v33, 4 }
 0x6c4   : > { %v1718_v46 = vpack.c.bf16 %v1710_v43, %v1709_v38  ;;  %v1721_v28 = vpack.c.bf16 %v1715_v53, %v1714_v13  ;;  %v1620_v38 = vmul.f32 0.0, %v5354_v40 }
 0x6c6   : > { %1828 = vrot.lane.b32.xlu0 %v1812_v11, %s4580_s14  ;;  %1729 = vrot.lane.b32.xlu1 %v1717_v29, %s4582_s26 }
 0x6c7   : > { %1731 = vrot.lane.b32.xlu2 %v1718_v46, %s4582_s26  ;;  %v2362_v35 = vpop.permute.xlu1 %2361 }
 0x6c8   : > { %v2370_v27 = vrot.slane %v2362_v35, 4  ;;  %v5601_v30 = vpop.permute.xlu0 %2357 }
 0x6c9   : > { %v5605_v36 = vpop.permute.xlu2 %2266  ;;  %v2368_v54 = vrot.slane %v5601_v30, 4 }
 0x6ca   : > { %v2377_v37 = vsel %vm365_vm5, %v2370_v27, %v2371_v21  ;;  %v2604_v27 = vmul.f32 0.0, %v5340_v49 }
 0x6cb   : > { %v2378_v61 = vsel %vm590_vm2, %v2362_v35, %v2377_v37  ;;  %v2373_v0 = vsel %vm365_vm5, %v2367_v16, %v2368_v54  ;;  %v1628_v35 = vpack.c.bf16 %v1620_v38, %v1620_v38  ;;  %v4126_v38 = vld [vmem:[#allocation3 + $0x1b0] sm:$0xf0] }
 0x6cc   : > { %2387 = vst [vmem:[#allocation3 + $0x2f0] sm:$0xff] %v2378_v61  ;;  %v2374_v42 = vsel %vm590_vm2, %v5535_v41, %v2373_v0  ;;  %v2278_v61 = vrot.slane %v5605_v36, 4 }
 0x6cd   : > { %2385 = vst [vmem:[#allocation3 + $0x2e0] sm:$0xff] %v2374_v42 }
 0x6ce   : > { %1735 = vrot.lane.b32.xlu0 %v1720_v8, %s4582_s26  ;;  %1737 = vrot.lane.b32.xlu1 %v1721_v28, %s4582_s26 }
 0x6cf   : > { %2359 = vrot.lane.b32.xlu2 %v2345_v3, %s4574_s9 }
 0x6d0   : > { %v5625_v12 = vpop.permute.xlu1 %2624  ;;  %v2623_v41 = vpop.permute.xlu0 %2622 }
 0x6d1   : > { %v2635_v15 = vrot.slane %v5625_v12, 4  ;;  %v5628_v17 = vpop.permute.xlu2 %2274  ;;  %v2634_v62 = vrot.slane %v2623_v41, 4 }
 0x6d2   : > { %v2282_v0 = vrot.slane %v5628_v17, 4 }
 0x6d3   : > { %v2640_v52 = vsel %vm365_vm5, %v2634_v62, %v2635_v15  ;;  %v4460_v47 = vld [vmem:[#allocation3 + $0x2ec] sm:$0xf0] }
 0x6d4   : > { %v2641_v7 = vsel %vm316_vm0, %v2623_v41, %v2640_v52  ;;  %v4284_v19 = vld [vmem:[#allocation3 + $0x2e0] sm:$0xf] }
 0x6d5   : > { %2652 = vst [vmem:[#allocation3 + $0x340] sm:$0xff] %v2641_v7  ;;  %v4285_v2 = vor.u32 %v4460_v47, %v4284_v19  ;;  %v2612_v47 = vpack.c.bf16 %v2604_v27, %v2604_v27  ;;  %v4424_v19 = vld [vmem:[#allocation3 + $0x1cc] sm:$0xf0] }
 0x6d6   : > { %2365 = vrot.lane.b32.xlu0 %v2345_v3, %s4574_s9  ;;  %2270 = vrot.lane.b32.xlu1 %v2256_v6, %s4575_s12 }
 0x6d7   : > { %2276 = vrot.lane.b32.xlu2 %v2256_v6, %s4575_s12  ;;  %3419 = vmatpush.bf16.msra.mxu2 %v4285_v2  ;;  %v4140_v2 = vld [vmem:[#allocation3 + $0x1c0] sm:$0xf] }
 0x6d8   : > { %v1639_v57 = vpop.permute.xlu1 %1638  ;;  %v5639_v9 = vpop.permute.xlu0 %2630 }
 0x6d9   : > { %v1650_v55 = vrot.slane %v1639_v57, 4  ;;  %v5643_v32 = vpop.permute.xlu2 %2539  ;;  %v2638_v26 = vrot.slane %v5639_v9, 4 }
 0x6db   : > { %v1656_v59 = vsel %vm365_vm5, %v1650_v55, %v1651_v56  ;;  %v2644_v23 = vsel %vm365_vm5, %v2637_v31, %v2638_v26  ;;  %v4124_v55 = vld [vmem:[#allocation3 + $0x1a0] sm:$0xf] }
 0x6dc   : > { %v1658_v34 = vsel %vm1318_vm14, %v1639_v57, %v1656_v59  ;;  %v2645_v25 = vsel %vm316_vm0, %v5567_v60, %v2644_v23  ;;  %v4332_v13 = vld [vmem:[#allocation3 + $0x340] sm:$0xf]  ;;  %v4420_v59 = vld [vmem:[#allocation3 + $0x1ac] sm:$0xf0] }
 0x6dd   : > { %1669 = vst [vmem:[#allocation3 + $0x1e0] sm:$0xff] %v1658_v34 }
 0x6de   : > { %2654 = vst [vmem:[#allocation3 + $0x350] sm:$0xff] %v2645_v25  ;;  %2181 = vrot.lane.b32.xlu0 %v2167_v50, %s4579_s23  ;;  %2187 = vrot.lane.b32.xlu1 %v2167_v50, %s4579_s23  ;;  %v4141_v25 = vor.u32 %v4424_v19, %v4140_v2 }
 0x6df   : > { %2092 = vrot.lane.b32.xlu2 %v2078_v39, %s4576_s17 }
 0x6e0   : > { %v5659_v43 = vpop.permute.xlu1 %1646  ;;  %v1645_v29 = vpop.permute.xlu0 %1644 }
 0x6e1   : > { %v1654_v11 = vrot.slane %v5659_v43, 4  ;;  %v5662_v46 = vpop.permute.xlu2 %2179  ;;  %v1653_v18 = vrot.slane %v1645_v29, 4 }
 0x6e3   : > { %v1661_v60 = vsel %vm365_vm5, %v1653_v18, %v1654_v11 }
 0x6e4   : > { %v1662_v44 = vsel %vm1318_vm14, %v1645_v29, %v1661_v60  ;;  %v4156_v63 = vld [vmem:[#allocation3 + $0x1e0] sm:$0xf]  ;;  %v4426_v62 = vld [vmem:[#allocation3 + $0x1e4] sm:$0xf]  ;;  %v4145_v29 = vor.u32 %v4422_v20, %v4142_v1 }
 0x6e5   : > { %1671 = vst [vmem:[#allocation3 + $0x1f0] sm:$0xff] %v1662_v44  ;;  %v4472_v53 = vld [vmem:[#allocation3 + $0x34c] sm:$0xf0]  ;;  %v4092_v1 = vld [vmem:[#allocation3 + $0x160] sm:$0xf] }
 0x6e6   : > { %2098 = vrot.lane.b32.xlu0 %v2078_v39, %s4576_s17  ;;  %1642 = vrot.lane.b32.xlu1 %v1628_v35, %s4584_s8  ;;  %v4333_v40 = vor.u32 %v4472_v53, %v4332_v13  ;;  %v4418_v39 = vld [vmem:[#allocation3 + $0x1a4] sm:$0xf] }
 0x6e7   : > { %1648 = vrot.lane.b32.xlu2 %v1628_v35, %s4584_s8  ;;  %v4129_v13 = vor.u32 %v4418_v39, %v4126_v38  ;;  %v2426_v39 = vmul.f32 0.0, %v5393_v14  ;;  %v4062_v14 = vld [vmem:[#allocation3 + $0x130] sm:$0xf0] }
 0x6e8   : > { %3443 = vmatpush.bf16.msra.mxu3 %v4333_v40  ;;  %v2273_v16 = vpop.permute.xlu1 %2272  ;;  %v5673_v37 = vpop.permute.xlu0 %2268  ;;  %v4416_v40 = vld [vmem:[#allocation3 + $0x18c] sm:$0xf0] }
 0x6e9   : > { %v2281_v8 = vrot.slane %v2273_v16, 4  ;;  %v5677_v28 = vpop.permute.xlu2 %2444  ;;  %v2279_v42 = vrot.slane %v5673_v37, 4 }
 0x6eb   : > { %v2288_v3 = vsel %vm365_vm5, %v2281_v8, %v2282_v0  ;;  %v2284_v49 = vsel %vm365_vm5, %v2278_v61, %v2279_v42  ;;  %v2515_v61 = vmul.f32 0.0, %v5410_v51  ;;  %v1802_v8 = vmul.f32 0.0, %v5563_v45  ;;  %v4412_v51 = vld [vmem:[#allocation3 + $0x16c] sm:$0xf0] }
 0x6ec   : > { %v2289_v24 = vsel %vm681_vm3, %v2273_v16, %v2288_v3  ;;  %v2285_v5 = vsel %vm681_vm3, %v5605_v36, %v2284_v49  ;;  %v4428_v41 = vld [vmem:[#allocation3 + $0x1ec] sm:$0xf0]  ;;  %v4158_v52 = vld [vmem:[#allocation3 + $0x1f0] sm:$0xf0]  ;;  %v1892_v36 = vmul.f32 0.0, %v5484_v10  ;;  %v4125_v10 = vor.u32 %v4420_v59, %v4124_v55 }
 0x6ed   : > { %2298 = vst [vmem:[#allocation3 + $0x2d0] sm:$0xff] %v2289_v24  ;;  %v4157_v6 = vor.u32 %v4428_v41, %v4156_v63  ;;  %v4161_v7 = vor.u32 %v4426_v62, %v4158_v52  ;;  %v4110_v16 = vld [vmem:[#allocation3 + $0x190] sm:$0xf0]  ;;  %v4109_v63 = vor.u32 %v4416_v40, %v4108_v58  ;;  %v2190_v24 = vrot.slane %v5662_v46, 4  ;;  %v4414_v52 = vld [vmem:[#allocation3 + $0x184] sm:$0xf] }
 0x6ee   : > { %2296 = vst [vmem:[#allocation3 + $0x2c0] sm:$0xff] %v2285_v5  ;;  %2003 = vrot.lane.b32.xlu0 %v1989_v4, %s4578_s19  ;;  %2009 = vrot.lane.b32.xlu1 %v1989_v4, %s4578_s19  ;;  %v1900_v60 = vpack.c.bf16 %v1892_v36, %v1892_v36  ;;  %v2548_v4 = vrot.slane %v5643_v32, 4  ;;  %v2523_v19 = vpack.c.bf16 %v2515_v61, %v2515_v61  ;;  %v4410_v55 = vld [vmem:[#allocation3 + $0x164] sm:$0xf] }
 0x6ef   : > { %2626 = vrot.lane.b32.xlu2 %v2612_v47, %s4571_s27  ;;  %3400 = vmatpush.bf16.msra.mxu1 %v4157_v6  ;;  %v1810_v36 = vpack.c.bf16 %v1802_v8, %v1802_v8  ;;  %v4402_v61 = vld [vmem:[#allocation3 + $0x124] sm:$0xf]  ;;  %v4400_v8 = vld [vmem:[#allocation3 + $0x10c] sm:$0xf0] }
 0x6f0   : > { %3476 = vmatpush.bf16.msrb.mxu0 %v4161_v7  ;;  %v5693_v57 = vpop.permute.xlu1 %2535  ;;  %v2534_v31 = vpop.permute.xlu0 %2533  ;;  %v4094_v7 = vld [vmem:[#allocation3 + $0x170] sm:$0xf0] }
 0x6f1   : > { %v6176_v23 = vrot.slane %v5693_v57, 4  ;;  %v5696_v50 = vpop.permute.xlu2 %2452  ;;  %v2545_v34 = vrot.slane %v2534_v31, 4  ;;  %v4097_v59 = vor.u32 %v4410_v55, %v4094_v7  ;;  %v1711_v7 = vmul.f32 0.0, %v5579_v22 }
 0x6f3   : > { %v2551_v18 = vsel %vm365_vm5, %v2545_v34, %v6176_v23  ;;  %3401 = vmatpush.bf16.msra.mxu1 %v4141_v25  ;;  %v4408_v34 = vld [vmem:[#allocation3 + $0x14c] sm:$0xf0]  ;;  %v4078_v25 = vld [vmem:[#allocation3 + $0x150] sm:$0xf0]  ;;  %v4020_v23 = vld [vmem:[#allocation3 + $0xc8] sm:$0xf] }
 0x6f4   : > { %v2552_v35 = vsel %vm408_vm1, %v2534_v31, %v2551_v18  ;;  %3477 = vmatpush.bf16.msrb.mxu0 %v4145_v29  ;;  %v4456_v44 = vld [vmem:[#allocation3 + $0x2cc] sm:$0xf0]  ;;  %v4093_v31 = vor.u32 %v4412_v51, %v4092_v1  ;;  %v4076_v29 = vld [vmem:[#allocation3 + $0x140] sm:$0xf]  ;;  %v4046_v51 = vld [vmem:[#allocation3 + $0x110] sm:$0xf0] }
 0x6f5   : > { %2563 = vst [vmem:[#allocation3 + $0x320] sm:$0xff] %v2552_v35  ;;  %v4268_v53 = vld [vmem:[#allocation3 + $0x2c0] sm:$0xf]  ;;  %v4077_v35 = vor.u32 %v4408_v34, %v4076_v29  ;;  %v2456_v1 = vrot.slane %v5677_v28, 4  ;;  %v4398_v34 = vld [vmem:[#allocation3 + $0x104] sm:$0xf] }
 0x6f6   : > { %2632 = vrot.lane.b32.xlu0 %v2612_v47, %s4571_s27  ;;  %1914 = vrot.lane.b32.xlu1 %v1900_v60, %s4577_s18  ;;  %v4269_v27 = vor.u32 %v4456_v44, %v4268_v53  ;;  %v4113_v47 = vor.u32 %v4414_v52, %v4110_v16  ;;  %v4406_v44 = vld [vmem:[#allocation3 + $0x144] sm:$0xf]  ;;  %v4404_v53 = vld [vmem:[#allocation3 + $0x12c] sm:$0xf0]  ;;  %v4060_v16 = vld [vmem:[#allocation3 + $0x120] sm:$0xf]  ;;  %v4065_v52 = vor.u32 %v4402_v61, %v4062_v14 }
 0x6f7   : > { %1920 = vrot.lane.b32.xlu2 %v1900_v60, %s4577_s18  ;;  %3402 = vmatpush.bf16.msra.mxu1 %v4125_v10  ;;  %v4454_v29 = vld [vmem:[#allocation3 + $0x2c4] sm:$0xf] }
 0x6f8   : > { %3420 = vmatpush.bf16.msra.mxu2 %v4269_v27  ;;  %3478 = vmatpush.bf16.msrb.mxu0 %v4129_v13  ;;  %v2178_v3 = vpop.permute.xlu1 %2177  ;;  %v5707_v49 = vpop.permute.xlu0 %2541  ;;  %v4081_v13 = vor.u32 %v4406_v44, %v4078_v25  ;;  %v2434_v27 = vpack.c.bf16 %v2426_v39, %v2426_v39  ;;  %v4049_v25 = vor.u32 %v4398_v34, %v4046_v51 }
 0x6f9   : > { %v2189_v5 = vrot.slane %v2178_v3, 4  ;;  %v5711_v41 = vpop.permute.xlu2 %2094  ;;  %v6177_v62 = vrot.slane %v5707_v49, 4 }
 0x6fb   : > { %v2195_v45 = vsel %vm365_vm5, %v2189_v5, %v2190_v24  ;;  %v2555_v6 = vsel %vm365_vm5, %v2548_v4, %v6177_v62  ;;  %3403 = vmatpush.bf16.msra.mxu1 %v4109_v63 }
 0x6fc   : > { %v2196_v2 = vsel %vm640_vm7, %v2178_v3, %v2195_v45  ;;  %v2556_v20 = vsel %vm408_vm1, %v5643_v32, %v2555_v6  ;;  %3479 = vmatpush.bf16.msrb.mxu0 %v4113_v47  ;;  %v4061_v3 = vor.u32 %v4404_v53, %v4060_v16  ;;  %v4316_v63 = vld [vmem:[#allocation3 + $0x320] sm:$0xf]  ;;  %v4458_v45 = vld [vmem:[#allocation3 + $0x2e4] sm:$0xf]  ;;  %v4286_v6 = vld [vmem:[#allocation3 + $0x2f0] sm:$0xf0] }
 0x6fd   : > { %2207 = vst [vmem:[#allocation3 + $0x2a0] sm:$0xff] %v2196_v2  ;;  %v4044_v47 = vld [vmem:[#allocation3 + $0x100] sm:$0xf]  ;;  %v4289_v39 = vor.u32 %v4458_v45, %v4286_v6  ;;  %v4359_v45 = vld [vmem:[%s6168_s1 + $0xc] sm:$0xf] }
 0x6fe   : > { %2565 = vst [vmem:[#allocation3 + $0x330] sm:$0xff] %v2556_v20  ;;  %2537 = vrot.lane.b32.xlu0 %v2523_v19, %s4572_s28  ;;  %2543 = vrot.lane.b32.xlu1 %v2523_v19, %s4572_s28  ;;  %v4045_v20 = vor.u32 %v4400_v8, %v4044_v47  ;;  %v3894_v6 = vld [vmem:[%s6168_s1 + $0x18] sm:$0xf0]  ;;  %s6106_s28 = scalar_lea.vmem %s6172_s5, %s4357_s25 }
 0x6ff   : > { %1824 = vrot.lane.b32.xlu2 %v1810_v36, %s4580_s14  ;;  %3404 = vmatpush.bf16.msra.mxu1 %v4093_v31 }
 0x700   : > { %3480 = vmatpush.bf16.msrb.mxu0 %v4097_v59  ;;  %v5727_v32 = vpop.permute.xlu1 %2185  ;;  %v2184_v38 = vpop.permute.xlu0 %2183 }
 0x701   : > { %v2193_v18 = vrot.slane %v5727_v32, 4  ;;  %v5730_v10 = vpop.permute.xlu2 %2001  ;;  %v2192_v60 = vrot.slane %v2184_v38, 4 }
 0x703   : > { %v2199_v40 = vsel %vm365_vm5, %v2192_v60, %v2193_v18  ;;  %3405 = vmatpush.bf16.msra.mxu1 %v4077_v35  ;;  %v4270_v60 = vld [vmem:[#allocation3 + $0x2d0] sm:$0xf0]  ;;  %v1719_v35 = vpack.c.bf16 %v1711_v7, %v1711_v7 }
 0x704   : > { %v2200_v58 = vsel %vm640_vm7, %v2184_v38, %v2199_v40  ;;  %3481 = vmatpush.bf16.msrb.mxu0 %v4081_v13  ;;  %v4252_v53 = vld [vmem:[#allocation3 + $0x2a0] sm:$0xf] }
 0x705   : > { %2209 = vst [vmem:[#allocation3 + $0x2b0] sm:$0xff] %v2200_v58  ;;  %v4468_v4 = vld [vmem:[#allocation3 + $0x32c] sm:$0xf0] }
 0x706   : > { %1830 = vrot.lane.b32.xlu0 %v1810_v36, %s4580_s14  ;;  %2448 = vrot.lane.b32.xlu1 %v2434_v27, %s4573_s6  ;;  %v4317_v5 = vor.u32 %v4468_v4, %v4316_v63  ;;  %v2460_v36 = vrot.slane %v5696_v50, 4  ;;  %v4450_v63 = vld [vmem:[#allocation3 + $0x2a4] sm:$0xf] }
 0x707   : > { %2454 = vrot.lane.b32.xlu2 %v2434_v27, %s4573_s6  ;;  %3406 = vmatpush.bf16.msra.mxu1 %v4061_v3  ;;  %v4273_v27 = vor.u32 %v4454_v29, %v4270_v60 }
 0x708   : > { %3444 = vmatpush.bf16.msra.mxu3 %v4317_v5  ;;  %3482 = vmatpush.bf16.msrb.mxu0 %v4065_v52  ;;  %v2451_v19 = vpop.permute.xlu1 %2450  ;;  %v5740_v2 = vpop.permute.xlu0 %2446  ;;  %v4030_v52 = vld [vmem:[#allocation3 + $0xf0] sm:$0xf0] }
 0x709   : > { %v2459_v31 = vrot.slane %v2451_v19, 4  ;;  %v5744_v55 = vpop.permute.xlu2 %1910  ;;  %v6175_v59 = vrot.slane %v5740_v2, 4 }
 0x70b   : > { %v2466_v22 = vsel %vm365_vm5, %v2459_v31, %v2460_v36  ;;  %v2462_v38 = vsel %vm365_vm5, %v2456_v1, %v6175_v59  ;;  %3407 = vmatpush.bf16.msra.mxu1 %v4045_v20  ;;  %v4394_v20 = vld [vmem:[#allocation3 + $0xe4] sm:$0xf]  ;;  %v5773_v31 = vor.u32 %v4359_v45, %v3894_v6  ;;  %v3982_v45 = vld [vmem:[#allocation3 + $0x90] sm:$0xf0] }
 0x70c   : > { %v2467_v44 = vsel %vm499_vm4, %v2451_v19, %v2466_v22  ;;  %v2463_v13 = vsel %vm499_vm4, %v5677_v28, %v2462_v38  ;;  %3483 = vmatpush.bf16.msrb.mxu0 %v4049_v25  ;;  %v4452_v40 = vld [vmem:[#allocation3 + $0x2ac] sm:$0xf0]  ;;  %v4254_v58 = vld [vmem:[#allocation3 + $0x2b0] sm:$0xf0]  ;;  %v4033_v1 = vor.u32 %v4394_v20, %v4030_v52  ;;  %v2103_v22 = vrot.slane %v5711_v41, 4 }
 0x70d   : > { %2476 = vst [vmem:[#allocation3 + $0x310] sm:$0xff] %v2467_v44  ;;  %v4253_v14 = vor.u32 %v4452_v40, %v4252_v53  ;;  %v4257_v4 = vor.u32 %v4450_v63, %v4254_v58  ;;  %v2012_v38 = vrot.slane %v5730_v10, 4  ;;  %v4390_v44 = vld [vmem:[#allocation3 + $0xc4] sm:$0xf]  ;;  %v3998_v58 = vld [vmem:[#allocation3 + $0xb0] sm:$0xf0] }
 0x70e   : > { %2474 = vst [vmem:[#allocation3 + $0x300] sm:$0xff] %v2463_v13  ;;  %1733 = vrot.lane.b32.xlu0 %v1719_v35, %s4582_s26  ;;  %1739 = vrot.lane.b32.xlu1 %v1719_v35, %s4582_s26  ;;  %v4386_v63 = vld [vmem:[#allocation3 + $0xa4] sm:$0xf]  ;;  %v3886_v52 = vld [vmem:[%s6168_s1 + $0x10] sm:$0xf0] }
 0x70f   : > { %3495 = vmatpush.bf16.msrb.mxu1 %v4289_v39  ;;  %3421 = vmatpush.bf16.msra.mxu2 %v4253_v14  ;;  %v4014_v39 = vld [vmem:[#allocation3 + $0xd0] sm:$0xf0] }
 0x710   : > { %v5758_v16 = vpop.permute.xlu1 %2090  ;;  %v2089_v61 = vpop.permute.xlu0 %2088  ;;  %v4017_v40 = vor.u32 %v4390_v44, %v4014_v39 }
 0x711   : > { %v2101_v28 = vrot.slane %v5758_v16, 4  ;;  %v5761_v8 = vpop.permute.xlu2 %1918  ;;  %v2100_v3 = vrot.slane %v2089_v61, 4 }
 0x713   : > { %3496 = vmatpush.bf16.msrb.mxu1 %v4273_v27  ;;  %v2106_v5 = vsel %vm365_vm5, %v2100_v3, %v2101_v28  ;;  %v4360_v3 = vld [vmem:[%s6168_s1 + $0xc] sm:$0xf0] }
 0x714   : > { %v2107_v47 = vsel %vm549_vm9, %v2089_v61, %v2106_v5  ;;  %v4464_v51 = vld [vmem:[#allocation3 + $0x30c] sm:$0xf0]  ;;  %v3884_v61 = vld [vmem:[%s6168_s1] sm:$0xf]  ;;  %v4001_v5 = vor.u32 %v4386_v63, %v3998_v58 }
 0x715   : > { %2118 = vst [vmem:[#allocation3 + $0x280] sm:$0xff] %v2107_v47  ;;  %v4300_v7 = vld [vmem:[#allocation3 + $0x300] sm:$0xf] }
 0x716   : > { %v4301_v19 = vor.u32 %v4464_v51, %v4300_v7 }
 0x717   : > { %3497 = vmatpush.bf16.msrb.mxu1 %v4257_v4  ;;  %v5799_v4 = vor.u32 %v4360_v3, %v3884_v61  ;;  %v4378_v3 = vld [vmem:[#allocation3 + $0x64] sm:$0xf] }
 0x718   : > { %3445 = vmatpush.bf16.msra.mxu3 %v4301_v19  ;;  %v2000_v34 = vpop.permute.xlu1 %1999  ;;  %v5775_v25 = vpop.permute.xlu0 %2096 }
 0x719   : > { %v2011_v29 = vrot.slane %v2000_v34, 4  ;;  %v5779_v60 = vpop.permute.xlu2 %1826  ;;  %v2104_v35 = vrot.slane %v5775_v25, 4  ;;  %3389 = vmatmul.bf16.vlgmr.msra.gmra.mxu0 %v5799_v4 }
 0x71b   : > { %v2017_v13 = vsel %vm365_vm5, %v2011_v29, %v2012_v38  ;;  %v2110_v53 = vsel %vm365_vm5, %v2103_v22, %v2104_v35  ;;  %4346 = vmatmul.msk.bf16.vlgmr.msra.gmra.mxu3 %vm3374_vm10, %v5773_v31  ;;  %v3966_v22 = vld [vmem:[#allocation3 + $0x70] sm:$0xf0]  ;;  %v4363_v29 = vld [vmem:[%s6168_s1 + $0x2c] sm:$0xf] }
 0x71c   : > { %3457 = vmatpush.bf16.msrb.mxu3 %v4033_v1  ;;  %v2018_v14 = vsel %vm458_vm8, %v2000_v34, %v2017_v13  ;;  %v2111_v27 = vsel %vm549_vm9, %v5711_v41, %v2110_v53  ;;  %v4358_v41 = vld [vmem:[%s6168_s1 + $0x4] sm:$0xf]  ;;  %v4236_v13 = vld [vmem:[#allocation3 + $0x280] sm:$0xf]  ;;  %v3969_v63 = vor.u32 %v4378_v3, %v3966_v22 }
 0x71d   : > { %2029 = vst [vmem:[#allocation3 + $0x260] sm:$0xff] %v2018_v14  ;;  %v5810_v6 = vor.u32 %v4358_v41, %v3886_v52  ;;  %v4382_v1 = vld [vmem:[#allocation3 + $0x84] sm:$0xf] }
 0x71e   : > { %2120 = vst [vmem:[#allocation3 + $0x290] sm:$0xff] %v2111_v27  ;;  %v3985_v39 = vor.u32 %v4382_v1, %v3982_v45  ;;  %v4446_v53 = vld [vmem:[#allocation3 + $0x284] sm:$0xf]  ;;  %v1922_v45 = vrot.slane %v5744_v55, 4 }
 0x71f   : > { %3408 = vmatmul.bf16.vlgmr.msra.gmra.mxu1 %v5810_v6 }
 0x720   : > { %3458 = vmatpush.bf16.msrb.mxu3 %v4017_v40  ;;  %v5807_v47 = vpop.permute.xlu1 %2007  ;;  %v2006_v51 = vpop.permute.xlu0 %2005  ;;  %v3910_v40 = vld [vmem:[%s6168_s1 + $0x38] sm:$0xf0] }
 0x721   : > { %v2015_v7 = vrot.slane %v5807_v47, 4  ;;  %v5813_v19 = vpop.permute.xlu2 %1731  ;;  %v2014_v20 = vrot.slane %v2006_v51, 4 }
 0x723   : > { %v2021_v34 = vsel %vm365_vm5, %v2014_v20, %v2015_v7  ;;  %v1926_v20 = vrot.slane %v5761_v8, 4 }
 0x724   : > { %3459 = vmatpush.bf16.msrb.mxu3 %v4001_v5  ;;  %v2022_v44 = vsel %vm458_vm8, %v2006_v51, %v2021_v34  ;;  %v5826_v5 = vor.u32 %v4363_v29, %v3910_v40  ;;  %v3950_v51 = vld [vmem:[#allocation3 + $0x50] sm:$0xf0]  ;;  %v4220_v40 = vld [vmem:[#allocation3 + $0x260] sm:$0xf] }
 0x725   : > { %2031 = vst [vmem:[#allocation3 + $0x270] sm:$0xff] %v2022_v44  ;;  %v4448_v14 = vld [vmem:[#allocation3 + $0x28c] sm:$0xf0]  ;;  %v4238_v27 = vld [vmem:[#allocation3 + $0x290] sm:$0xf0] }
 0x726   : > { %v4237_v58 = vor.u32 %v4448_v14, %v4236_v13  ;;  %v4241_v61 = vor.u32 %v4446_v53, %v4238_v27  ;;  %v4374_v13 = vld [vmem:[#allocation3 + $0x44] sm:$0xf]  ;;  %v3934_v14 = vld [vmem:[#allocation3 + $0x30] sm:$0xf0] }
 0x727   : > { %v3953_v53 = vor.u32 %v4374_v13, %v3950_v51 }
 0x728   : > { %3460 = vmatpush.bf16.msrb.mxu3 %v3985_v39  ;;  %3422 = vmatpush.bf16.msra.mxu2 %v4237_v58  ;;  %v1917_v41 = vpop.permute.xlu1 %1916  ;;  %v5828_v52 = vpop.permute.xlu0 %1912 }
 0x729   : > { %3498 = vmatpush.bf16.msrb.mxu1 %v4241_v61  ;;  %v1925_v1 = vrot.slane %v1917_v41, 4  ;;  %v2360_v34 = vpop.permute.xlu2 %2359  ;;  %v1923_v39 = vrot.slane %v5828_v52, 4 }
 0x72a   : > { %v2369_v44 = vrot.slane %v2360_v34, 4 }
 0x72b   : > { %v1932_v22 = vsel %vm365_vm5, %v1925_v1, %v1926_v20  ;;  %v1928_v29 = vsel %vm365_vm5, %v1922_v45, %v1923_v39  ;;  %4347 = vmatmul.msk.bf16.gmra.mxu3 %vm3374_vm10, %v5826_v5 }
 0x72c   : > { %3461 = vmatpush.bf16.msrb.mxu3 %v3969_v63  ;;  %v1933_v27 = vsel %vm367_vm6, %v1917_v41, %v1932_v22  ;;  %v2375_v58 = vsel %vm365_vm5, %v2368_v54, %v2369_v44  ;;  %v1929_v61 = vsel %vm367_vm6, %v5744_v55, %v1928_v29  ;;  %v4444_v3 = vld [vmem:[#allocation3 + $0x26c] sm:$0xf0]  ;;  %v4442_v63 = vld [vmem:[#allocation3 + $0x264] sm:$0xf]  ;;  %v4222_v1 = vld [vmem:[#allocation3 + $0x270] sm:$0xf0] }
 0x72d   : > { %1942 = vst [vmem:[#allocation3 + $0x250] sm:$0xff] %v1933_v27  ;;  %v2376_v51 = vsel %vm590_vm2, %v5601_v30, %v2375_v58  ;;  %v4221_v45 = vor.u32 %v4444_v3, %v4220_v40  ;;  %v4225_v34 = vor.u32 %v4442_v63, %v4222_v1  ;;  %v3900_v41 = vld [vmem:[%s6168_s1 + $0x20] sm:$0xf]  ;;  %v4364_v54 = vld [vmem:[%s6168_s1 + $0x2c] sm:$0xf0] }
 0x72e   : > { %2386 = vst [vmem:[#allocation3 + $0x2e8] sm:$0xff] %v2376_v51  ;;  %v4370_v55 = vld [vmem:[#allocation3 + $0x24] sm:$0xf]  ;;  %v5855_v44 = vor.u32 %v4364_v54, %v3900_v41  ;;  %v3902_v22 = vld [vmem:[%s6168_s1 + $0x30] sm:$0xf0] }
 0x72f   : > { %1940 = vst [vmem:[#allocation3 + $0x240] sm:$0xff] %v1929_v61  ;;  %3423 = vmatpush.bf16.msra.mxu2 %v4221_v45  ;;  %3499 = vmatpush.bf16.msrb.mxu1 %v4225_v34  ;;  %v3937_v13 = vor.u32 %v4370_v55, %v3934_v14  ;;  %v4362_v30 = vld [vmem:[%s6168_s1 + $0x24] sm:$0xf]  ;;  %v3918_v40 = vld [vmem:[#allocation3 + $0x10] sm:$0xf0] }
 0x730   : > { %3462 = vmatpush.bf16.msrb.mxu3 %v3953_v53  ;;  %v5863_v29 = vpop.permute.xlu1 %1822  ;;  %v1821_v53 = vpop.permute.xlu0 %1820  ;;  %3394 = vmatmul.bf16.gmra.mxu0 %v5855_v44  ;;  %v5866_v27 = vor.u32 %v4362_v30, %v3902_v22  ;;  %v4397_v3 = vld [vmem:[#allocation3 + $0xf4] sm:$0xf0]  ;;  %v4366_v1 = vld [vmem:[#allocation3 + $0x4] sm:$0xf]  ;;  %v4036_v34 = vld [vmem:[#allocation3 + $0xe8] sm:$0xf] }
 0x731   : > { %v1833_v58 = vrot.slane %v5863_v29, 4  ;;  %v2277_v61 = vpop.permute.xlu2 %2276  ;;  %v1832_v14 = vrot.slane %v1821_v53, 4  ;;  %v3921_v45 = vor.u32 %v4366_v1, %v3918_v40  ;;  %v4037_v55 = vor.u32 %v4397_v3, %v4036_v34  ;;  %v4389_v34 = vld [vmem:[#allocation3 + $0xb4] sm:$0xf0] }
 0x732   : > { %v2283_v63 = vrot.slane %v2277_v61, 4  ;;  %3413 = vmatmul.bf16.gmra.mxu1 %v5866_v27  ;;  %v4393_v61 = vld [vmem:[#allocation3 + $0xd4] sm:$0xf0]  ;;  %v1835_v3 = vrot.slane %v5779_v60, 4 }
 0x733   : > { %v1838_v51 = vsel %vm365_vm5, %v1832_v14, %v1833_v58 }
 0x734   : > { %3463 = vmatpush.bf16.msrb.mxu3 %v3937_v13  ;;  %v2290_v41 = vsel %vm365_vm5, %v2282_v0, %v2283_v63  ;;  %v1840_v54 = vsel %vm6179_vm11, %v1821_v53, %v1838_v51  ;;  %v4440_v13 = vld [vmem:[#allocation3 + $0x24c] sm:$0xf0]  ;;  %v4206_v30 = vld [vmem:[#allocation3 + $0x250] sm:$0xf0]  ;;  %v4021_v53 = vor.u32 %v4393_v61, %v4020_v23  ;;  %v6178_v63 = vrot.slane %v5813_v19, 4 }
 0x735   : > { %v2291_v22 = vsel %vm681_vm3, %v5628_v17, %v2290_v41  ;;  %1851 = vst [vmem:[#allocation3 + $0x220] sm:$0xff] %v1840_v54 }
 0x736   : > { %2299 = vst [vmem:[#allocation3 + $0x2d8] sm:$0xff] %v2291_v22  ;;  %v4204_v14 = vld [vmem:[#allocation3 + $0x240] sm:$0xf]  ;;  %v4438_v40 = vld [vmem:[#allocation3 + $0x244] sm:$0xf] }
 0x737   : > { %v4205_v1 = vor.u32 %v4440_v13, %v4204_v14  ;;  %v4209_v59 = vor.u32 %v4438_v40, %v4206_v30  ;;  %v4385_v14 = vld [vmem:[#allocation3 + $0x94] sm:$0xf0]  ;;  %v3988_v40 = vld [vmem:[#allocation3 + $0x88] sm:$0xf] }
 0x738   : > { %3464 = vmatpush.bf16.msrb.mxu3 %v3921_v45  ;;  %v1730_v62 = vpop.permute.xlu1 %1729  ;;  %v5879_v0 = vpop.permute.xlu0 %1828 }
 0x739   : > { %3424 = vmatpush.bf16.msra.mxu2 %v4205_v1  ;;  %3500 = vmatpush.bf16.msrb.mxu1 %v4209_v59  ;;  %v1741_v17 = vrot.slane %v1730_v62, 4  ;;  %v2093_v51 = vpop.permute.xlu2 %2092  ;;  %v1836_v45 = vrot.slane %v5879_v0, 4 }
 0x73a   : > { %v2102_v41 = vrot.slane %v2093_v51, 4  ;;  %v4588_v51 = vmov 0  }
 0x73b   : > { %v1747_v54 = vsel %vm365_vm5, %v1741_v17, %v6178_v63  ;;  %v1843_v23 = vsel %vm365_vm5, %v1835_v3, %v1836_v45  ;;  %3465 = vmatmul.bf16.vlgmr.msrb.gmra.mxu3 %v5799_v4  ;;  %v4381_v17 = vld [vmem:[#allocation3 + $0x74] sm:$0xf0]  ;;  %4525 = vset.pattern.permute.xlu0 %v4588_v51 }
 0x73c   : > { %3533 = vmatpush.bf16.msra.mxu3 %v4037_v55  ;;  %v4004_v55 = vld [vmem:[#allocation3 + $0xa8] sm:$0xf]  ;;  %v1749_v59 = vsel %vm6180_vm12, %v1730_v62, %v1747_v54  ;;  %v2108_v13 = vsel %vm365_vm5, %v2101_v28, %v2102_v41  ;;  %v1844_v30 = vsel %vm6181_vm13, %v5779_v60, %v1843_v23  ;;  %4526 = vset.pattern.permute.xlu1 %v4588_v51 }
 0x73d   : > { %v4005_v22 = vor.u32 %v4389_v34, %v4004_v55  ;;  %1760 = vst [vmem:[#allocation3 + $0x200] sm:$0xff] %v1749_v59  ;;  %v2109_v61 = vsel %vm549_vm9, %v5758_v16, %v2108_v13  ;;  %v2773_v16 = vld [vmem:[%s6169_s2 + $0x8] sm:$0xff]  ;;  %4524 = vset.pattern.permute.xlu2 %v4588_v51  ;;  %v4377_v13 = vld [vmem:[#allocation3 + $0x54] sm:$0xf0] }
 0x73e   : > { %2119 = vst [vmem:[#allocation3 + $0x288] sm:$0xff] %v2109_v61  ;;  %2783 = vperm.xlu0 %4525, %v2773_v16   ;;  %v3972_v54 = vld [vmem:[#allocation3 + $0x68] sm:$0xf]  ;;  %v4434_v61 = vld [vmem:[#allocation3 + $0x224] sm:$0xf]  ;;  %v4545_v51 = vld [vmem:[%s4689_s16 + $0x38] sm:$0xff] }
 0x73f   : > { %1853 = vst [vmem:[#allocation3 + $0x230] sm:$0xff] %v1844_v30  ;;  %v3973_v59 = vor.u32 %v4381_v17, %v3972_v54  ;;  %v3956_v17 = vld [vmem:[#allocation3 + $0x48] sm:$0xf] }
 0x740   : > { %3534 = vmatpush.bf16.msra.mxu3 %v4021_v53  ;;  %v5899_v1 = vpop.permute.xlu1 %1737  ;;  %v1736_v62 = vpop.permute.xlu0 %1735  ;;  %v3989_v53 = vor.u32 %v4385_v14, %v3988_v40  ;;  %3484 = vmatmul.bf16.vlgmr.msrb.gmra.mxu0 %v5810_v6  ;;  %v3957_v63 = vor.u32 %v4377_v13, %v3956_v17 }
 0x741   : > { %v1745_v28 = vrot.slane %v5899_v1, 4  ;;  %v1649_v3 = vpop.permute.xlu2 %1648  ;;  %v1744_v60 = vrot.slane %v1736_v62, 4 }
 0x742   : > { %v1655_v34 = vrot.slane %v1649_v3, 4  ;;  %v4544_v3 = vld [vmem:[%s4689_s16 + $0x10] sm:$0xff] }
 0x743   : > { %v1752_v41 = vsel %vm365_vm5, %v1744_v60, %v1745_v28 }
 0x744   : > { %3535 = vmatpush.bf16.msra.mxu3 %v4005_v22  ;;  %v1663_v23 = vsel %vm365_vm5, %v1654_v11, %v1655_v34  ;;  %v1753_v55 = vsel %vm6182_vm15, %v1736_v62, %v1752_v41  ;;  %v4188_v22 = vld [vmem:[#allocation3 + $0x220] sm:$0xf]  ;;  %v4546_v11 = vld [vmem:[%s4689_s16 + $0x30] sm:$0xff] }
 0x745   : > { %v1664_v30 = vsel %vm1318_vm14, %v5659_v43, %v1663_v23  ;;  %1762 = vst [vmem:[#allocation3 + $0x210] sm:$0xff] %v1753_v55  ;;  %v1486_v16 = vpack.c.bf16 %v4545_v51, %v4546_v11  ;;  %v4430_v11 = vld [vmem:[#allocation3 + $0x204] sm:$0xf] }
 0x746   : > { %1672 = vst [vmem:[#allocation3 + $0x1f8] sm:$0xff] %v1664_v30  ;;  %v4436_v14 = vld [vmem:[#allocation3 + $0x22c] sm:$0xf0]  ;;  %v4190_v40 = vld [vmem:[#allocation3 + $0x230] sm:$0xf0] }
 0x747   : > { %v4189_v34 = vor.u32 %v4436_v14, %v4188_v22  ;;  %v4193_v62 = vor.u32 %v4434_v61, %v4190_v40  ;;  %1490 = vst [vmem:[#allocation3 + $0x1b8] sm:$0xff] %v1486_v16  ;;  %v4172_v61 = vld [vmem:[#allocation3 + $0x200] sm:$0xf]  ;;  %v3892_v14 = vld [vmem:[%s6168_s1 + $0x8] sm:$0xf] }
 0x748   : > { %3536 = vmatpush.bf16.msra.mxu3 %v3989_v53  ;;  %v4543_v53 = vld [vmem:[%s4689_s16 + $0x18] sm:$0xff]  ;;  %v2271_v41 = vpop.permute.xlu1 %2270  ;;  %v2366_v54 = vpop.permute.xlu0 %2365 }
 0x749   : > { %v1484_v60 = vpack.c.bf16 %v4543_v53, %v4544_v3  ;;  %3425 = vmatpush.bf16.msra.mxu2 %v4189_v34  ;;  %3501 = vmatpush.bf16.msrb.mxu1 %v4193_v62  ;;  %v2280_v43 = vrot.slane %v2271_v41, 4  ;;  %v2627_v23 = vpop.permute.xlu2 %2626  ;;  %v2372_v55 = vrot.slane %v2366_v54, 4  ;;  %v3940_v53 = vld [vmem:[#allocation3 + $0x28] sm:$0xf]  ;;  %v4334_v3 = vld [vmem:[#allocation3 + $0x350] sm:$0xf0] }
 0x74a   : > { %v2636_v30 = vrot.slane %v2627_v23, 4  ;;  %v4361_v40 = vld [vmem:[%s6168_s1 + $0x14] sm:$0xf0]  ;;  %v4470_v41 = vld [vmem:[#allocation3 + $0x344] sm:$0xf] }
 0x74b   : > { %1488 = vst [vmem:[#allocation3 + $0x1a8] sm:$0xff] %v1484_v60  ;;  %v2286_v22 = vsel %vm365_vm5, %v2279_v42, %v2280_v43  ;;  %v2379_v13 = vsel %vm365_vm5, %v2371_v21, %v2372_v55  ;;  %3470 = vmatmul.bf16.gmra.mxu3 %v5855_v44  ;;  %v4369_v54 = vld [vmem:[#allocation3 + $0x14] sm:$0xf0]  ;;  %v5941_v43 = vor.u32 %v4361_v40, %v3892_v14  ;;  %v4318_v23 = vld [vmem:[#allocation3 + $0x330] sm:$0xf0] }
 0x74c   : > { %3537 = vmatpush.bf16.msra.mxu3 %v3973_v59  ;;  %v4373_v59 = vld [vmem:[#allocation3 + $0x34] sm:$0xf0]  ;;  %v2642_v42 = vsel %vm365_vm5, %v2635_v15, %v2636_v30  ;;  %v2380_v21 = vsel %vm590_vm2, %v5553_v48, %v2379_v13  ;;  %v4432_v51 = vld [vmem:[#allocation3 + $0x20c] sm:$0xf0]  ;;  %v4174_v16 = vld [vmem:[#allocation3 + $0x210] sm:$0xf0] }
 0x74d   : > { %v3941_v60 = vor.u32 %v4373_v59, %v3940_v53  ;;  %v2643_v34 = vsel %vm316_vm0, %v5625_v12, %v2642_v42  ;;  %v4173_v62 = vor.u32 %v4432_v51, %v4172_v61  ;;  %v4177_v17 = vor.u32 %v4430_v11, %v4174_v16  ;;  %v4038_v15 = vld [vmem:[#allocation3 + $0xf8] sm:$0xf0]  ;;  %2388 = vst [vmem:[#allocation3 + $0x2f8] sm:$0xff] %v2380_v21  ;;  %v3924_v48 = vld [vmem:[#allocation3 + $0x8] sm:$0xf]  ;;  %v2774_v55 = vld [vmem:[%s6169_s2 + $0x10] sm:$0xff] }
 0x74e   : > { %2653 = vst [vmem:[#allocation3 + $0x348] sm:$0xff] %v2643_v34  ;;  %v3925_v30 = vor.u32 %v4369_v54, %v3924_v48  ;;  %v4395_v53 = vld [vmem:[#allocation3 + $0xec] sm:$0xf]  ;;  %2788 = vperm.xlu1 %4526, %v2774_v55   ;;  %v4466_v14 = vld [vmem:[#allocation3 + $0x324] sm:$0xf]  ;;  %vm6183_vm2 = vmmov %vm6179_vm11 }
 0x74f   : > { %3426 = vmatpush.bf16.msra.mxu2 %v4173_v62  ;;  %3502 = vmatpush.bf16.msrb.mxu1 %v4177_v17  ;;  %v4041_v61 = vor.u32 %v4395_v53, %v4038_v15  ;;  %v4022_v42 = vld [vmem:[#allocation3 + $0xd8] sm:$0xf0]  ;;  %v4462_v51 = vld [vmem:[#allocation3 + $0x304] sm:$0xf]  ;;  %v4302_v11 = vld [vmem:[#allocation3 + $0x310] sm:$0xf0] }
 0x750   : > { %3538 = vmatpush.bf16.msra.mxu3 %v3957_v63  ;;  %v2287_v63 = vsel %vm681_vm3, %v5673_v37, %v2286_v22  ;;  %v4337_v37 = vor.u32 %v4470_v41, %v4334_v3  ;;  %v2188_v12 = vpop.permute.xlu1 %2187  ;;  %v2182_v59 = vpop.permute.xlu0 %2181  ;;  %3489 = vmatmul.bf16.gmra.mxu0 %v5866_v27  ;;  %v4006_v41 = vld [vmem:[#allocation3 + $0xb8] sm:$0xf0]  ;;  %v4292_v54 = vld [vmem:[#allocation3 + $0x2e8] sm:$0xf]  ;;  %v4305_v15 = vor.u32 %v4462_v51, %v4302_v11 }
 0x751   : > { %2297 = vst [vmem:[#allocation3 + $0x2c8] sm:$0xff] %v2287_v63  ;;  %v2194_v22 = vrot.slane %v2188_v12, 4  ;;  %v1921_v3 = vpop.permute.xlu2 %1920  ;;  %v2191_v13 = vrot.slane %v2182_v59, 4  ;;  %v4321_v63 = vor.u32 %v4466_v14, %v4318_v23  ;;  %v4387_v23 = vld [vmem:[#allocation3 + $0xac] sm:$0xf] }
 0x752   : > { %v1927_v40 = vrot.slane %v1921_v3, 4  ;;  %3427 = vmatmul.bf16.vlgmr.msra.gmra.mxu2 %v5941_v43  ;;  %3503 = vmatmul.bf16.vlgmr.msrb.gmra.mxu1 %v5941_v43  ;;  %v3990_v3 = vld [vmem:[#allocation3 + $0x98] sm:$0xf0] }
 0x753   : > { %3519 = vmatpush.bf16.msrb.mxu2 %v4337_v37  ;;  %v2201_v21 = vsel %vm365_vm5, %v2193_v18, %v2194_v22  ;;  %v4391_v18 = vld [vmem:[#allocation3 + $0xcc] sm:$0xf]  ;;  %v4457_v22 = vld [vmem:[#allocation3 + $0x2d4] sm:$0xf0] }
 0x754   : > { %3539 = vmatpush.bf16.msra.mxu3 %v3941_v60  ;;  %v2197_v60 = vsel %vm365_vm5, %v2190_v24, %v2191_v13  ;;  %v2202_v16 = vsel %vm640_vm7, %v5727_v32, %v2201_v21  ;;  %v1934_v34 = vsel %vm365_vm5, %v1926_v20, %v1927_v40  ;;  %v4025_v17 = vor.u32 %v4391_v18, %v4022_v42  ;;  %v4461_v37 = vld [vmem:[#allocation3 + $0x2f4] sm:$0xf0]  ;;  %v2772_v32 = vld [vmem:[%s6169_s2] sm:$0xff]  ;;  %v3908_v40 = vld [vmem:[%s6168_s1 + $0x28] sm:$0xf] }
 0x755   : > { %v2198_v62 = vsel %vm640_vm7, %v5662_v46, %v2197_v60  ;;  %2210 = vst [vmem:[#allocation3 + $0x2b8] sm:$0xff] %v2202_v16  ;;  %v1935_v24 = vsel %vm367_vm6, %v5761_v8, %v1934_v34  ;;  %v4293_v20 = vor.u32 %v4461_v37, %v4292_v54  ;;  %2778 = vperm.xlu2 %4524, %v2772_v32   ;;  %v4383_v21 = vld [vmem:[#allocation3 + $0x8c] sm:$0xf]  ;;  %v3974_v34 = vld [vmem:[#allocation3 + $0x78] sm:$0xf0] }
 0x756   : > { %1943 = vst [vmem:[#allocation3 + $0x258] sm:$0xff] %v1935_v24  ;;  %v3993_v11 = vor.u32 %v4383_v21, %v3990_v3  ;;  %v4379_v18 = vld [vmem:[#allocation3 + $0x6c] sm:$0xf] }
 0x757   : > { %3520 = vmatpush.bf16.msrb.mxu2 %v4321_v63  ;;  %2208 = vst [vmem:[#allocation3 + $0x2a8] sm:$0xff] %v2198_v62  ;;  %3571 = vmatpush.bf16.msra.mxu1 %v4293_v20  ;;  %v4365_v63 = vld [vmem:[%s6168_s1 + $0x34] sm:$0xf0]  ;;  %v3977_v54 = vor.u32 %v4379_v18, %v3974_v34 }
 0x758   : > { %3540 = vmatpush.bf16.msra.mxu3 %v3925_v30  ;;  %v1643_v46 = vpop.permute.xlu1 %1642  ;;  %v2099_v48 = vpop.permute.xlu0 %2098  ;;  %v4276_v55 = vld [vmem:[#allocation3 + $0x2c8] sm:$0xf]  ;;  %v4009_v30 = vor.u32 %v4387_v23, %v4006_v41  ;;  %v4375_v23 = vld [vmem:[#allocation3 + $0x4c] sm:$0xf] }
 0x759   : > { %v1652_v8 = vrot.slane %v1643_v46, 4  ;;  %v1825_v12 = vpop.permute.xlu2 %1824  ;;  %v2105_v59 = vrot.slane %v2099_v48, 4  ;;  %v4277_v14 = vor.u32 %v4457_v22, %v4276_v55  ;;  %v4371_v22 = vld [vmem:[#allocation3 + $0x2c] sm:$0xf] }
 0x75a   : > { %v1834_v53 = vrot.slane %v1825_v12, 4 }
 0x75b   : > { %3521 = vmatpush.bf16.msrb.mxu2 %v4305_v15  ;;  %v1659_v13 = vsel %vm365_vm5, %v1651_v56, %v1652_v8  ;;  %3541 = vmatmul.bf16.vlgmr.msra.gmra.mxu3 %v5799_v4 }
 0x75c   : > { %3609 = vmatpush.bf16.msrb.mxu3 %v4041_v61  ;;  %v2112_v61 = vsel %vm365_vm5, %v2104_v35, %v2105_v59  ;;  %v1660_v42 = vsel %vm1318_vm14, %v5584_v33, %v1659_v13  ;;  %v1841_v56 = vsel %vm365_vm5, %v1833_v58, %v1834_v53  ;;  %v4453_v60 = vld [vmem:[#allocation3 + $0x2b4] sm:$0xf0]  ;;  %3572 = vmatpush.bf16.msra.mxu1 %v4277_v14  ;;  %v3942_v59 = vld [vmem:[#allocation3 + $0x38] sm:$0xf0]  ;;  %v4148_v13 = vld [vmem:[#allocation3 + $0x1c8] sm:$0xf] }
 0x75d   : > { %v2113_v35 = vsel %vm549_vm9, %v5775_v25, %v2112_v61  ;;  %1670 = vst [vmem:[#allocation3 + $0x1e8] sm:$0xff] %v1660_v42  ;;  %v1842_v51 = vsel %vm6183_vm2, %v5863_v29, %v1841_v56  ;;  %v5989_v33 = vor.u32 %v4365_v63, %v3908_v40  ;;  %v3958_v29 = vld [vmem:[#allocation3 + $0x58] sm:$0xf0]  ;;  %v4132_v61 = vld [vmem:[#allocation3 + $0x1a8] sm:$0xf]  ;;  %v3945_v63 = vor.u32 %v4371_v22, %v3942_v59 }
 0x75e   : > { %1852 = vst [vmem:[#allocation3 + $0x228] sm:$0xff] %v1842_v51  ;;  %v4260_v16 = vld [vmem:[#allocation3 + $0x2a8] sm:$0xf]  ;;  %v3961_v8 = vor.u32 %v4375_v23, %v3958_v29  ;;  %v4421_v14 = vld [vmem:[#allocation3 + $0x1b4] sm:$0xf0] }
 0x75f   : > { %2121 = vst [vmem:[#allocation3 + $0x298] sm:$0xff] %v2113_v35  ;;  %v4261_v58 = vor.u32 %v4453_v60, %v4260_v16  ;;  %v2775_v56 = vld [vmem:[%s6169_s2 + $0x18] sm:$0xff]  ;;  %v4133_v51 = vor.u32 %v4421_v14, %v4132_v61 }
 0x760   : > { %3610 = vmatpush.bf16.msrb.mxu3 %v4025_v17  ;;  %v2010_v62 = vpop.permute.xlu1 %2009  ;;  %v2004_v25 = vpop.permute.xlu0 %2003  ;;  %v3926_v35 = vld [vmem:[#allocation3 + $0x18] sm:$0xf0]  ;;  %2793 = vperm.xlu2 %4524, %v2775_v56   ;;  %v4413_v23 = vld [vmem:[#allocation3 + $0x174] sm:$0xf0] }
 0x761   : > { %3573 = vmatpush.bf16.msra.mxu1 %v4261_v58  ;;  %v2016_v24 = vrot.slane %v2010_v62, 4  ;;  %v2455_v17 = vpop.permute.xlu2 %2454  ;;  %v2013_v41 = vrot.slane %v2004_v25, 4  ;;  %v4367_v58 = vld [vmem:[#allocation3 + $0xc] sm:$0xf]  ;;  %v4166_v25 = vld [vmem:[#allocation3 + $0x1f8] sm:$0xf0] }
 0x762   : > { %v2461_v37 = vrot.slane %v2455_v17, 4  ;;  %3432 = vmatmul.bf16.gmra.mxu2 %v5989_v33  ;;  %3508 = vmatmul.bf16.gmra.mxu1 %v5989_v33  ;;  %v4409_v14 = vld [vmem:[#allocation3 + $0x154] sm:$0xf0] }
 0x763   : > { %v2023_v15 = vsel %vm365_vm5, %v2015_v7, %v2016_v24  ;;  %v2019_v32 = vsel %vm365_vm5, %v2012_v38, %v2013_v41  ;;  %v4429_v7 = vld [vmem:[#allocation3 + $0x1f4] sm:$0xf0]  ;;  %v4150_v41 = vld [vmem:[#allocation3 + $0x1d8] sm:$0xf0] }
 0x764   : > { %3611 = vmatpush.bf16.msrb.mxu3 %v4009_v30  ;;  %v2024_v20 = vsel %vm458_vm8, %v5807_v47, %v2023_v15  ;;  %v2468_v46 = vsel %vm365_vm5, %v2460_v36, %v2461_v37  ;;  %v2020_v48 = vsel %vm458_vm8, %v5730_v10, %v2019_v32  ;;  %v4164_v55 = vld [vmem:[#allocation3 + $0x1e8] sm:$0xf]  ;;  %v4425_v30 = vld [vmem:[#allocation3 + $0x1d4] sm:$0xf0]  ;;  %v4423_v37 = vld [vmem:[#allocation3 + $0x1cc] sm:$0xf] }
 0x765   : > { %2032 = vst [vmem:[#allocation3 + $0x278] sm:$0xff] %v2024_v20  ;;  %v2469_v38 = vsel %vm499_vm4, %v5696_v50, %v2468_v46  ;;  %v4165_v12 = vor.u32 %v4429_v7, %v4164_v55  ;;  %v4244_v47 = vld [vmem:[#allocation3 + $0x288] sm:$0xf]  ;;  %v4149_v42 = vor.u32 %v4425_v30, %v4148_v13  ;;  %v4417_v24 = vld [vmem:[#allocation3 + $0x194] sm:$0xf0]  ;;  %v6184_v55 = vrot.slane %v5707_v49, 4 }
 0x766   : > { %2477 = vst [vmem:[#allocation3 + $0x318] sm:$0xff] %v2469_v38  ;;  %v4449_v53 = vld [vmem:[#allocation3 + $0x294] sm:$0xf0]  ;;  %v4419_v20 = vld [vmem:[#allocation3 + $0x1ac] sm:$0xf]  ;;  %v6185_v38 = vrot.slane %v5693_v57, 4 }
 0x767   : > { %2030 = vst [vmem:[#allocation3 + $0x268] sm:$0xff] %v2020_v48  ;;  %3552 = vmatpush.bf16.msra.mxu0 %v4165_v12  ;;  %v4245_v36 = vor.u32 %v4449_v53, %v4244_v47  ;;  %v4134_v46 = vld [vmem:[#allocation3 + $0x1b8] sm:$0xf0]  ;;  %v6027_v48 = vor.u32 %v4423_v37, %v4150_v41  ;;  %v4100_v30 = vld [vmem:[#allocation3 + $0x168] sm:$0xf] }
 0x768   : > { %3612 = vmatpush.bf16.msrb.mxu3 %v3993_v11  ;;  %v1915_v10 = vpop.permute.xlu1 %1914  ;;  %v2633_v3 = vpop.permute.xlu0 %2632  ;;  %v4427_v11 = vld [vmem:[#allocation3 + $0x1ec] sm:$0xf]  ;;  %v4441_v53 = vld [vmem:[#allocation3 + $0x254] sm:$0xf0]  ;;  %v4101_v22 = vor.u32 %v4413_v23, %v4100_v30 }
 0x769   : > { %3574 = vmatpush.bf16.msra.mxu1 %v4245_v36  ;;  %v1924_v40 = vrot.slane %v1915_v10, 4  ;;  %v2639_v50 = vrot.slane %v2633_v3, 4  ;;  %v6040_v36 = vor.u32 %v4419_v20, %v4134_v46  ;;  %v4340_v3 = vld [vmem:[#allocation3 + $0x348] sm:$0xf]  ;;  %v6188_v46 = vrot.slane %v5813_v19, 4 }
 0x76b   : > { %v1930_v21 = vsel %vm365_vm5, %v1923_v39, %v1924_v40  ;;  %v2646_v60 = vsel %vm365_vm5, %v2638_v26, %v2639_v50  ;;  %3553 = vmatpush.bf16.msra.mxu0 %v4149_v42  ;;  %3546 = vmatmul.bf16.gmra.mxu3 %v5855_v44  ;;  %v3929_v39 = vor.u32 %v4367_v58, %v3926_v35  ;;  %v4084_v50 = vld [vmem:[#allocation3 + $0x148] sm:$0xf]  ;;  %v4415_v35 = vld [vmem:[#allocation3 + $0x18c] sm:$0xf] }
 0x76c   : > { %3613 = vmatpush.bf16.msrb.mxu3 %v3977_v54  ;;  %v1931_v16 = vsel %vm367_vm6, %v5828_v52, %v1930_v21  ;;  %v2647_v34 = vsel %vm316_vm0, %v5639_v9, %v2646_v60  ;;  %v4445_v62 = vld [vmem:[#allocation3 + $0x274] sm:$0xf0]  ;;  %v6022_v26 = vor.u32 %v4427_v11, %v4166_v25  ;;  %v4116_v54 = vld [vmem:[#allocation3 + $0x188] sm:$0xf]  ;;  %v4085_v56 = vor.u32 %v4409_v14, %v4084_v50  ;;  %vm6187_vm0 = vmmov %vm6183_vm2 }
 0x76d   : > { %1941 = vst [vmem:[#allocation3 + $0x248] sm:$0xff] %v1931_v16  ;;  %v4117_v32 = vor.u32 %v4417_v24, %v4116_v54  ;;  %v4405_v60 = vld [vmem:[#allocation3 + $0x134] sm:$0xf0]  ;;  %v4052_v54 = vld [vmem:[#allocation3 + $0x108] sm:$0xf] }
 0x76e   : > { %2655 = vst [vmem:[#allocation3 + $0x358] sm:$0xff] %v2647_v34  ;;  %v4228_v18 = vld [vmem:[#allocation3 + $0x268] sm:$0xf]  ;;  %v4102_v34 = vld [vmem:[#allocation3 + $0x178] sm:$0xf0] }
 0x76f   : > { %3554 = vmatpush.bf16.msra.mxu0 %v4133_v51  ;;  %v4229_v17 = vor.u32 %v4445_v62, %v4228_v18  ;;  %v6186_v51 = vrot.slane %v5740_v2, 4 }
 0x770   : > { %3614 = vmatpush.bf16.msrb.mxu3 %v3961_v8  ;;  %v2544_v52 = vpop.permute.xlu1 %2543  ;;  %v2538_v9 = vpop.permute.xlu0 %2537 }
 0x771   : > { %3575 = vmatpush.bf16.msra.mxu1 %v4229_v17  ;;  %v2550_v29 = vrot.slane %v2544_v52, 4  ;;  %v2547_v15 = vrot.slane %v2538_v9, 4  ;;  %v4411_v17 = vld [vmem:[#allocation3 + $0x16c] sm:$0xf]  ;;  %v4401_v52 = vld [vmem:[#allocation3 + $0x114] sm:$0xf0] }
 0x772   : > { %4348 = vmatmul.msk.bf16.vlgmr.msrb.gmra.mxu2 %vm3374_vm10, %v5773_v31  ;;  %v6057_v41 = vor.u32 %v4411_v17, %v4102_v34  ;;  %v4262_v34 = vld [vmem:[#allocation3 + $0x2b8] sm:$0xf0] }
 0x773   : > { %v2557_v7 = vsel %vm365_vm5, %v6184_v55, %v2550_v29  ;;  %v2553_v8 = vsel %vm365_vm5, %v6185_v38, %v2547_v15  ;;  %3555 = vmatpush.bf16.msra.mxu0 %v4117_v32  ;;  %v4053_v15 = vor.u32 %v4401_v52, %v4052_v54  ;;  %v4407_v32 = vld [vmem:[#allocation3 + $0x14c] sm:$0xf] }
 0x774   : > { %3615 = vmatpush.bf16.msrb.mxu3 %v3945_v63  ;;  %v2558_v12 = vsel %vm408_vm1, %v5707_v49, %v2557_v7  ;;  %v2554_v59 = vsel %vm408_vm1, %v5693_v57, %v2553_v8  ;;  %v4212_v47 = vld [vmem:[#allocation3 + $0x248] sm:$0xf]  ;;  %v4118_v49 = vld [vmem:[#allocation3 + $0x198] sm:$0xf0]  ;;  %v4403_v55 = vld [vmem:[#allocation3 + $0x12c] sm:$0xf] }
 0x775   : > { %2566 = vst [vmem:[#allocation3 + $0x338] sm:$0xff] %v2558_v12  ;;  %v4213_v10 = vor.u32 %v4441_v53, %v4212_v47  ;;  %v4473_v13 = vld [vmem:[#allocation3 + $0x354] sm:$0xf0]  ;;  %v6043_v21 = vor.u32 %v4415_v35, %v4118_v49  ;;  %v4070_v7 = vld [vmem:[#allocation3 + $0x138] sm:$0xf0]  ;;  %vm6189_vm1 = vmmov %vm6180_vm12 }
 0x776   : > { %2564 = vst [vmem:[#allocation3 + $0x328] sm:$0xff] %v2554_v59  ;;  %v4341_v61 = vor.u32 %v4473_v13, %v4340_v3  ;;  %vm6190_vm3 = vmmov %vm6189_vm1  ;;  %v4465_v59 = vld [vmem:[#allocation3 + $0x314] sm:$0xf0]  ;;  %v4342_v30 = vld [vmem:[#allocation3 + $0x358] sm:$0xf0] }
 0x777   : > { %3556 = vmatpush.bf16.msra.mxu0 %v4101_v22  ;;  %3576 = vmatpush.bf16.msra.mxu1 %v4213_v10  ;;  %v4073_v10 = vor.u32 %v4403_v55, %v4070_v7  ;;  %v4471_v3 = vld [vmem:[#allocation3 + $0x34c] sm:$0xf]  ;;  %v4054_v13 = vld [vmem:[#allocation3 + $0x118] sm:$0xf0] }
 0x778   : > { %3616 = vmatpush.bf16.msrb.mxu3 %v3929_v39  ;;  %3595 = vmatpush.bf16.msra.mxu2 %v4341_v61  ;;  %v2449_v57 = vpop.permute.xlu1 %2448  ;;  %v1831_v40 = vpop.permute.xlu0 %1830  ;;  %v4068_v39 = vld [vmem:[#allocation3 + $0x128] sm:$0xf]  ;;  %v4399_v61 = vld [vmem:[#allocation3 + $0x10c] sm:$0xf] }
 0x779   : > { %v2458_v63 = vrot.slane %v2449_v57, 4  ;;  %v1837_v42 = vrot.slane %v1831_v40, 4  ;;  %v4069_v18 = vor.u32 %v4405_v60, %v4068_v39  ;;  %v4057_v14 = vor.u32 %v4399_v61, %v4054_v13  ;;  %v4294_v40 = vld [vmem:[#allocation3 + $0x2f8] sm:$0xf0]  ;;  %v4443_v39 = vld [vmem:[#allocation3 + $0x26c] sm:$0xf] }
 0x77a   : > { %v4310_v60 = vld [vmem:[#allocation3 + $0x318] sm:$0xf0]  ;;  %v4439_v17 = vld [vmem:[#allocation3 + $0x24c] sm:$0xf] }
 0x77b   : > { %v2464_v11 = vsel %vm365_vm5, %v6186_v51, %v2458_v63  ;;  %v1845_v16 = vsel %vm365_vm5, %v1836_v45, %v1837_v42  ;;  %3557 = vmatpush.bf16.msra.mxu0 %v4085_v56  ;;  %3617 = vmatmul.bf16.vlgmr.msrb.gmra.mxu3 %v5799_v4  ;;  %v4459_v56 = vld [vmem:[#allocation3 + $0x2ec] sm:$0xf] }
 0x77c   : > { %4474 = vmatpush.bf16.msra.mxu3 %v6022_v26  ;;  %v2465_v58 = vsel %vm499_vm4, %v5740_v2, %v2464_v11  ;;  %v1846_v62 = vsel %vm6187_vm0, %v5879_v0, %v1845_v16  ;;  %v4469_v25 = vld [vmem:[#allocation3 + $0x334] sm:$0xf0]  ;;  %v4086_v2 = vld [vmem:[#allocation3 + $0x158] sm:$0xf0]  ;;  %v4297_v35 = vor.u32 %v4459_v56, %v4294_v40  ;;  %v4455_v51 = vld [vmem:[#allocation3 + $0x2cc] sm:$0xf] }
 0x77d   : > { %2475 = vst [vmem:[#allocation3 + $0x308] sm:$0xff] %v2465_v58  ;;  %v4324_v24 = vld [vmem:[#allocation3 + $0x328] sm:$0xf]  ;;  %v4089_v4 = vor.u32 %v4407_v32, %v4086_v2  ;;  %v4278_v11 = vld [vmem:[#allocation3 + $0x2d8] sm:$0xf0] }
 0x77e   : > { %1854 = vst [vmem:[#allocation3 + $0x238] sm:$0xff] %v1846_v62  ;;  %v4325_v45 = vor.u32 %v4469_v25, %v4324_v24  ;;  %v4451_v16 = vld [vmem:[#allocation3 + $0x2ac] sm:$0xf]  ;;  %v4246_v58 = vld [vmem:[#allocation3 + $0x298] sm:$0xf0] }
 0x77f   : > { %3558 = vmatpush.bf16.msra.mxu0 %v4069_v18  ;;  %v4230_v25 = vld [vmem:[#allocation3 + $0x278] sm:$0xf0]  ;;  %v4435_v2 = vld [vmem:[#allocation3 + $0x22c] sm:$0xf] }
 0x780   : > { %4475 = vmatpush.bf16.msra.mxu3 %v6027_v48  ;;  %3596 = vmatpush.bf16.msra.mxu2 %v4325_v45  ;;  %v1740_v0 = vpop.permute.xlu1 %1739  ;;  %v1734_v9 = vpop.permute.xlu0 %1733  ;;  %v4233_v24 = vor.u32 %v4443_v39, %v4230_v25  ;;  %v4214_v45 = vld [vmem:[#allocation3 + $0x258] sm:$0xf0] }
 0x781   : > { %v1746_v37 = vrot.slane %v1740_v0, 4  ;;  %v1743_v29 = vrot.slane %v1734_v9, 4 }
 0x782   : > { %4349 = vmatmul.msk.bf16.gmra.mxu2 %vm3374_vm10, %v5826_v5 }
 0x783   : > { %v1754_v20 = vsel %vm365_vm5, %v1745_v28, %v1746_v37  ;;  %v1750_v23 = vsel %vm365_vm5, %v6188_v46, %v1743_v29  ;;  %3559 = vmatpush.bf16.msra.mxu0 %v4053_v15  ;;  %v4196_v28 = vld [vmem:[#allocation3 + $0x228] sm:$0xf] }
 0x784   : > { %4476 = vmatpush.bf16.msra.mxu3 %v6040_v36  ;;  %v1755_v38 = vsel %vm6189_vm1, %v5899_v1, %v1754_v20  ;;  %v1751_v8 = vsel %vm6190_vm3, %v5813_v19, %v1750_v23  ;;  %v4308_v12 = vld [vmem:[#allocation3 + $0x308] sm:$0xf]  ;;  %v4345_v1 = vor.u32 %v4471_v3, %v4342_v30  ;;  %v4467_v19 = vld [vmem:[#allocation3 + $0x32c] sm:$0xf] }
 0x785   : > { %1763 = vst [vmem:[#allocation3 + $0x218] sm:$0xff] %v1755_v38  ;;  %v4437_v47 = vld [vmem:[#allocation3 + $0x234] sm:$0xf0]  ;;  %v4309_v53 = vor.u32 %v4465_v59, %v4308_v12  ;;  %v4463_v63 = vld [vmem:[#allocation3 + $0x30c] sm:$0xf] }
 0x786   : > { %1761 = vst [vmem:[#allocation3 + $0x208] sm:$0xff] %v1751_v8  ;;  %3560 = vmatmul.bf16.vlgmr.msra.gmra.mxu0 %v5810_v6  ;;  %v4197_v22 = vor.u32 %v4437_v47, %v4196_v28  ;;  %v4198_v52 = vld [vmem:[#allocation3 + $0x238] sm:$0xf0] }
 0x787   : > { %3628 = vmatpush.bf16.msrb.mxu0 %v6022_v26  ;;  %3597 = vmatpush.bf16.msra.mxu2 %v4309_v53  ;;  %v4326_v26 = vld [vmem:[#allocation3 + $0x338] sm:$0xf0]  ;;  %v4201_v0 = vor.u32 %v4435_v2, %v4198_v52 }
 0x788   : > { %4477 = vmatpush.bf16.msra.mxu3 %v6043_v21  ;;  %3577 = vmatpush.bf16.msra.mxu1 %v4197_v22  ;;  %v4329_v49 = vor.u32 %v4467_v19, %v4326_v26 }
 0x78b   : > { %3629 = vmatpush.bf16.msrb.mxu0 %v6027_v48  ;;  %3671 = vmatpush.bf16.msrb.mxu2 %v4345_v1  ;;  %v4313_v48 = vor.u32 %v4463_v63, %v4310_v60 }
 0x78c   : > { %4478 = vmatpush.bf16.msra.mxu3 %v6057_v41  ;;  %v4433_v57 = vld [vmem:[#allocation3 + $0x214] sm:$0xf0] }
 0x78d   : > { %v4180_v50 = vld [vmem:[#allocation3 + $0x208] sm:$0xf]  ;;  %3622 = vmatmul.bf16.gmra.mxu3 %v5855_v44  ;;  %v4265_v44 = vor.u32 %v4451_v16, %v4262_v34  ;;  %v4431_v9 = vld [vmem:[#allocation3 + $0x20c] sm:$0xf] }
 0x78e   : > { %v4181_v42 = vor.u32 %v4433_v57, %v4180_v50 }
 0x78f   : > { %3630 = vmatpush.bf16.msrb.mxu0 %v6040_v36  ;;  %3672 = vmatpush.bf16.msrb.mxu2 %v4329_v49  ;;  %v4281_v36 = vor.u32 %v4455_v51, %v4278_v11 }
 0x790   : > { %4479 = vmatpush.bf16.msra.mxu3 %v4089_v4  ;;  %3578 = vmatpush.bf16.msra.mxu1 %v4181_v42 }
 0x792   : > { %4350 = vmatmul.msk.bf16.vlgmr.msra.gmra.mxu2 %vm3374_vm10, %v5773_v31 }
 0x793   : > { %3631 = vmatpush.bf16.msrb.mxu0 %v6043_v21  ;;  %3673 = vmatpush.bf16.msrb.mxu2 %v4313_v48  ;;  %v4447_v21 = vld [vmem:[#allocation3 + $0x28c] sm:$0xf] }
 0x794   : > { %4480 = vmatpush.bf16.msra.mxu3 %v4073_v10  ;;  %3647 = vmatpush.bf16.msrb.mxu1 %v4297_v35  ;;  %v4249_v62 = vor.u32 %v4447_v21, %v4246_v58 }
 0x795   : > { %3579 = vmatmul.bf16.vlgmr.msra.gmra.mxu1 %v5941_v43 }
 0x796   : > { %3565 = vmatmul.bf16.gmra.mxu0 %v5866_v27  ;;  %v3390_v15 = vpop.f32.mrf.mxu0 }
 0x797   : > { %3632 = vmatpush.bf16.msrb.mxu0 %v6057_v41  ;;  %v4217_v41 = vor.u32 %v4439_v17, %v4214_v45 }
 0x798   : > { %4481 = vmatpush.bf16.msra.mxu3 %v4057_v14  ;;  %3648 = vmatpush.bf16.msrb.mxu1 %v4281_v36 }
 0x79b   : > { %3633 = vmatpush.bf16.msrb.mxu0 %v4089_v4 }
 0x79c   : > { %3649 = vmatpush.bf16.msrb.mxu1 %v4265_v44  ;;  %v3409_v4 = vpop.f32.mrf.mxu1 }
 0x79d   : > { %3641 = vmatmul.bf16.vlgmr.msra.gmra.mxu3 %v5866_v27  ;;  %v4182_v27 = vld [vmem:[#allocation3 + $0x218] sm:$0xf0] }
 0x79e   : > { %v3447_v18 = vpop.f32.mrf.mxu3  ;;  %v4185_v37 = vor.u32 %v4431_v9, %v4182_v27  ;;  %v3392_v20 = vpop.f32.mrf.mxu0 }
 0x79f   : > { %3634 = vmatpush.bf16.msrb.mxu0 %v4073_v10 }
 0x7a0   : > { %3650 = vmatpush.bf16.msrb.mxu1 %v4249_v62 }
 0x7a2   : > { %4351 = vmatmul.msk.bf16.gmra.mxu2 %vm3374_vm10, %v5826_v5 }
 0x7a3   : > { %3635 = vmatpush.bf16.msrb.mxu0 %v4057_v14 }
 0x7a4   : > { %3651 = vmatpush.bf16.msrb.mxu1 %v4233_v24  ;;  %v3411_v23 = vpop.f32.mrf.mxu1 }
 0x7a5   : > { %3584 = vmatmul.bf16.gmra.mxu1 %v5989_v33 }
 0x7a6   : > { %3636 = vmatmul.bf16.vlgmr.msrb.gmra.mxu0 %v5810_v6  ;;  %v3449_v54 = vpop.f32.mrf.mxu3 }
 0x7a8   : > { %3652 = vmatpush.bf16.msrb.mxu1 %v4217_v41 }
 0x7ac   : > { %3653 = vmatpush.bf16.msrb.mxu1 %v4201_v0 }
 0x7ad   : > { %v3395_v55 = vpop.f32.mrf.mxu0 }
 0x7ae   : > { %v3452_v29 = vpop.f32.mrf.mxu3 }
 0x7af   : > { %v6094_v46 = vpop.permute.xlu2 %2778  ;;  %v3414_v12 = vpop.f32.mrf.mxu1 }
 0x7b0   : > { %3654 = vmatpush.bf16.msrb.mxu1 %v4185_v37  ;;  %v6097_v8 = vpop.permute.xlu0 %2783 }
 0x7b1   : > { %v3393_v28 = vadd.f32 %v3392_v20, %v6097_v8 }
 0x7b2   : > { %4352 = vmatmul.msk.bf16.vlgmr.msrb.gmra.mxu2 %vm3374_vm10, %v5773_v31 }
 0x7b3   : > { %v3412_v3 = vadd.f32 %v3411_v23, %v3393_v28 }
 0x7b5   : > { %3655 = vmatmul.bf16.vlgmr.msrb.gmra.mxu1 %v5941_v43  ;;  %v3391_v43 = vadd.f32 %v3390_v15, %v6094_v46  ;;  %v3397_v30 = vpop.f32.mrf.mxu0 }
 0x7b6   : > { %v3454_v32 = vpop.f32.mrf.mxu3 }
 0x7b7   : > { %v3410_v31 = vadd.f32 %v3409_v4, %v3391_v43  ;;  %v3416_v26 = vpop.f32.mrf.mxu1 }
 0x7ba   : > { %v6115_v42 = vpop.permute.xlu2 %2793 }
 0x7bb   : > { %v3398_v60 = vadd.f32 %v3397_v30, %v6115_v42 }
 0x7bd   : > { %v3485_v14 = vpop.f32.mrf.mxu0  ;;  %v3417_v34 = vadd.f32 %v3416_v26, %v3398_v60 }
 0x7be   : > { %v3466_v6 = vpop.f32.mrf.mxu3 }
 0x7bf   : > { %v3467_v36 = vadd.f32 %v3466_v6, %v6094_v46 }
 0x7c0   : > { %v6109_v22 = vpop.permute.xlu1 %2788 }
 0x7c1   : > { %v3396_v19 = vadd.f32 %v3395_v55, %v6109_v22  ;;  %v3486_v62 = vadd.f32 %v3485_v14, %v3467_v36 }
 0x7c2   : > { %4353 = vmatmul.msk.bf16.gmra.mxu2 %vm3374_vm10, %v5826_v5 }
 0x7c3   : > { %v3415_v57 = vadd.f32 %v3414_v12, %v3396_v19 }
 0x7c5   : > { %3660 = vmatmul.bf16.gmra.mxu1 %v5989_v33  ;;  %v6100_v33 = vstv %s3685_s13  ;;  %v3487_v11 = vpop.f32.mrf.mxu0 }
 0x7c6   : > { %v3468_v7 = vpop.f32.mrf.mxu3 }
 0x7cd   : > { %v3490_v41 = vpop.f32.mrf.mxu0 }
 0x7ce   : > { %v3471_v53 = vpop.f32.mrf.mxu3 }
 0x7cf   : > { %v3504_v48 = vpop.f32.mrf.mxu1 }
 0x7d0   : > { %v3505_v24 = vadd.f32 %v3504_v48, %v3486_v62 }
 0x7d5   : > { %v3428_v38 = vpop.f32.mrf.mxu2  ;;  %v3492_v4 = vpop.f32.mrf.mxu0 }
 0x7d6   : > { %v3429_v59 = vadd.f32 %v3428_v38, %v3410_v31  ;;  %v3473_v50 = vpop.f32.mrf.mxu3 }
 0x7d7   : > { %v3506_v17 = vpop.f32.mrf.mxu1 }
 0x7d8   : > { %v3448_v5 = vadd.f32 %v3447_v18, %v3429_v59  ;;  %v3469_v18 = vadd.f32 %v3468_v7, %v6097_v8  ;;  %v3474_v7 = vadd.f32 %v3473_v50, %v6115_v42 }
 0x7da   : > { %vm3686_vm4 = vcmp.ge.f32.partialorder %v3448_v5, 0.0  ;;  %v3703_v47 = vmul.f32 %v6100_v33, %v3448_v5  ;;  %v3488_v0 = vadd.f32 %v3487_v11, %v3469_v18  ;;  %v3493_v30 = vadd.f32 %v3492_v4, %v3474_v7 }
 0x7dc   : > { %v3719_v10 = vsel %vm3686_vm4, %v3448_v5, %v3703_v47  ;;  %v3507_v37 = vadd.f32 %v3506_v17, %v3488_v0 }
 0x7dd   : > { %3735 = vst [vmem:[%s6106_s28] sm:$0xff] %v3719_v10  ;;  %v3430_v1 = vpop.f32.mrf.mxu2 }
 0x7de   : > { %v3431_v13 = vadd.f32 %v3430_v1, %v3412_v3  ;;  %v3542_v21 = vpop.f32.mrf.mxu3 }
 0x7e0   : > { %v3450_v61 = vadd.f32 %v3449_v54, %v3431_v13  ;;  %v3543_v13 = vadd.f32 %v3542_v21, %v6094_v46 }
 0x7e2   : > { %vm3690_vm5 = vcmp.ge.f32.partialorder %v3450_v61, 0.0  ;;  %v3707_v49 = vmul.f32 %v6100_v33, %v3450_v61 }
 0x7e4   : > { %v3723_v40 = vsel %vm3690_vm5, %v3450_v61, %v3707_v49 }
 0x7e5   : > { %3739 = vst [vmem:[%s6106_s28 + $0x20] sm:$0xff] %v3723_v40  ;;  %v3433_v63 = vpop.f32.mrf.mxu2 }
 0x7e6   : > { %v3434_v56 = vadd.f32 %v3433_v63, %v3415_v57  ;;  %v3544_v27 = vpop.f32.mrf.mxu3 }
 0x7e8   : > { %v3453_v35 = vadd.f32 %v3452_v29, %v3434_v56  ;;  %v3472_v29 = vadd.f32 %v3471_v53, %v6109_v22 }
 0x7ea   : > { %vm3694_vm6 = vcmp.ge.f32.partialorder %v3453_v35, 0.0  ;;  %v3711_v51 = vmul.f32 %v6100_v33, %v3453_v35  ;;  %v3491_v6 = vadd.f32 %v3490_v41, %v3472_v29 }
 0x7ec   : > { %v3727_v16 = vsel %vm3694_vm6, %v3453_v35, %v3711_v51  ;;  %v3545_v35 = vadd.f32 %v3544_v27, %v6097_v8 }
 0x7ed   : > { %3743 = vst [vmem:[%s6106_s28 + $0x40] sm:$0xff] %v3727_v16  ;;  %v3435_v44 = vpop.f32.mrf.mxu2 }
 0x7ee   : > { %v3436_v58 = vadd.f32 %v3435_v44, %v3417_v34  ;;  %v3547_v43 = vpop.f32.mrf.mxu3 }
 0x7ef   : > { %v3548_v34 = vadd.f32 %v3547_v43, %v6109_v22 }
 0x7f0   : > { %v3455_v39 = vadd.f32 %v3454_v32, %v3436_v58  ;;  %v3509_v32 = vpop.f32.mrf.mxu1 }
 0x7f1   : > { %v3510_v31 = vadd.f32 %v3509_v32, %v3491_v6 }
 0x7f2   : > { %vm3698_vm7 = vcmp.ge.f32.partialorder %v3455_v39, 0.0  ;;  %v3715_v25 = vmul.f32 %v6100_v33, %v3455_v39 }
 0x7f4   : > { %v3731_v45 = vsel %vm3698_vm7, %v3455_v39, %v3715_v25 }
 0x7f5   : > { %3747 = vst [vmem:[%s6106_s28 + $0x60] sm:$0xff] %v3731_v45  ;;  %v3523_v52 = vpop.f32.mrf.mxu2 }
 0x7f6   : > { %v3524_v2 = vadd.f32 %v3523_v52, %v3505_v24  ;;  %v3549_v10 = vpop.f32.mrf.mxu3 }
 0x7f7   : > { %v3550_v52 = vadd.f32 %v3549_v10, %v6115_v42 }
 0x7f8   : > { %vm3687_vm8 = vcmp.ge.f32.partialorder %v3524_v2, 0.0  ;;  %v3704_v9 = vmul.f32 %v6100_v33, %v3524_v2  ;;  %v3511_v5 = vpop.f32.mrf.mxu1 }
 0x7f9   : > { %v3512_v53 = vadd.f32 %v3511_v5, %v3493_v30 }
 0x7fa   : > { %v3720_v54 = vsel %vm3687_vm8, %v3524_v2, %v3704_v9 }
 0x7fb   : > { %3736 = vst [vmem:[%s6106_s28 + $0x8] sm:$0xff] %v3720_v54 }
 0x7fd   : > { %v3525_v15 = vpop.f32.mrf.mxu2 }
 0x7fe   : > { %v3526_v20 = vadd.f32 %v3525_v15, %v3507_v37  ;;  %v3618_v40 = vpop.f32.mrf.mxu3 }
 0x7ff   : > { %v3619_v15 = vadd.f32 %v3618_v40, %v6094_v46 }
 0x800   : > { %vm3691_vm9 = vcmp.ge.f32.partialorder %v3526_v20, 0.0  ;;  %v3708_v23 = vmul.f32 %v6100_v33, %v3526_v20 }
 0x802   : > { %v3724_v55 = vsel %vm3691_vm9, %v3526_v20, %v3708_v23 }
 0x803   : > { %3740 = vst [vmem:[%s6106_s28 + $0x28] sm:$0xff] %v3724_v55  ;;  %v3561_v12 = vpop.f32.mrf.mxu0 }
 0x804   : > { %v3562_v49 = vadd.f32 %v3561_v12, %v3543_v13 }
 0x805   : > { %v3528_v38 = vpop.f32.mrf.mxu2 }
 0x806   : > { %v3529_v59 = vadd.f32 %v3528_v38, %v3510_v31  ;;  %v3620_v58 = vpop.f32.mrf.mxu3 }
 0x808   : > { %vm3695_vm14 = vcmp.ge.f32.partialorder %v3529_v59, 0.0  ;;  %v3712_v28 = vmul.f32 %v6100_v33, %v3529_v59 }
 0x80a   : > { %v3728_v47 = vsel %vm3695_vm14, %v3529_v59, %v3712_v28  ;;  %v3621_v59 = vadd.f32 %v3620_v58, %v6097_v8 }
 0x80b   : > { %3744 = vst [vmem:[%s6106_s28 + $0x48] sm:$0xff] %v3728_v47  ;;  %v3563_v19 = vpop.f32.mrf.mxu0 }
 0x80c   : > { %v3564_v51 = vadd.f32 %v3563_v19, %v3545_v35 }
 0x80d   : > { %v3530_v3 = vpop.f32.mrf.mxu2 }
 0x80e   : > { %v3531_v1 = vadd.f32 %v3530_v3, %v3512_v53 }
 0x810   : > { %vm3699_vm10 = vcmp.ge.f32.partialorder %v3531_v1, 0.0  ;;  %v3716_v26 = vmul.f32 %v6100_v33, %v3531_v1  ;;  %v3623_v0 = vpop.f32.mrf.mxu3 }
 0x811   : > { %v3624_v10 = vadd.f32 %v3623_v0, %v6109_v22 }
 0x812   : > { %v3580_v61 = vpop.f32.mrf.mxu1  ;;  %v3732_v14 = vsel %vm3699_vm10, %v3531_v1, %v3716_v26 }
 0x813   : > { %3748 = vst [vmem:[%s6106_s28 + $0x68] sm:$0xff] %v3732_v14  ;;  %v3581_v57 = vadd.f32 %v3580_v61, %v3562_v49  ;;  %v3566_v48 = vpop.f32.mrf.mxu0 }
 0x814   : > { %v3567_v39 = vadd.f32 %v3566_v48, %v3548_v34 }
 0x815   : > { %v3599_v50 = vpop.f32.mrf.mxu2 }
 0x816   : > { %v3600_v63 = vadd.f32 %v3599_v50, %v3581_v57 }
 0x818   : > { %vm3688_vm11 = vcmp.ge.f32.partialorder %v3600_v63, 0.0  ;;  %v3705_v60 = vmul.f32 %v6100_v33, %v3600_v63  ;;  %v3625_v55 = vpop.f32.mrf.mxu3 }
 0x819   : > { %v3626_v14 = vadd.f32 %v3625_v55, %v6115_v42 }
 0x81a   : > { %v3582_v56 = vpop.f32.mrf.mxu1  ;;  %v3721_v11 = vsel %vm3688_vm11, %v3600_v63, %v3705_v60 }
 0x81b   : > { %3737 = vst [vmem:[%s6106_s28 + $0x10] sm:$0xff] %v3721_v11  ;;  %v3583_v36 = vadd.f32 %v3582_v56, %v3564_v51  ;;  %v3568_v18 = vpop.f32.mrf.mxu0 }
 0x81c   : > { %v3569_v9 = vadd.f32 %v3568_v18, %v3550_v52 }
 0x81d   : > { %v3601_v16 = vpop.f32.mrf.mxu2 }
 0x81e   : > { %v3602_v44 = vadd.f32 %v3601_v16, %v3583_v36 }
 0x820   : > { %vm3692_vm12 = vcmp.ge.f32.partialorder %v3602_v44, 0.0  ;;  %v3709_v62 = vmul.f32 %v6100_v33, %v3602_v44  ;;  %v3642_v47 = vpop.f32.mrf.mxu3 }
 0x821   : > { %v3643_v19 = vadd.f32 %v3642_v47, %v3624_v10 }
 0x822   : > { %v3585_v21 = vpop.f32.mrf.mxu1  ;;  %v3725_v25 = vsel %vm3692_vm12, %v3602_v44, %v3709_v62 }
 0x823   : > { %3741 = vst [vmem:[%s6106_s28 + $0x30] sm:$0xff] %v3725_v25  ;;  %v3586_v24 = vadd.f32 %v3585_v21, %v3567_v39  ;;  %v3637_v37 = vpop.f32.mrf.mxu0 }
 0x824   : > { %v3638_v6 = vadd.f32 %v3637_v37, %v3619_v15 }
 0x825   : > { %v3604_v17 = vpop.f32.mrf.mxu2 }
 0x826   : > { %v3605_v45 = vadd.f32 %v3604_v17, %v3586_v24 }
 0x828   : > { %vm3696_vm13 = vcmp.ge.f32.partialorder %v3605_v45, 0.0  ;;  %v3713_v2 = vmul.f32 %v6100_v33, %v3605_v45  ;;  %v3644_v57 = vpop.f32.mrf.mxu3 }
 0x829   : > { %v3645_v50 = vadd.f32 %v3644_v57, %v3626_v14 }
 0x82a   : > { %v3587_v41 = vpop.f32.mrf.mxu1  ;;  %v3729_v27 = vsel %vm3696_vm13, %v3605_v45, %v3713_v2 }
 0x82b   : > { %3745 = vst [vmem:[%s6106_s28 + $0x50] sm:$0xff] %v3729_v27  ;;  %v3588_v54 = vadd.f32 %v3587_v41, %v3569_v9  ;;  %v3639_v38 = vpop.f32.mrf.mxu0 }
 0x82c   : > { %v3640_v30 = vadd.f32 %v3639_v38, %v3621_v59 }
 0x82d   : > { %v3606_v29 = vpop.f32.mrf.mxu2 }
 0x82e   : > { %v3607_v32 = vadd.f32 %v3606_v29, %v3588_v54 }
 0x830   : > { %vm3700_vm15 = vcmp.ge.f32.partialorder %v3607_v32, 0.0  ;;  %v3717_v20 = vmul.f32 %v6100_v33, %v3607_v32 }
 0x832   : > { %v3656_v4 = vpop.f32.mrf.mxu1  ;;  %v3733_v23 = vsel %vm3700_vm15, %v3607_v32, %v3717_v20 }
 0x833   : > { %3749 = vst [vmem:[%s6106_s28 + $0x70] sm:$0xff] %v3733_v23  ;;  %v3657_v43 = vadd.f32 %v3656_v4, %v3638_v6 }
 0x835   : > { %v3675_v7 = vpop.f32.mrf.mxu2 }
 0x836   : > { %v3676_v31 = vadd.f32 %v3675_v7, %v3657_v43 }
 0x838   : > { %vm3689_vm2 = vcmp.ge.f32.partialorder %v3676_v31, 0.0  ;;  %v3706_v46 = vmul.f32 %v6100_v33, %v3676_v31 }
 0x83a   : > { %v3658_v12 = vpop.f32.mrf.mxu1  ;;  %v3722_v5 = vsel %vm3689_vm2, %v3676_v31, %v3706_v46 }
 0x83b   : > { %3738 = vst [vmem:[%s6106_s28 + $0x18] sm:$0xff] %v3722_v5  ;;  %v3659_v28 = vadd.f32 %v3658_v12, %v3640_v30 }
 0x83d   : > { %v3677_v53 = vpop.f32.mrf.mxu2 }
 0x83e   : > { %v3678_v3 = vadd.f32 %v3677_v53, %v3659_v28 }
 0x840   : > { %vm3693_vm0 = vcmp.ge.f32.partialorder %v3678_v3, 0.0  ;;  %v3710_v13 = vmul.f32 %v6100_v33, %v3678_v3 }
 0x842   : > { %v3661_v1 = vpop.f32.mrf.mxu1  ;;  %v3726_v8 = vsel %vm3693_vm0, %v3678_v3, %v3710_v13 }
 0x843   : > { %3742 = vst [vmem:[%s6106_s28 + $0x38] sm:$0xff] %v3726_v8  ;;  %v3662_v26 = vadd.f32 %v3661_v1, %v3643_v19 }
 0x845   : > { %v3680_v61 = vpop.f32.mrf.mxu2 }
 0x846   : > { %v3681_v49 = vadd.f32 %v3680_v61, %v3662_v26 }
 0x848   : > { %vm3697_vm1 = vcmp.ge.f32.partialorder %v3681_v49, 0.0  ;;  %v3714_v40 = vmul.f32 %v6100_v33, %v3681_v49 }
 0x84a   : > { %v3663_v22 = vpop.f32.mrf.mxu1  ;;  %v3730_v63 = vsel %vm3697_vm1, %v3681_v49, %v3714_v40 }
 0x84b   : > { %3746 = vst [vmem:[%s6106_s28 + $0x58] sm:$0xff] %v3730_v63  ;;  %v3664_v56 = vadd.f32 %v3663_v22, %v3645_v50 }
 0x84d   : > { %v3682_v35 = vpop.f32.mrf.mxu2 }
 0x84e   : > { %v3683_v60 = vadd.f32 %v3682_v35, %v3664_v56 }
 0x850   : > { %vm3701_vm3 = vcmp.ge.f32.partialorder %v3683_v60, 0.0  ;;  %v3718_v48 = vmul.f32 %v6100_v33, %v3683_v60 }
 0x852   : > { %v3734_v51 = vsel %vm3701_vm3, %v3683_v60, %v3718_v48 }
 0x853   : > { %3750 = vst [vmem:[%s6106_s28 + $0x78] sm:$0xff] %v3734_v51 }
 0x854 PF: > { %s16_s22 = sadd.s32 1, %s4569_s22   ;;  %s6191_s20 = smov %s4565_s21 }
 0x855   : > { %p13_p5 = scmp.ge.s32.totalorder %s16_s22, 4   ;;  %s6192_s21 = smov %s6194_s4 }
 0x857   :  { %15 = sbr.rel (!%p13_p5) target bundleno = 2 (0x2), region = 98 }

</bundles_post_ra>
